<compile_context>
chip_gen: v7x
topology: tpu7x:2x2x1
jax: 0.10.0
libtpu: 0.0.40
codegen_flags: <defaults>
</compile_context>

<pallas_src>
import functools

import jax
import jax.numpy as jnp
from jax.experimental import pallas as pl
from jax.experimental.pallas import tpu as pltpu


# ---------------------------------------------------------------------------
# In-kernel helpers
# ---------------------------------------------------------------------------
def _mm_bias(x, w, b, relu):
    """(M, K) @ (K, N) + (1, N), optional ReLU, f32 accumulate (1x1 conv)."""
    acc = jnp.dot(x, w, preferred_element_type=jnp.float32) + b
    if relu:
        acc = jnp.maximum(acc, 0.0)
    return acc


def _conv3x3_flat(act, w9_ref, b_ref, pad_ref, *, H, W, relu):
    """3x3 'SAME' conv on a spatially flattened activation.

    act:     (H*W, Cin) f32 value, row r = h*W + w.
    w9_ref:  (9, Cin, Cout) ref, k = kh*3 + kw.
    b_ref:   (1, Cout) ref.
    pad_ref: VMEM scratch (H*W + 3*W + 8, Cin): zero borders + image interior.

    Vertical out-of-bounds taps land in the zeroed head/tail rows of the
    scratch; horizontal out-of-bounds taps are removed with per-column masks.
    """
    HW = H * W
    Cout = w9_ref.shape[-1]
    base = 2 * W                                    # sublane-aligned interior

    pad_ref[...] = jnp.zeros(pad_ref.shape, pad_ref.dtype)
    pad_ref[base:base + HW, :] = act

    # column index (w) of every output row, for masking the dx = +/-1 taps
    col = jax.lax.broadcasted_iota(jnp.int32, (HW, 1), 0) % W

    acc = jnp.zeros((HW, Cout), jnp.float32)
    for dx in (-1, 0, 1):
        part = jnp.zeros((HW, Cout), jnp.float32)
        for dy in (-1, 0, 1):
            s = base + dy * W + dx                  # static slab offset
            k = (dy + 1) * 3 + (dx + 1)
            part = part + jnp.dot(pad_ref[s:s + HW, :], w9_ref[k],
                                  preferred_element_type=jnp.float32)
        if dx == -1:
            part = jnp.where(col >= 1, part, 0.0)
        elif dx == 1:
            part = jnp.where(col <= W - 2, part, 0.0)
        acc = acc + part

    acc = acc + b_ref[...]
    if relu:
        acc = jnp.maximum(acc, 0.0)
    return acc


# ---------------------------------------------------------------------------
# Fused stage kernels (one image per grid step, everything stays on-chip)
# ---------------------------------------------------------------------------
def _stage1_kernel(x_ref,
                   w1_ref, b1_ref, w2_ref, b2_ref, w3_ref, b3_ref,
                   w4_ref, b4_ref, w5_ref, b5_ref,
                   o_ref, pad_ref, *, H, W):
    a = x_ref[0].astype(jnp.float32)                              # (H*W, vocab)
    a = _mm_bias(a, w1_ref[...], b1_ref[...], relu=True)          # 1x1
    a = _conv3x3_flat(a, w2_ref, b2_ref, pad_ref, H=H, W=W, relu=True)
    a = _mm_bias(a, w3_ref[...], b3_ref[...], relu=True)          # 1x1
    a = _mm_bias(a, w4_ref[...], b4_ref[...], relu=True)          # 1x1
    a = _mm_bias(a, w5_ref[...], b5_ref[...], relu=True)          # 1x1 -> 4*stem
    o_ref[0] = a.astype(o_ref.dtype)


def _stage2_kernel(u_ref,
                   w6_ref, b6_ref, w7_ref, b7_ref, w8_ref, b8_ref,
                   w9_ref, b9_ref, wf_ref, bf_ref,
                   o_ref, pad_ref, *, H, W):
    a = u_ref[0].astype(jnp.float32)                              # (H*W, stem)
    a = _conv3x3_flat(a, w6_ref, b6_ref, pad_ref, H=H, W=W, relu=True)
    a = _mm_bias(a, w7_ref[...], b7_ref[...], relu=True)          # 1x1
    a = _mm_bias(a, w8_ref[...], b8_ref[...], relu=True)          # 1x1
    a = _mm_bias(a, w9_ref[...], b9_ref[...], relu=True)          # 1x1 -> 4*stem
    # folded PixelShuffle(2) + final 1x1 (no ReLU): lane-dense 128-wide output
    z = jnp.dot(a, wf_ref[...], preferred_element_type=jnp.float32) + bf_ref[...]
    o_ref[0] = z.astype(o_ref.dtype)


# ---------------------------------------------------------------------------
# pallas_call wrappers
# ---------------------------------------------------------------------------
def _wspec(shape):
    """Full-array BlockSpec with a constant index_map (weights stay resident)."""
    zeros = (0,) * len(shape)
    return pl.BlockSpec(shape, lambda n, _z=zeros: _z)


def _run_stage1(x, w1, b1, w2, b2, w3, b3, w4, b4, w5, b5, H, W):
    N, HW, V = x.shape
    C = w1.shape[1]
    C4 = w5.shape[1]
    args = (x, w1, b1, w2, b2, w3, b3, w4, b4, w5, b5)
    in_specs = [pl.BlockSpec((1, HW, V), lambda n: (n, 0, 0))]
    in_specs += [_wspec(a.shape) for a in args[1:]]
    return pl.pallas_call(
        functools.partial(_stage1_kernel, H=H, W=W),
        out_shape=jax.ShapeDtypeStruct((N, HW, C4), jnp.float32),
        grid=(N,),
        in_specs=in_specs,
        out_specs=pl.BlockSpec((1, HW, C4), lambda n: (n, 0, 0)),
        scratch_shapes=[pltpu.VMEM((HW + 3 * W + 8, C), jnp.float32)],
        compiler_params=pltpu.CompilerParams(
            dimension_semantics=("parallel",),
            vmem_limit_bytes=32 * 1024 * 1024),
    )(*args)


def _run_stage2(u, w6, b6, w7, b7, w8, b8, w9, b9, wf, bf, H, W):
    N, HW, C = u.shape
    Cf = wf.shape[1]
    args = (u, w6, b6, w7, b7, w8, b8, w9, b9, wf, bf)
    in_specs = [pl.BlockSpec((1, HW, C), lambda n: (n, 0, 0))]
    in_specs += [_wspec(a.shape) for a in args[1:]]
    return pl.pallas_call(
        functools.partial(_stage2_kernel, H=H, W=W),
        out_shape=jax.ShapeDtypeStruct((N, HW, Cf), jnp.float32),
        grid=(N,),
        in_specs=in_specs,
        out_specs=pl.BlockSpec((1, HW, Cf), lambda n: (n, 0, 0)),
        scratch_shapes=[pltpu.VMEM((HW + 3 * W + 8, C), jnp.float32)],
        compiler_params=pltpu.CompilerParams(
            dimension_semantics=("parallel",),
            vmem_limit_bytes=32 * 1024 * 1024),
    )(*args)


# ---------------------------------------------------------------------------
# DecoderBN parameters + forward
# ---------------------------------------------------------------------------
def init_decoder_params(key, original_in_channels, stem_channels, vocab_size):
    """Dict of arrays matching the PyTorch DecoderBN layer stack."""
    C, V, O = stem_channels, vocab_size, original_in_channels
    spec = [
        ("c1", 1, V, C), ("c2", 3, C, C), ("c3", 1, C, C), ("c4", 1, C, C),
        ("c5", 1, C, 4 * C),
        ("c6", 3, C, C), ("c7", 1, C, C), ("c8", 1, C, C), ("c9", 1, C, 4 * C),
        ("cf", 1, C, O),
    ]
    params = {}
    for name, k, cin, cout in spec:
        fan_in = cin * k * k
        bound = 1.0 / (fan_in ** 0.5)
        key, kw, kb = jax.random.split(key, 3)
        shape = (3, 3, cin, cout) if k == 3 else (cin, cout)
        params[name + "_w"] = jax.random.uniform(kw, shape, jnp.float32,
                                                 -bound, bound)
        params[name + "_b"] = jax.random.uniform(kb, (cout,), jnp.float32,
                                                 -bound, bound)
    return params


def decoder_forward(params, sample):
    """sample: (B, L, vocab, H, W) -> (B, L, original_in_channels, 4H, 4W)."""
    B, L, V, H, W = sample.shape
    N = B * L
    stem = params["c1_w"].shape[1]
    n_out = params["cf_w"].shape[1]

    # (B, L, C, H, W) -> (N, H*W, C)
    x = sample.reshape(N, V, H, W).transpose(0, 2, 3, 1).reshape(N, H * W, V)

    # ---- stage 1 (fused): 1x1 -> 3x3 -> 1x1 -> 1x1 -> 1x1(4*stem) ----
    y1 = _run_stage1(
        x,
        params["c1_w"], params["c1_b"].reshape(1, -1),
        params["c2_w"].reshape(9, stem, stem), params["c2_b"].reshape(1, -1),
        params["c3_w"], params["c3_b"].reshape(1, -1),
        params["c4_w"], params["c4_b"].reshape(1, -1),
        params["c5_w"], params["c5_b"].reshape(1, -1),
        H, W)

    # PixelShuffle(2) #1 as a tiny XLA transpose, then re-flatten spatial.
    y1 = y1.reshape(N, H, W, stem, 2, 2).transpose(0, 1, 4, 2, 5, 3)
    H2, W2 = 2 * H, 2 * W
    u = y1.reshape(N, H2 * W2, stem)

    # ---- fold PixelShuffle(2) #2 + final 1x1 into one block matmul ----
    # a9 channel (c*4 + 2i + j) feeds output sub-pixel g = 2i+j, channel c.
    Cp = max(32, -(-n_out // 32) * 32)          # 4*Cp is a lane-dense 128-mult
    wf_pad = jnp.zeros((stem, Cp), jnp.float32).at[:, :n_out].set(params["cf_w"])
    wf_big = jnp.einsum("gh,cp->cghp", jnp.eye(4, dtype=jnp.float32),
                        wf_pad).reshape(4 * stem, 4 * Cp)
    bf_big = jnp.tile(jnp.zeros((Cp,), jnp.float32).at[:n_out].set(params["cf_b"]),
                      4)

    # ---- stage 2 (fused): 3x3 -> 1x1 -> 1x1 -> 1x1(4*stem) -> [PS2 + final] ----
    z = _run_stage2(
        u,
        params["c6_w"].reshape(9, stem, stem), params["c6_b"].reshape(1, -1),
        params["c7_w"], params["c7_b"].reshape(1, -1),
        params["c8_w"], params["c8_b"].reshape(1, -1),
        params["c9_w"], params["c9_b"].reshape(1, -1),
        wf_big, bf_big.reshape(1, -1),
        H2, W2)

    # undo the folded pixel-shuffle layout and drop the lane padding
    z = z.reshape(N, H2, W2, 2, 2, Cp).transpose(0, 1, 3, 2, 4, 5)
    out = z.reshape(N, 4 * H, 4 * W, Cp)[..., :n_out]
    return out.transpose(0, 3, 1, 2).reshape(B, L, n_out, 4 * H, 4 * W)


# ---------------------------------------------------------------------------
# Pure-JAX reference (correctness check only)
# ---------------------------------------------------------------------------
def pixel_shuffle_nhwc(x, r):
    N, H, W, Crr = x.shape
    C = Crr // (r * r)
    x = x.reshape(N, H, W, C, r, r)
    x = jnp.transpose(x, (0, 1, 4, 2, 5, 3))
    return x.reshape(N, H * r, W * r, C)


def decoder_forward_ref(params, sample):
    B, L, V, H, W = sample.shape
    x = sample.reshape(B * L, V, H, W).transpose(0, 2, 3, 1)

    def conv(x, name, relu):
        w = params[name + "_w"]
        if w.ndim == 2:
            w = w.reshape(1, 1, *w.shape)
        pad = "SAME" if w.shape[0] == 3 else "VALID"
        x = jax.lax.conv_general_dilated(
            x, w, (1, 1), pad, dimension_numbers=("NHWC", "HWIO", "NHWC"))
        x = x + params[name + "_b"]
        return jnp.maximum(x, 0.0) if relu else x

    x = conv(x, "c1", True); x = conv(x, "c2", True)
    x = conv(x, "c3", True); x = conv(x, "c4", True); x = conv(x, "c5", True)
    x = pixel_shuffle_nhwc(x, 2)
    x = conv(x, "c6", True); x = conv(x, "c7", True)
    x = conv(x, "c8", True); x = conv(x, "c9", True)
    x = pixel_shuffle_nhwc(x, 2)
    x = conv(x, "cf", False)
    N, Ho, Wo, Co = x.shape
    return x.transpose(0, 3, 1, 2).reshape(B, L, Co, Ho, Wo)


# ---------------------------------------------------------------------------
if __name__ == "__main__":
    B, L = 2, 3
    vocab_size = 16
    stem_channels = 32
    original_in_channels = 3
    H = W = 8

    key = jax.random.PRNGKey(0)
    kp, kx = jax.random.split(key)
    params = init_decoder_params(kp, original_in_channels, stem_channels,
                                 vocab_size)
    sample = jax.random.normal(kx, (B, L, vocab_size, H, W), jnp.float32)

    fwd = jax.jit(decoder_forward)
    out = jax.block_until_ready(fwd(params, sample))
    assert out.shape == (B, L, original_in_channels, 4 * H, 4 * W), out.shape

    ref = jax.block_until_ready(decoder_forward_ref(params, sample))
    assert jnp.allclose(out, ref, rtol=1e-2, atol=1e-2), (
        float(jnp.max(jnp.abs(out - ref))))

    print("KERNEL_OK")
</pallas_src>

<mosaic_0001>
module attributes {stable_mosaic.version = 11 : i64} {
  func.func @_stage1_kernel(%arg0: i32, %arg1: memref<1x64x16xf32, #tpu.memory_space<vmem>>, %arg2: memref<16x32xf32, #tpu.memory_space<vmem>>, %arg3: memref<1x32xf32, #tpu.memory_space<vmem>>, %arg4: memref<9x32x32xf32, #tpu.memory_space<vmem>>, %arg5: memref<1x32xf32, #tpu.memory_space<vmem>>, %arg6: memref<32x32xf32, #tpu.memory_space<vmem>>, %arg7: memref<1x32xf32, #tpu.memory_space<vmem>>, %arg8: memref<32x32xf32, #tpu.memory_space<vmem>>, %arg9: memref<1x32xf32, #tpu.memory_space<vmem>>, %arg10: memref<32x128xf32, #tpu.memory_space<vmem>>, %arg11: memref<1x128xf32, #tpu.memory_space<vmem>>, %arg12: memref<1x64x128xf32, #tpu.memory_space<vmem>>, %arg13: memref<96x32xf32, #tpu.memory_space<vmem>>) attributes {dimension_semantics = [#tpu.dimension_semantics<parallel>], iteration_bounds = array<i64: 6>, scalar_prefetch = 0 : i64, scratch_operands = 1 : i64, tpu.core_type = #tpu.core_type<tc>, window_params = [{transform_indices = @transform_0, window_bounds = array<i64: 1, 64, 16>}, {pipeline_mode = #tpu.pipeline_mode<synchronous>, transform_indices = @transform_1, window_bounds = array<i64: 16, 32>}, {pipeline_mode = #tpu.pipeline_mode<synchronous>, transform_indices = @transform_2, window_bounds = array<i64: 1, 32>}, {pipeline_mode = #tpu.pipeline_mode<synchronous>, transform_indices = @transform_3, window_bounds = array<i64: 9, 32, 32>}, {pipeline_mode = #tpu.pipeline_mode<synchronous>, transform_indices = @transform_4, window_bounds = array<i64: 1, 32>}, {pipeline_mode = #tpu.pipeline_mode<synchronous>, transform_indices = @transform_5, window_bounds = array<i64: 32, 32>}, {pipeline_mode = #tpu.pipeline_mode<synchronous>, transform_indices = @transform_6, window_bounds = array<i64: 1, 32>}, {pipeline_mode = #tpu.pipeline_mode<synchronous>, transform_indices = @transform_7, window_bounds = array<i64: 32, 32>}, {pipeline_mode = #tpu.pipeline_mode<synchronous>, transform_indices = @transform_8, window_bounds = array<i64: 1, 32>}, {pipeline_mode = #tpu.pipeline_mode<synchronous>, transform_indices = @transform_9, window_bounds = array<i64: 32, 128>}, {pipeline_mode = #tpu.pipeline_mode<synchronous>, transform_indices = @transform_10, window_bounds = array<i64: 1, 128>}, {transform_indices = @transform_11, window_bounds = array<i64: 1, 64, 128>}]} {
    %c0 = arith.constant 0 : index
    %c0_0 = arith.constant 0 : index
    %c0_1 = arith.constant 0 : index
    %0 = vector.load %arg1[%c0, %c0_0, %c0_1] : memref<1x64x16xf32, #tpu.memory_space<vmem>>, vector<1x64x16xf32>
    %1 = vector.shape_cast %0 : vector<1x64x16xf32> to vector<64x16xf32>
    %c0_2 = arith.constant 0 : index
    %c0_3 = arith.constant 0 : index
    %2 = vector.load %arg2[%c0_2, %c0_3] : memref<16x32xf32, #tpu.memory_space<vmem>>, vector<16x32xf32>
    %c0_4 = arith.constant 0 : index
    %c0_5 = arith.constant 0 : index
    %3 = vector.load %arg3[%c0_4, %c0_5] : memref<1x32xf32, #tpu.memory_space<vmem>>, vector<1x32xf32>
    %cst = arith.constant dense<0.000000e+00> : vector<64x32xf32>
    %4 = tpu.matmul %1, %2, %cst {dimension_numbers = #tpu.dot_dimension_numbers<[1], [0], [0], [1], [0, 0, 1, 1], [], []>} : vector<64x16xf32>, vector<16x32xf32>, vector<64x32xf32> -> vector<64x32xf32>
    %5 = vector.broadcast %3 : vector<1x32xf32> to vector<64x32xf32>
    %6 = arith.addf %4, %5 : vector<64x32xf32>
    %cst_6 = arith.constant 0.000000e+00 : f32
    %7 = vector.broadcast %cst_6 : f32 to vector<64x32xf32>
    %8 = arith.maximumf %6, %7 : vector<64x32xf32>
    %cst_7 = arith.constant 0.000000e+00 : f32
    %9 = vector.broadcast %cst_7 : f32 to vector<96x32xf32>
    %c0_8 = arith.constant 0 : index
    %c0_9 = arith.constant 0 : index
    %10 = vector.load %arg13[%c0_8, %c0_9] : memref<96x32xf32, #tpu.memory_space<vmem>>, vector<96x32xf32>
    tpu.vector_store %arg13[%c0_8, %c0_9], %9 {strides = array<i32>} : memref<96x32xf32, #tpu.memory_space<vmem>>, vector<96x32xf32>,
    %c16 = arith.constant 16 : index
    %c0_10 = arith.constant 0 : index
    %11 = vector.load %arg13[%c16, %c0_10] : memref<96x32xf32, #tpu.memory_space<vmem>>, vector<64x32xf32>
    tpu.vector_store %arg13[%c16, %c0_10], %8 {strides = array<i32>} : memref<96x32xf32, #tpu.memory_space<vmem>>, vector<64x32xf32>,
    %12 = tpu.iota {dimensions = array<i32: 0>} : vector<64x1xi32>
    %c8_i32 = arith.constant 8 : i32
    %c0_i32 = arith.constant 0 : i32
    %13 = arith.cmpi eq, %c8_i32, %c0_i32 : i32
    %c1_i32 = arith.constant 1 : i32
    %14 = arith.select %13, %c1_i32, %c8_i32 : i32
    %15 = vector.broadcast %14 : i32 to vector<64x1xi32>
    %16 = arith.remsi %12, %15 : vector<64x1xi32>
    %c0_i32_11 = arith.constant 0 : i32
    %17 = vector.broadcast %c0_i32_11 : i32 to vector<64x1xi32>
    %18 = arith.cmpi ne, %16, %17 : vector<64x1xi32>
    %c0_i32_12 = arith.constant 0 : i32
    %19 = vector.broadcast %c0_i32_12 : i32 to vector<64x1xi32>
    %20 = arith.cmpi slt, %16, %19 : vector<64x1xi32>
    %c0_i32_13 = arith.constant 0 : i32
    %21 = arith.cmpi slt, %14, %c0_i32_13 : i32
    %22 = vector.broadcast %21 : i1 to vector<64x1xi1>
    %23 = vector.broadcast %22 : vector<64x1xi1> to vector<64x1xi1>
    %24 = arith.xori %20, %23 : vector<64x1xi1>
    %25 = arith.andi %24, %18 : vector<64x1xi1>
    %26 = vector.broadcast %14 : i32 to vector<64x1xi32>
    %27 = arith.addi %16, %26 : vector<64x1xi32>
    %28 = arith.select %25, %27, %16 : vector<64x1xi1>, vector<64x1xi32>
    %cst_14 = arith.constant 0.000000e+00 : f32
    %29 = vector.broadcast %cst_14 : f32 to vector<64x32xf32>
    %cst_15 = arith.constant 0.000000e+00 : f32
    %30 = vector.broadcast %cst_15 : f32 to vector<64x32xf32>
    %c7 = arith.constant 7 : index
    %c0_16 = arith.constant 0 : index
    %31 = vector.load %arg13[%c7, %c0_16] : memref<96x32xf32, #tpu.memory_space<vmem>>, vector<64x32xf32>
    %c0_17 = arith.constant 0 : index
    %c0_18 = arith.constant 0 : index
    %c0_19 = arith.constant 0 : index
    %32 = vector.load %arg4[%c0_17, %c0_18, %c0_19] : memref<9x32x32xf32, #tpu.memory_space<vmem>>, vector<1x32x32xf32>
    %33 = vector.shape_cast %32 : vector<1x32x32xf32> to vector<32x32xf32>
    %cst_20 = arith.constant dense<0.000000e+00> : vector<64x32xf32>
    %34 = tpu.matmul %31, %33, %cst_20 {dimension_numbers = #tpu.dot_dimension_numbers<[1], [0], [0], [1], [0, 0, 1, 1], [], []>} : vector<64x32xf32>, vector<32x32xf32>, vector<64x32xf32> -> vector<64x32xf32>
    %35 = arith.addf %30, %34 : vector<64x32xf32>
    %c15 = arith.constant 15 : index
    %c0_21 = arith.constant 0 : index
    %36 = vector.load %arg13[%c15, %c0_21] : memref<96x32xf32, #tpu.memory_space<vmem>>, vector<64x32xf32>
    %c3 = arith.constant 3 : index
    %c0_22 = arith.constant 0 : index
    %c0_23 = arith.constant 0 : index
    %37 = vector.load %arg4[%c3, %c0_22, %c0_23] : memref<9x32x32xf32, #tpu.memory_space<vmem>>, vector<1x32x32xf32>
    %38 = vector.shape_cast %37 : vector<1x32x32xf32> to vector<32x32xf32>
    %cst_24 = arith.constant dense<0.000000e+00> : vector<64x32xf32>
    %39 = tpu.matmul %36, %38, %cst_24 {dimension_numbers = #tpu.dot_dimension_numbers<[1], [0], [0], [1], [0, 0, 1, 1], [], []>} : vector<64x32xf32>, vector<32x32xf32>, vector<64x32xf32> -> vector<64x32xf32>
    %40 = arith.addf %35, %39 : vector<64x32xf32>
    %c23 = arith.constant 23 : index
    %c0_25 = arith.constant 0 : index
    %41 = vector.load %arg13[%c23, %c0_25] : memref<96x32xf32, #tpu.memory_space<vmem>>, vector<64x32xf32>
    %c6 = arith.constant 6 : index
    %c0_26 = arith.constant 0 : index
    %c0_27 = arith.constant 0 : index
    %42 = vector.load %arg4[%c6, %c0_26, %c0_27] : memref<9x32x32xf32, #tpu.memory_space<vmem>>, vector<1x32x32xf32>
    %43 = vector.shape_cast %42 : vector<1x32x32xf32> to vector<32x32xf32>
    %cst_28 = arith.constant dense<0.000000e+00> : vector<64x32xf32>
    %44 = tpu.matmul %41, %43, %cst_28 {dimension_numbers = #tpu.dot_dimension_numbers<[1], [0], [0], [1], [0, 0, 1, 1], [], []>} : vector<64x32xf32>, vector<32x32xf32>, vector<64x32xf32> -> vector<64x32xf32>
    %45 = arith.addf %40, %44 : vector<64x32xf32>
    %c1_i32_29 = arith.constant 1 : i32
    %46 = vector.broadcast %c1_i32_29 : i32 to vector<64x1xi32>
    %47 = arith.cmpi sge, %28, %46 : vector<64x1xi32>
    %cst_30 = arith.constant 0.000000e+00 : f32
    %48 = vector.shape_cast %47 : vector<64x1xi1> to vector<64x1xi1>
    %49 = vector.broadcast %48 : vector<64x1xi1> to vector<64x32xi1>
    %50 = vector.broadcast %cst_30 : f32 to vector<64x32xf32>
    %51 = arith.select %49, %45, %50 : vector<64x32xi1>, vector<64x32xf32>
    %52 = arith.addf %29, %51 : vector<64x32xf32>
    %cst_31 = arith.constant 0.000000e+00 : f32
    %53 = vector.broadcast %cst_31 : f32 to vector<64x32xf32>
    %c8 = arith.constant 8 : index
    %c0_32 = arith.constant 0 : index
    %54 = vector.load %arg13[%c8, %c0_32] : memref<96x32xf32, #tpu.memory_space<vmem>>, vector<64x32xf32>
    %c1 = arith.constant 1 : index
    %c0_33 = arith.constant 0 : index
    %c0_34 = arith.constant 0 : index
    %55 = vector.load %arg4[%c1, %c0_33, %c0_34] : memref<9x32x32xf32, #tpu.memory_space<vmem>>, vector<1x32x32xf32>
    %56 = vector.shape_cast %55 : vector<1x32x32xf32> to vector<32x32xf32>
    %cst_35 = arith.constant dense<0.000000e+00> : vector<64x32xf32>
    %57 = tpu.matmul %54, %56, %cst_35 {dimension_numbers = #tpu.dot_dimension_numbers<[1], [0], [0], [1], [0, 0, 1, 1], [], []>} : vector<64x32xf32>, vector<32x32xf32>, vector<64x32xf32> -> vector<64x32xf32>
    %58 = arith.addf %53, %57 : vector<64x32xf32>
    %c16_36 = arith.constant 16 : index
    %c0_37 = arith.constant 0 : index
    %59 = vector.load %arg13[%c16_36, %c0_37] : memref<96x32xf32, #tpu.memory_space<vmem>>, vector<64x32xf32>
    %c4 = arith.constant 4 : index
    %c0_38 = arith.constant 0 : index
    %c0_39 = arith.constant 0 : index
    %60 = vector.load %arg4[%c4, %c0_38, %c0_39] : memref<9x32x32xf32, #tpu.memory_space<vmem>>, vector<1x32x32xf32>
    %61 = vector.shape_cast %60 : vector<1x32x32xf32> to vector<32x32xf32>
    %cst_40 = arith.constant dense<0.000000e+00> : vector<64x32xf32>
    %62 = tpu.matmul %59, %61, %cst_40 {dimension_numbers = #tpu.dot_dimension_numbers<[1], [0], [0], [1], [0, 0, 1, 1], [], []>} : vector<64x32xf32>, vector<32x32xf32>, vector<64x32xf32> -> vector<64x32xf32>
    %63 = arith.addf %58, %62 : vector<64x32xf32>
    %c24 = arith.constant 24 : index
    %c0_41 = arith.constant 0 : index
    %64 = vector.load %arg13[%c24, %c0_41] : memref<96x32xf32, #tpu.memory_space<vmem>>, vector<64x32xf32>
    %c7_42 = arith.constant 7 : index
    %c0_43 = arith.constant 0 : index
    %c0_44 = arith.constant 0 : index
    %65 = vector.load %arg4[%c7_42, %c0_43, %c0_44] : memref<9x32x32xf32, #tpu.memory_space<vmem>>, vector<1x32x32xf32>
    %66 = vector.shape_cast %65 : vector<1x32x32xf32> to vector<32x32xf32>
    %cst_45 = arith.constant dense<0.000000e+00> : vector<64x32xf32>
    %67 = tpu.matmul %64, %66, %cst_45 {dimension_numbers = #tpu.dot_dimension_numbers<[1], [0], [0], [1], [0, 0, 1, 1], [], []>} : vector<64x32xf32>, vector<32x32xf32>, vector<64x32xf32> -> vector<64x32xf32>
    %68 = arith.addf %63, %67 : vector<64x32xf32>
    %69 = arith.addf %52, %68 : vector<64x32xf32>
    %cst_46 = arith.constant 0.000000e+00 : f32
    %70 = vector.broadcast %cst_46 : f32 to vector<64x32xf32>
    %c9 = arith.constant 9 : index
    %c0_47 = arith.constant 0 : index
    %71 = vector.load %arg13[%c9, %c0_47] : memref<96x32xf32, #tpu.memory_space<vmem>>, vector<64x32xf32>
    %c2 = arith.constant 2 : index
    %c0_48 = arith.constant 0 : index
    %c0_49 = arith.constant 0 : index
    %72 = vector.load %arg4[%c2, %c0_48, %c0_49] : memref<9x32x32xf32, #tpu.memory_space<vmem>>, vector<1x32x32xf32>
    %73 = vector.shape_cast %72 : vector<1x32x32xf32> to vector<32x32xf32>
    %cst_50 = arith.constant dense<0.000000e+00> : vector<64x32xf32>
    %74 = tpu.matmul %71, %73, %cst_50 {dimension_numbers = #tpu.dot_dimension_numbers<[1], [0], [0], [1], [0, 0, 1, 1], [], []>} : vector<64x32xf32>, vector<32x32xf32>, vector<64x32xf32> -> vector<64x32xf32>
    %75 = arith.addf %70, %74 : vector<64x32xf32>
    %c17 = arith.constant 17 : index
    %c0_51 = arith.constant 0 : index
    %76 = vector.load %arg13[%c17, %c0_51] : memref<96x32xf32, #tpu.memory_space<vmem>>, vector<64x32xf32>
    %c5 = arith.constant 5 : index
    %c0_52 = arith.constant 0 : index
    %c0_53 = arith.constant 0 : index
    %77 = vector.load %arg4[%c5, %c0_52, %c0_53] : memref<9x32x32xf32, #tpu.memory_space<vmem>>, vector<1x32x32xf32>
    %78 = vector.shape_cast %77 : vector<1x32x32xf32> to vector<32x32xf32>
    %cst_54 = arith.constant dense<0.000000e+00> : vector<64x32xf32>
    %79 = tpu.matmul %76, %78, %cst_54 {dimension_numbers = #tpu.dot_dimension_numbers<[1], [0], [0], [1], [0, 0, 1, 1], [], []>} : vector<64x32xf32>, vector<32x32xf32>, vector<64x32xf32> -> vector<64x32xf32>
    %80 = arith.addf %75, %79 : vector<64x32xf32>
    %c25 = arith.constant 25 : index
    %c0_55 = arith.constant 0 : index
    %81 = vector.load %arg13[%c25, %c0_55] : memref<96x32xf32, #tpu.memory_space<vmem>>, vector<64x32xf32>
    %c8_56 = arith.constant 8 : index
    %c0_57 = arith.constant 0 : index
    %c0_58 = arith.constant 0 : index
    %82 = vector.load %arg4[%c8_56, %c0_57, %c0_58] : memref<9x32x32xf32, #tpu.memory_space<vmem>>, vector<1x32x32xf32>
    %83 = vector.shape_cast %82 : vector<1x32x32xf32> to vector<32x32xf32>
    %cst_59 = arith.constant dense<0.000000e+00> : vector<64x32xf32>
    %84 = tpu.matmul %81, %83, %cst_59 {dimension_numbers = #tpu.dot_dimension_numbers<[1], [0], [0], [1], [0, 0, 1, 1], [], []>} : vector<64x32xf32>, vector<32x32xf32>, vector<64x32xf32> -> vector<64x32xf32>
    %85 = arith.addf %80, %84 : vector<64x32xf32>
    %c6_i32 = arith.constant 6 : i32
    %86 = vector.broadcast %c6_i32 : i32 to vector<64x1xi32>
    %87 = arith.cmpi sle, %28, %86 : vector<64x1xi32>
    %cst_60 = arith.constant 0.000000e+00 : f32
    %88 = vector.shape_cast %87 : vector<64x1xi1> to vector<64x1xi1>
    %89 = vector.broadcast %88 : vector<64x1xi1> to vector<64x32xi1>
    %90 = vector.broadcast %cst_60 : f32 to vector<64x32xf32>
    %91 = arith.select %89, %85, %90 : vector<64x32xi1>, vector<64x32xf32>
    %92 = arith.addf %69, %91 : vector<64x32xf32>
    %c0_61 = arith.constant 0 : index
    %c0_62 = arith.constant 0 : index
    %93 = vector.load %arg5[%c0_61, %c0_62] : memref<1x32xf32, #tpu.memory_space<vmem>>, vector<1x32xf32>
    %94 = vector.broadcast %93 : vector<1x32xf32> to vector<64x32xf32>
    %95 = arith.addf %92, %94 : vector<64x32xf32>
    %cst_63 = arith.constant 0.000000e+00 : f32
    %96 = vector.broadcast %cst_63 : f32 to vector<64x32xf32>
    %97 = arith.maximumf %95, %96 : vector<64x32xf32>
    %c0_64 = arith.constant 0 : index
    %c0_65 = arith.constant 0 : index
    %98 = vector.load %arg6[%c0_64, %c0_65] : memref<32x32xf32, #tpu.memory_space<vmem>>, vector<32x32xf32>
    %c0_66 = arith.constant 0 : index
    %c0_67 = arith.constant 0 : index
    %99 = vector.load %arg7[%c0_66, %c0_67] : memref<1x32xf32, #tpu.memory_space<vmem>>, vector<1x32xf32>
    %cst_68 = arith.constant dense<0.000000e+00> : vector<64x32xf32>
    %100 = tpu.matmul %97, %98, %cst_68 {dimension_numbers = #tpu.dot_dimension_numbers<[1], [0], [0], [1], [0, 0, 1, 1], [], []>} : vector<64x32xf32>, vector<32x32xf32>, vector<64x32xf32> -> vector<64x32xf32>
    %101 = vector.broadcast %99 : vector<1x32xf32> to vector<64x32xf32>
    %102 = arith.addf %100, %101 : vector<64x32xf32>
    %cst_69 = arith.constant 0.000000e+00 : f32
    %103 = vector.broadcast %cst_69 : f32 to vector<64x32xf32>
    %104 = arith.maximumf %102, %103 : vector<64x32xf32>
    %c0_70 = arith.constant 0 : index
    %c0_71 = arith.constant 0 : index
    %105 = vector.load %arg8[%c0_70, %c0_71] : memref<32x32xf32, #tpu.memory_space<vmem>>, vector<32x32xf32>
    %c0_72 = arith.constant 0 : index
    %c0_73 = arith.constant 0 : index
    %106 = vector.load %arg9[%c0_72, %c0_73] : memref<1x32xf32, #tpu.memory_space<vmem>>, vector<1x32xf32>
    %cst_74 = arith.constant dense<0.000000e+00> : vector<64x32xf32>
    %107 = tpu.matmul %104, %105, %cst_74 {dimension_numbers = #tpu.dot_dimension_numbers<[1], [0], [0], [1], [0, 0, 1, 1], [], []>} : vector<64x32xf32>, vector<32x32xf32>, vector<64x32xf32> -> vector<64x32xf32>
    %108 = vector.broadcast %106 : vector<1x32xf32> to vector<64x32xf32>
    %109 = arith.addf %107, %108 : vector<64x32xf32>
    %cst_75 = arith.constant 0.000000e+00 : f32
    %110 = vector.broadcast %cst_75 : f32 to vector<64x32xf32>
    %111 = arith.maximumf %109, %110 : vector<64x32xf32>
    %c0_76 = arith.constant 0 : index
    %c0_77 = arith.constant 0 : index
    %112 = vector.load %arg10[%c0_76, %c0_77] : memref<32x128xf32, #tpu.memory_space<vmem>>, vector<32x128xf32>
    %c0_78 = arith.constant 0 : index
    %c0_79 = arith.constant 0 : index
    %113 = vector.load %arg11[%c0_78, %c0_79] : memref<1x128xf32, #tpu.memory_space<vmem>>, vector<1x128xf32>
    %cst_80 = arith.constant dense<0.000000e+00> : vector<64x128xf32>
    %114 = tpu.matmul %111, %112, %cst_80 {dimension_numbers = #tpu.dot_dimension_numbers<[1], [0], [0], [1], [0, 0, 1, 1], [], []>} : vector<64x32xf32>, vector<32x128xf32>, vector<64x128xf32> -> vector<64x128xf32>
    %115 = vector.broadcast %113 : vector<1x128xf32> to vector<64x128xf32>
    %116 = arith.addf %114, %115 : vector<64x128xf32>
    %cst_81 = arith.constant 0.000000e+00 : f32
    %117 = vector.broadcast %cst_81 : f32 to vector<64x128xf32>
    %118 = arith.maximumf %116, %117 : vector<64x128xf32>
    %c0_82 = arith.constant 0 : index
    %c0_83 = arith.constant 0 : index
    %c0_84 = arith.constant 0 : index
    %119 = vector.load %arg12[%c0_82, %c0_83, %c0_84] : memref<1x64x128xf32, #tpu.memory_space<vmem>>, vector<1x64x128xf32>
    %120 = vector.shape_cast %119 : vector<1x64x128xf32> to vector<64x128xf32>
    %121 = vector.shape_cast %118 : vector<64x128xf32> to vector<1x64x128xf32>
    tpu.vector_store %arg12[%c0_82, %c0_83, %c0_84], %121 {strides = array<i32>} : memref<1x64x128xf32, #tpu.memory_space<vmem>>, vector<1x64x128xf32>,
    return
  }
  func.func @transform_0(%arg0: i32) -> (i32, i32, i32) {
    %c0_i32 = arith.constant 0 : i32
    %c0_i32_0 = arith.constant 0 : i32
    %c0_i32_1 = arith.constant 0 : i32
    return %arg0, %c0_i32, %c0_i32_0 : i32, i32, i32
  }
  func.func @transform_1(%arg0: i32) -> (i32, i32) {
    %c0_i32 = arith.constant 0 : i32
    %c0_i32_0 = arith.constant 0 : i32
    %c0_i32_1 = arith.constant 0 : i32
    return %c0_i32, %c0_i32_0 : i32, i32
  }
  func.func @transform_2(%arg0: i32) -> (i32, i32) {
    %c0_i32 = arith.constant 0 : i32
    %c0_i32_0 = arith.constant 0 : i32
    %c0_i32_1 = arith.constant 0 : i32
    return %c0_i32, %c0_i32_0 : i32, i32
  }
  func.func @transform_3(%arg0: i32) -> (i32, i32, i32) {
    %c0_i32 = arith.constant 0 : i32
    %c0_i32_0 = arith.constant 0 : i32
    %c0_i32_1 = arith.constant 0 : i32
    %c0_i32_2 = arith.constant 0 : i32
    return %c0_i32, %c0_i32_0, %c0_i32_1 : i32, i32, i32
  }
  func.func @transform_4(%arg0: i32) -> (i32, i32) {
    %c0_i32 = arith.constant 0 : i32
    %c0_i32_0 = arith.constant 0 : i32
    %c0_i32_1 = arith.constant 0 : i32
    return %c0_i32, %c0_i32_0 : i32, i32
  }
  func.func @transform_5(%arg0: i32) -> (i32, i32) {
    %c0_i32 = arith.constant 0 : i32
    %c0_i32_0 = arith.constant 0 : i32
    %c0_i32_1 = arith.constant 0 : i32
    return %c0_i32, %c0_i32_0 : i32, i32
  }
  func.func @transform_6(%arg0: i32) -> (i32, i32) {
    %c0_i32 = arith.constant 0 : i32
    %c0_i32_0 = arith.constant 0 : i32
    %c0_i32_1 = arith.constant 0 : i32
    return %c0_i32, %c0_i32_0 : i32, i32
  }
  func.func @transform_7(%arg0: i32) -> (i32, i32) {
    %c0_i32 = arith.constant 0 : i32
    %c0_i32_0 = arith.constant 0 : i32
    %c0_i32_1 = arith.constant 0 : i32
    return %c0_i32, %c0_i32_0 : i32, i32
  }
  func.func @transform_8(%arg0: i32) -> (i32, i32) {
    %c0_i32 = arith.constant 0 : i32
    %c0_i32_0 = arith.constant 0 : i32
    %c0_i32_1 = arith.constant 0 : i32
    return %c0_i32, %c0_i32_0 : i32, i32
  }
  func.func @transform_9(%arg0: i32) -> (i32, i32) {
    %c0_i32 = arith.constant 0 : i32
    %c0_i32_0 = arith.constant 0 : i32
    %c0_i32_1 = arith.constant 0 : i32
    return %c0_i32, %c0_i32_0 : i32, i32
  }
  func.func @transform_10(%arg0: i32) -> (i32, i32) {
    %c0_i32 = arith.constant 0 : i32
    %c0_i32_0 = arith.constant 0 : i32
    %c0_i32_1 = arith.constant 0 : i32
    return %c0_i32, %c0_i32_0 : i32, i32
  }
  func.func @transform_11(%arg0: i32) -> (i32, i32, i32) {
    %c0_i32 = arith.constant 0 : i32
    %c0_i32_0 = arith.constant 0 : i32
    %c0_i32_1 = arith.constant 0 : i32
    return %arg0, %c0_i32, %c0_i32_0 : i32, i32, i32
  }
}

module attributes {stable_mosaic.version = 11 : i64} {
  func.func @_stage2_kernel(%arg0: i32, %arg1: memref<1x256x32xf32, #tpu.memory_space<vmem>>, %arg2: memref<9x32x32xf32, #tpu.memory_space<vmem>>, %arg3: memref<1x32xf32, #tpu.memory_space<vmem>>, %arg4: memref<32x32xf32, #tpu.memory_space<vmem>>, %arg5: memref<1x32xf32, #tpu.memory_space<vmem>>, %arg6: memref<32x32xf32, #tpu.memory_space<vmem>>, %arg7: memref<1x32xf32, #tpu.memory_space<vmem>>, %arg8: memref<32x128xf32, #tpu.memory_space<vmem>>, %arg9: memref<1x128xf32, #tpu.memory_space<vmem>>, %arg10: memref<128x128xf32, #tpu.memory_space<vmem>>, %arg11: memref<1x128xf32, #tpu.memory_space<vmem>>, %arg12: memref<1x256x128xf32, #tpu.memory_space<vmem>>, %arg13: memref<312x32xf32, #tpu.memory_space<vmem>>) attributes {dimension_semantics = [#tpu.dimension_semantics<parallel>], iteration_bounds = array<i64: 6>, scalar_prefetch = 0 : i64, scratch_operands = 1 : i64, tpu.core_type = #tpu.core_type<tc>, window_params = [{transform_indices = @transform_0, window_bounds = array<i64: 1, 256, 32>}, {pipeline_mode = #tpu.pipeline_mode<synchronous>, transform_indices = @transform_1, window_bounds = array<i64: 9, 32, 32>}, {pipeline_mode = #tpu.pipeline_mode<synchronous>, transform_indices = @transform_2, window_bounds = array<i64: 1, 32>}, {pipeline_mode = #tpu.pipeline_mode<synchronous>, transform_indices = @transform_3, window_bounds = array<i64: 32, 32>}, {pipeline_mode = #tpu.pipeline_mode<synchronous>, transform_indices = @transform_4, window_bounds = array<i64: 1, 32>}, {pipeline_mode = #tpu.pipeline_mode<synchronous>, transform_indices = @transform_5, window_bounds = array<i64: 32, 32>}, {pipeline_mode = #tpu.pipeline_mode<synchronous>, transform_indices = @transform_6, window_bounds = array<i64: 1, 32>}, {pipeline_mode = #tpu.pipeline_mode<synchronous>, transform_indices = @transform_7, window_bounds = array<i64: 32, 128>}, {pipeline_mode = #tpu.pipeline_mode<synchronous>, transform_indices = @transform_8, window_bounds = array<i64: 1, 128>}, {pipeline_mode = #tpu.pipeline_mode<synchronous>, transform_indices = @transform_9, window_bounds = array<i64: 128, 128>}, {pipeline_mode = #tpu.pipeline_mode<synchronous>, transform_indices = @transform_10, window_bounds = array<i64: 1, 128>}, {transform_indices = @transform_11, window_bounds = array<i64: 1, 256, 128>}]} {
    %c0 = arith.constant 0 : index
    %c0_0 = arith.constant 0 : index
    %c0_1 = arith.constant 0 : index
    %0 = vector.load %arg1[%c0, %c0_0, %c0_1] : memref<1x256x32xf32, #tpu.memory_space<vmem>>, vector<1x256x32xf32>
    %1 = vector.shape_cast %0 : vector<1x256x32xf32> to vector<256x32xf32>
    %cst = arith.constant 0.000000e+00 : f32
    %2 = vector.broadcast %cst : f32 to vector<312x32xf32>
    %c0_2 = arith.constant 0 : index
    %c0_3 = arith.constant 0 : index
    %3 = vector.load %arg13[%c0_2, %c0_3] : memref<312x32xf32, #tpu.memory_space<vmem>>, vector<312x32xf32>
    tpu.vector_store %arg13[%c0_2, %c0_3], %2 {strides = array<i32>} : memref<312x32xf32, #tpu.memory_space<vmem>>, vector<312x32xf32>,
    %c32 = arith.constant 32 : index
    %c0_4 = arith.constant 0 : index
    %4 = vector.load %arg13[%c32, %c0_4] : memref<312x32xf32, #tpu.memory_space<vmem>>, vector<256x32xf32>
    tpu.vector_store %arg13[%c32, %c0_4], %1 {strides = array<i32>} : memref<312x32xf32, #tpu.memory_space<vmem>>, vector<256x32xf32>,
    %5 = tpu.iota {dimensions = array<i32: 0>} : vector<256x1xi32>
    %c16_i32 = arith.constant 16 : i32
    %c0_i32 = arith.constant 0 : i32
    %6 = arith.cmpi eq, %c16_i32, %c0_i32 : i32
    %c1_i32 = arith.constant 1 : i32
    %7 = arith.select %6, %c1_i32, %c16_i32 : i32
    %8 = vector.broadcast %7 : i32 to vector<256x1xi32>
    %9 = arith.remsi %5, %8 : vector<256x1xi32>
    %c0_i32_5 = arith.constant 0 : i32
    %10 = vector.broadcast %c0_i32_5 : i32 to vector<256x1xi32>
    %11 = arith.cmpi ne, %9, %10 : vector<256x1xi32>
    %c0_i32_6 = arith.constant 0 : i32
    %12 = vector.broadcast %c0_i32_6 : i32 to vector<256x1xi32>
    %13 = arith.cmpi slt, %9, %12 : vector<256x1xi32>
    %c0_i32_7 = arith.constant 0 : i32
    %14 = arith.cmpi slt, %7, %c0_i32_7 : i32
    %15 = vector.broadcast %14 : i1 to vector<256x1xi1>
    %16 = vector.broadcast %15 : vector<256x1xi1> to vector<256x1xi1>
    %17 = arith.xori %13, %16 : vector<256x1xi1>
    %18 = arith.andi %17, %11 : vector<256x1xi1>
    %19 = vector.broadcast %7 : i32 to vector<256x1xi32>
    %20 = arith.addi %9, %19 : vector<256x1xi32>
    %21 = arith.select %18, %20, %9 : vector<256x1xi1>, vector<256x1xi32>
    %cst_8 = arith.constant 0.000000e+00 : f32
    %22 = vector.broadcast %cst_8 : f32 to vector<256x32xf32>
    %cst_9 = arith.constant 0.000000e+00 : f32
    %23 = vector.broadcast %cst_9 : f32 to vector<256x32xf32>
    %c15 = arith.constant 15 : index
    %c0_10 = arith.constant 0 : index
    %24 = vector.load %arg13[%c15, %c0_10] : memref<312x32xf32, #tpu.memory_space<vmem>>, vector<256x32xf32>
    %c0_11 = arith.constant 0 : index
    %c0_12 = arith.constant 0 : index
    %c0_13 = arith.constant 0 : index
    %25 = vector.load %arg2[%c0_11, %c0_12, %c0_13] : memref<9x32x32xf32, #tpu.memory_space<vmem>>, vector<1x32x32xf32>
    %26 = vector.shape_cast %25 : vector<1x32x32xf32> to vector<32x32xf32>
    %cst_14 = arith.constant dense<0.000000e+00> : vector<256x32xf32>
    %27 = tpu.matmul %24, %26, %cst_14 {dimension_numbers = #tpu.dot_dimension_numbers<[1], [0], [0], [1], [0, 0, 1, 1], [], []>} : vector<256x32xf32>, vector<32x32xf32>, vector<256x32xf32> -> vector<256x32xf32>
    %28 = arith.addf %23, %27 : vector<256x32xf32>
    %c31 = arith.constant 31 : index
    %c0_15 = arith.constant 0 : index
    %29 = vector.load %arg13[%c31, %c0_15] : memref<312x32xf32, #tpu.memory_space<vmem>>, vector<256x32xf32>
    %c3 = arith.constant 3 : index
    %c0_16 = arith.constant 0 : index
    %c0_17 = arith.constant 0 : index
    %30 = vector.load %arg2[%c3, %c0_16, %c0_17] : memref<9x32x32xf32, #tpu.memory_space<vmem>>, vector<1x32x32xf32>
    %31 = vector.shape_cast %30 : vector<1x32x32xf32> to vector<32x32xf32>
    %cst_18 = arith.constant dense<0.000000e+00> : vector<256x32xf32>
    %32 = tpu.matmul %29, %31, %cst_18 {dimension_numbers = #tpu.dot_dimension_numbers<[1], [0], [0], [1], [0, 0, 1, 1], [], []>} : vector<256x32xf32>, vector<32x32xf32>, vector<256x32xf32> -> vector<256x32xf32>
    %33 = arith.addf %28, %32 : vector<256x32xf32>
    %c47 = arith.constant 47 : index
    %c0_19 = arith.constant 0 : index
    %34 = vector.load %arg13[%c47, %c0_19] : memref<312x32xf32, #tpu.memory_space<vmem>>, vector<256x32xf32>
    %c6 = arith.constant 6 : index
    %c0_20 = arith.constant 0 : index
    %c0_21 = arith.constant 0 : index
    %35 = vector.load %arg2[%c6, %c0_20, %c0_21] : memref<9x32x32xf32, #tpu.memory_space<vmem>>, vector<1x32x32xf32>
    %36 = vector.shape_cast %35 : vector<1x32x32xf32> to vector<32x32xf32>
    %cst_22 = arith.constant dense<0.000000e+00> : vector<256x32xf32>
    %37 = tpu.matmul %34, %36, %cst_22 {dimension_numbers = #tpu.dot_dimension_numbers<[1], [0], [0], [1], [0, 0, 1, 1], [], []>} : vector<256x32xf32>, vector<32x32xf32>, vector<256x32xf32> -> vector<256x32xf32>
    %38 = arith.addf %33, %37 : vector<256x32xf32>
    %c1_i32_23 = arith.constant 1 : i32
    %39 = vector.broadcast %c1_i32_23 : i32 to vector<256x1xi32>
    %40 = arith.cmpi sge, %21, %39 : vector<256x1xi32>
    %cst_24 = arith.constant 0.000000e+00 : f32
    %41 = vector.shape_cast %40 : vector<256x1xi1> to vector<256x1xi1>
    %42 = vector.broadcast %41 : vector<256x1xi1> to vector<256x32xi1>
    %43 = vector.broadcast %cst_24 : f32 to vector<256x32xf32>
    %44 = arith.select %42, %38, %43 : vector<256x32xi1>, vector<256x32xf32>
    %45 = arith.addf %22, %44 : vector<256x32xf32>
    %cst_25 = arith.constant 0.000000e+00 : f32
    %46 = vector.broadcast %cst_25 : f32 to vector<256x32xf32>
    %c16 = arith.constant 16 : index
    %c0_26 = arith.constant 0 : index
    %47 = vector.load %arg13[%c16, %c0_26] : memref<312x32xf32, #tpu.memory_space<vmem>>, vector<256x32xf32>
    %c1 = arith.constant 1 : index
    %c0_27 = arith.constant 0 : index
    %c0_28 = arith.constant 0 : index
    %48 = vector.load %arg2[%c1, %c0_27, %c0_28] : memref<9x32x32xf32, #tpu.memory_space<vmem>>, vector<1x32x32xf32>
    %49 = vector.shape_cast %48 : vector<1x32x32xf32> to vector<32x32xf32>
    %cst_29 = arith.constant dense<0.000000e+00> : vector<256x32xf32>
    %50 = tpu.matmul %47, %49, %cst_29 {dimension_numbers = #tpu.dot_dimension_numbers<[1], [0], [0], [1], [0, 0, 1, 1], [], []>} : vector<256x32xf32>, vector<32x32xf32>, vector<256x32xf32> -> vector<256x32xf32>
    %51 = arith.addf %46, %50 : vector<256x32xf32>
    %c32_30 = arith.constant 32 : index
    %c0_31 = arith.constant 0 : index
    %52 = vector.load %arg13[%c32_30, %c0_31] : memref<312x32xf32, #tpu.memory_space<vmem>>, vector<256x32xf32>
    %c4 = arith.constant 4 : index
    %c0_32 = arith.constant 0 : index
    %c0_33 = arith.constant 0 : index
    %53 = vector.load %arg2[%c4, %c0_32, %c0_33] : memref<9x32x32xf32, #tpu.memory_space<vmem>>, vector<1x32x32xf32>
    %54 = vector.shape_cast %53 : vector<1x32x32xf32> to vector<32x32xf32>
    %cst_34 = arith.constant dense<0.000000e+00> : vector<256x32xf32>
    %55 = tpu.matmul %52, %54, %cst_34 {dimension_numbers = #tpu.dot_dimension_numbers<[1], [0], [0], [1], [0, 0, 1, 1], [], []>} : vector<256x32xf32>, vector<32x32xf32>, vector<256x32xf32> -> vector<256x32xf32>
    %56 = arith.addf %51, %55 : vector<256x32xf32>
    %c48 = arith.constant 48 : index
    %c0_35 = arith.constant 0 : index
    %57 = vector.load %arg13[%c48, %c0_35] : memref<312x32xf32, #tpu.memory_space<vmem>>, vector<256x32xf32>
    %c7 = arith.constant 7 : index
    %c0_36 = arith.constant 0 : index
    %c0_37 = arith.constant 0 : index
    %58 = vector.load %arg2[%c7, %c0_36, %c0_37] : memref<9x32x32xf32, #tpu.memory_space<vmem>>, vector<1x32x32xf32>
    %59 = vector.shape_cast %58 : vector<1x32x32xf32> to vector<32x32xf32>
    %cst_38 = arith.constant dense<0.000000e+00> : vector<256x32xf32>
    %60 = tpu.matmul %57, %59, %cst_38 {dimension_numbers = #tpu.dot_dimension_numbers<[1], [0], [0], [1], [0, 0, 1, 1], [], []>} : vector<256x32xf32>, vector<32x32xf32>, vector<256x32xf32> -> vector<256x32xf32>
    %61 = arith.addf %56, %60 : vector<256x32xf32>
    %62 = arith.addf %45, %61 : vector<256x32xf32>
    %cst_39 = arith.constant 0.000000e+00 : f32
    %63 = vector.broadcast %cst_39 : f32 to vector<256x32xf32>
    %c17 = arith.constant 17 : index
    %c0_40 = arith.constant 0 : index
    %64 = vector.load %arg13[%c17, %c0_40] : memref<312x32xf32, #tpu.memory_space<vmem>>, vector<256x32xf32>
    %c2 = arith.constant 2 : index
    %c0_41 = arith.constant 0 : index
    %c0_42 = arith.constant 0 : index
    %65 = vector.load %arg2[%c2, %c0_41, %c0_42] : memref<9x32x32xf32, #tpu.memory_space<vmem>>, vector<1x32x32xf32>
    %66 = vector.shape_cast %65 : vector<1x32x32xf32> to vector<32x32xf32>
    %cst_43 = arith.constant dense<0.000000e+00> : vector<256x32xf32>
    %67 = tpu.matmul %64, %66, %cst_43 {dimension_numbers = #tpu.dot_dimension_numbers<[1], [0], [0], [1], [0, 0, 1, 1], [], []>} : vector<256x32xf32>, vector<32x32xf32>, vector<256x32xf32> -> vector<256x32xf32>
    %68 = arith.addf %63, %67 : vector<256x32xf32>
    %c33 = arith.constant 33 : index
    %c0_44 = arith.constant 0 : index
    %69 = vector.load %arg13[%c33, %c0_44] : memref<312x32xf32, #tpu.memory_space<vmem>>, vector<256x32xf32>
    %c5 = arith.constant 5 : index
    %c0_45 = arith.constant 0 : index
    %c0_46 = arith.constant 0 : index
    %70 = vector.load %arg2[%c5, %c0_45, %c0_46] : memref<9x32x32xf32, #tpu.memory_space<vmem>>, vector<1x32x32xf32>
    %71 = vector.shape_cast %70 : vector<1x32x32xf32> to vector<32x32xf32>
    %cst_47 = arith.constant dense<0.000000e+00> : vector<256x32xf32>
    %72 = tpu.matmul %69, %71, %cst_47 {dimension_numbers = #tpu.dot_dimension_numbers<[1], [0], [0], [1], [0, 0, 1, 1], [], []>} : vector<256x32xf32>, vector<32x32xf32>, vector<256x32xf32> -> vector<256x32xf32>
    %73 = arith.addf %68, %72 : vector<256x32xf32>
    %c49 = arith.constant 49 : index
    %c0_48 = arith.constant 0 : index
    %74 = vector.load %arg13[%c49, %c0_48] : memref<312x32xf32, #tpu.memory_space<vmem>>, vector<256x32xf32>
    %c8 = arith.constant 8 : index
    %c0_49 = arith.constant 0 : index
    %c0_50 = arith.constant 0 : index
    %75 = vector.load %arg2[%c8, %c0_49, %c0_50] : memref<9x32x32xf32, #tpu.memory_space<vmem>>, vector<1x32x32xf32>
    %76 = vector.shape_cast %75 : vector<1x32x32xf32> to vector<32x32xf32>
    %cst_51 = arith.constant dense<0.000000e+00> : vector<256x32xf32>
    %77 = tpu.matmul %74, %76, %cst_51 {dimension_numbers = #tpu.dot_dimension_numbers<[1], [0], [0], [1], [0, 0, 1, 1], [], []>} : vector<256x32xf32>, vector<32x32xf32>, vector<256x32xf32> -> vector<256x32xf32>
    %78 = arith.addf %73, %77 : vector<256x32xf32>
    %c14_i32 = arith.constant 14 : i32
    %79 = vector.broadcast %c14_i32 : i32 to vector<256x1xi32>
    %80 = arith.cmpi sle, %21, %79 : vector<256x1xi32>
    %cst_52 = arith.constant 0.000000e+00 : f32
    %81 = vector.shape_cast %80 : vector<256x1xi1> to vector<256x1xi1>
    %82 = vector.broadcast %81 : vector<256x1xi1> to vector<256x32xi1>
    %83 = vector.broadcast %cst_52 : f32 to vector<256x32xf32>
    %84 = arith.select %82, %78, %83 : vector<256x32xi1>, vector<256x32xf32>
    %85 = arith.addf %62, %84 : vector<256x32xf32>
    %c0_53 = arith.constant 0 : index
    %c0_54 = arith.constant 0 : index
    %86 = vector.load %arg3[%c0_53, %c0_54] : memref<1x32xf32, #tpu.memory_space<vmem>>, vector<1x32xf32>
    %87 = vector.broadcast %86 : vector<1x32xf32> to vector<256x32xf32>
    %88 = arith.addf %85, %87 : vector<256x32xf32>
    %cst_55 = arith.constant 0.000000e+00 : f32
    %89 = vector.broadcast %cst_55 : f32 to vector<256x32xf32>
    %90 = arith.maximumf %88, %89 : vector<256x32xf32>
    %c0_56 = arith.constant 0 : index
    %c0_57 = arith.constant 0 : index
    %91 = vector.load %arg4[%c0_56, %c0_57] : memref<32x32xf32, #tpu.memory_space<vmem>>, vector<32x32xf32>
    %c0_58 = arith.constant 0 : index
    %c0_59 = arith.constant 0 : index
    %92 = vector.load %arg5[%c0_58, %c0_59] : memref<1x32xf32, #tpu.memory_space<vmem>>, vector<1x32xf32>
    %cst_60 = arith.constant dense<0.000000e+00> : vector<256x32xf32>
    %93 = tpu.matmul %90, %91, %cst_60 {dimension_numbers = #tpu.dot_dimension_numbers<[1], [0], [0], [1], [0, 0, 1, 1], [], []>} : vector<256x32xf32>, vector<32x32xf32>, vector<256x32xf32> -> vector<256x32xf32>
    %94 = vector.broadcast %92 : vector<1x32xf32> to vector<256x32xf32>
    %95 = arith.addf %93, %94 : vector<256x32xf32>
    %cst_61 = arith.constant 0.000000e+00 : f32
    %96 = vector.broadcast %cst_61 : f32 to vector<256x32xf32>
    %97 = arith.maximumf %95, %96 : vector<256x32xf32>
    %c0_62 = arith.constant 0 : index
    %c0_63 = arith.constant 0 : index
    %98 = vector.load %arg6[%c0_62, %c0_63] : memref<32x32xf32, #tpu.memory_space<vmem>>, vector<32x32xf32>
    %c0_64 = arith.constant 0 : index
    %c0_65 = arith.constant 0 : index
    %99 = vector.load %arg7[%c0_64, %c0_65] : memref<1x32xf32, #tpu.memory_space<vmem>>, vector<1x32xf32>
    %cst_66 = arith.constant dense<0.000000e+00> : vector<256x32xf32>
    %100 = tpu.matmul %97, %98, %cst_66 {dimension_numbers = #tpu.dot_dimension_numbers<[1], [0], [0], [1], [0, 0, 1, 1], [], []>} : vector<256x32xf32>, vector<32x32xf32>, vector<256x32xf32> -> vector<256x32xf32>
    %101 = vector.broadcast %99 : vector<1x32xf32> to vector<256x32xf32>
    %102 = arith.addf %100, %101 : vector<256x32xf32>
    %cst_67 = arith.constant 0.000000e+00 : f32
    %103 = vector.broadcast %cst_67 : f32 to vector<256x32xf32>
    %104 = arith.maximumf %102, %103 : vector<256x32xf32>
    %c0_68 = arith.constant 0 : index
    %c0_69 = arith.constant 0 : index
    %105 = vector.load %arg8[%c0_68, %c0_69] : memref<32x128xf32, #tpu.memory_space<vmem>>, vector<32x128xf32>
    %c0_70 = arith.constant 0 : index
    %c0_71 = arith.constant 0 : index
    %106 = vector.load %arg9[%c0_70, %c0_71] : memref<1x128xf32, #tpu.memory_space<vmem>>, vector<1x128xf32>
    %cst_72 = arith.constant dense<0.000000e+00> : vector<256x128xf32>
    %107 = tpu.matmul %104, %105, %cst_72 {dimension_numbers = #tpu.dot_dimension_numbers<[1], [0], [0], [1], [0, 0, 1, 1], [], []>} : vector<256x32xf32>, vector<32x128xf32>, vector<256x128xf32> -> vector<256x128xf32>
    %108 = vector.broadcast %106 : vector<1x128xf32> to vector<256x128xf32>
    %109 = arith.addf %107, %108 : vector<256x128xf32>
    %cst_73 = arith.constant 0.000000e+00 : f32
    %110 = vector.broadcast %cst_73 : f32 to vector<256x128xf32>
    %111 = arith.maximumf %109, %110 : vector<256x128xf32>
    %c0_74 = arith.constant 0 : index
    %c0_75 = arith.constant 0 : index
    %112 = vector.load %arg10[%c0_74, %c0_75] : memref<128x128xf32, #tpu.memory_space<vmem>>, vector<128x128xf32>
    %cst_76 = arith.constant dense<0.000000e+00> : vector<256x128xf32>
    %113 = tpu.matmul %111, %112, %cst_76 {dimension_numbers = #tpu.dot_dimension_numbers<[1], [0], [0], [1], [0, 0, 1, 1], [], []>} : vector<256x128xf32>, vector<128x128xf32>, vector<256x128xf32> -> vector<256x128xf32>
    %c0_77 = arith.constant 0 : index
    %c0_78 = arith.constant 0 : index
    %114 = vector.load %arg11[%c0_77, %c0_78] : memref<1x128xf32, #tpu.memory_space<vmem>>, vector<1x128xf32>
    %115 = vector.broadcast %114 : vector<1x128xf32> to vector<256x128xf32>
    %116 = arith.addf %113, %115 : vector<256x128xf32>
    %c0_79 = arith.constant 0 : index
    %c0_80 = arith.constant 0 : index
    %c0_81 = arith.constant 0 : index
    %117 = vector.load %arg12[%c0_79, %c0_80, %c0_81] : memref<1x256x128xf32, #tpu.memory_space<vmem>>, vector<1x256x128xf32>
    %118 = vector.shape_cast %117 : vector<1x256x128xf32> to vector<256x128xf32>
    %119 = vector.shape_cast %116 : vector<256x128xf32> to vector<1x256x128xf32>
    tpu.vector_store %arg12[%c0_79, %c0_80, %c0_81], %119 {strides = array<i32>} : memref<1x256x128xf32, #tpu.memory_space<vmem>>, vector<1x256x128xf32>,
    return
  }
  func.func @transform_0(%arg0: i32) -> (i32, i32, i32) {
    %c0_i32 = arith.constant 0 : i32
    %c0_i32_0 = arith.constant 0 : i32
    %c0_i32_1 = arith.constant 0 : i32
    return %arg0, %c0_i32, %c0_i32_0 : i32, i32, i32
  }
  func.func @transform_1(%arg0: i32) -> (i32, i32, i32) {
    %c0_i32 = arith.constant 0 : i32
    %c0_i32_0 = arith.constant 0 : i32
    %c0_i32_1 = arith.constant 0 : i32
    %c0_i32_2 = arith.constant 0 : i32
    return %c0_i32, %c0_i32_0, %c0_i32_1 : i32, i32, i32
  }
  func.func @transform_2(%arg0: i32) -> (i32, i32) {
    %c0_i32 = arith.constant 0 : i32
    %c0_i32_0 = arith.constant 0 : i32
    %c0_i32_1 = arith.constant 0 : i32
    return %c0_i32, %c0_i32_0 : i32, i32
  }
  func.func @transform_3(%arg0: i32) -> (i32, i32) {
    %c0_i32 = arith.constant 0 : i32
    %c0_i32_0 = arith.constant 0 : i32
    %c0_i32_1 = arith.constant 0 : i32
    return %c0_i32, %c0_i32_0 : i32, i32
  }
  func.func @transform_4(%arg0: i32) -> (i32, i32) {
    %c0_i32 = arith.constant 0 : i32
    %c0_i32_0 = arith.constant 0 : i32
    %c0_i32_1 = arith.constant 0 : i32
    return %c0_i32, %c0_i32_0 : i32, i32
  }
  func.func @transform_5(%arg0: i32) -> (i32, i32) {
    %c0_i32 = arith.constant 0 : i32
    %c0_i32_0 = arith.constant 0 : i32
    %c0_i32_1 = arith.constant 0 : i32
    return %c0_i32, %c0_i32_0 : i32, i32
  }
  func.func @transform_6(%arg0: i32) -> (i32, i32) {
    %c0_i32 = arith.constant 0 : i32
    %c0_i32_0 = arith.constant 0 : i32
    %c0_i32_1 = arith.constant 0 : i32
    return %c0_i32, %c0_i32_0 : i32, i32
  }
  func.func @transform_7(%arg0: i32) -> (i32, i32) {
    %c0_i32 = arith.constant 0 : i32
    %c0_i32_0 = arith.constant 0 : i32
    %c0_i32_1 = arith.constant 0 : i32
    return %c0_i32, %c0_i32_0 : i32, i32
  }
  func.func @transform_8(%arg0: i32) -> (i32, i32) {
    %c0_i32 = arith.constant 0 : i32
    %c0_i32_0 = arith.constant 0 : i32
    %c0_i32_1 = arith.constant 0 : i32
    return %c0_i32, %c0_i32_0 : i32, i32
  }
  func.func @transform_9(%arg0: i32) -> (i32, i32) {
    %c0_i32 = arith.constant 0 : i32
    %c0_i32_0 = arith.constant 0 : i32
    %c0_i32_1 = arith.constant 0 : i32
    return %c0_i32, %c0_i32_0 : i32, i32
  }
  func.func @transform_10(%arg0: i32) -> (i32, i32) {
    %c0_i32 = arith.constant 0 : i32
    %c0_i32_0 = arith.constant 0 : i32
    %c0_i32_1 = arith.constant 0 : i32
    return %c0_i32, %c0_i32_0 : i32, i32
  }
  func.func @transform_11(%arg0: i32) -> (i32, i32, i32) {
    %c0_i32 = arith.constant 0 : i32
    %c0_i32_0 = arith.constant 0 : i32
    %c0_i32_1 = arith.constant 0 : i32
    return %arg0, %c0_i32, %c0_i32_0 : i32, i32, i32
  }
}

</mosaic_0001>

<bundles_post_ra>
// kernel: tile.8
= control target key start
LH: loop header
LB: loop body
LE: loop exit
PB: predicated region body
PF: predicated region fallthrough
CT: control target
= control target key end

     0   :  { %s22_s0 = inlined_call_operand.vmem [shape: f32[32], index: 0, kind: input, shape index: {}]   ;;  %s23_s1 = inlined_call_operand.vmem [shape: f32[4,32], index: 1, kind: output, shape index: {}]  }
   0x1   :  { %v4_v0 = vld [vmem:[%s22_s0] ss:$0 sm:$0xff] }
   0x2   :  { %5 = vst [vmem:[%s23_s1] sm:$0xf] %v4_v0 }

// kernel: tile.9
= control target key start
LH: loop header
LB: loop body
LE: loop exit
PB: predicated region body
PF: predicated region fallthrough
CT: control target
= control target key end

     0   :  { %vm7_vm0 = vcmask 261120   ;;  %s37_s8 = smov 32   ;;  %s38_s9 = smov 64   ;;  %vm13_vm1 = vcmask 1048320   ;;  %vm19_vm2 = vcmask 785920   ;;  %vm25_vm3 = vcmask 523520   ;;  %s55_s0 = inlined_call_operand.vmem [shape: f32[4,32], index: 0, kind: input, shape index: {}]   ;;  %s56_s1 = inlined_call_operand.vmem [shape: f32[1,128], index: 1, kind: output, shape index: {}]  }
   0x1   :  { %v4_v0 = vld [vmem:[%s55_s0] sm:$0xf]  ;;  %s36_s0 = smov 96  }
   0x2   :  { %5 = vst [vmem:[#allocation1] sm:$0xf] %v4_v0 }
   0x9   :  { %v10_v1 = vld [vmem:[#allocation1 + $0x3] sm:$0x1]   ;;  %v22_v2 = vld [vmem:[#allocation1 + $0x1] sm:$0x1]   ;;  %v6_v3 = vld [vmem:[#allocation1] sm:$0x1]  }
   0xa   :  { %11 = vrot.lane.b32.xlu0 %v10_v1, %s36_s0  ;;  %23 = vrot.lane.b32.xlu1 %v22_v2, %s37_s8  ;;  %v16_v4 = vld [vmem:[#allocation1 + $0x2] sm:$0x1]   ;;  %8 = vst.msk [vmem:[#allocation0] sm:$0x1] %vm7_vm0, %v6_v3  }
   0xe   :  { %17 = vrot.lane.b32.xlu0 %v16_v4, %s38_s9 }
  0x7c   :  { %v12_v5 = vpop.permute.xlu0 %11   ;;  %v24_v6 = vpop.permute.xlu1 %23  }
  0x7d   :  { %14 = vst.msk [vmem:[#allocation0] sm:$0x1] %vm13_vm1, %v12_v5  }
  0x80   :  { %v18_v7 = vpop.permute.xlu0 %17  }
  0x81   :  { %20 = vst.msk [vmem:[#allocation0] sm:$0x1] %vm19_vm2, %v18_v7  }
  0x82   :  { %26 = vst.msk [vmem:[#allocation0] sm:$0x1] %vm25_vm3, %v24_v6  }
  0x89   :  { %v30_v8 = vld [vmem:[#allocation0] sm:$0x1] }
  0x8a   :  { %32 = vst [vmem:[%s56_s1] sm:$0x1] %v30_v8 }

// kernel: decoder_forward.2
= control target key start
LH: loop header
LB: loop body
LE: loop exit
PB: predicated region body
PF: predicated region fallthrough
CT: control target
= control target key end

     0   :  { %s4626_s0 = inlined_call_operand.hbm [shape: f32[6,64,16], index: 0, kind: input, shape index: {}]   ;;  %s4627_s1 = inlined_call_operand.hbm [shape: f32[16,32], index: 1, kind: input, shape index: {}]   ;;  %s4628_s2 = inlined_call_operand.hbm [shape: f32[1,32], index: 2, kind: input, shape index: {}]   ;;  %s4629_s3 = inlined_call_operand.hbm [shape: f32[9,32,32], index: 3, kind: input, shape index: {}]   ;;  %s4630_s4 = inlined_call_operand.hbm [shape: f32[1,32], index: 4, kind: input, shape index: {}]   ;;  %s4631_s5 = inlined_call_operand.hbm [shape: f32[32,32], index: 5, kind: input, shape index: {}]   ;;  %s4632_s6 = inlined_call_operand.hbm [shape: f32[1,32], index: 6, kind: input, shape index: {}]   ;;  %s4633_s7 = inlined_call_operand.hbm [shape: f32[32,32], index: 7, kind: input, shape index: {}]   ;;  %s4634_s8 = inlined_call_operand.hbm [shape: f32[1,32], index: 8, kind: input, shape index: {}]   ;;  %s4635_s9 = inlined_call_operand.hbm [shape: f32[32,128], index: 9, kind: input, shape index: {}]   ;;  %s4636_s10 = inlined_call_operand.hbm [shape: f32[1,128], index: 10, kind: input, shape index: {}]   ;;  %s4637_s11 = inlined_call_operand.vmem [shape: f32[6,64,128], index: 11, kind: output, shape index: {}]  }
   0x1   :  { %4642 = sst [smem:[#allocation27_spill]] %s4626_s0 }
   0x2   :  { %4643 = sst [smem:[#allocation28_spill]] %s4627_s1 }
   0x3   :  { %4644 = sst [smem:[#allocation29_spill]] %s4637_s11 }
   0x4   :  { %16 = vsyncpa [#allocation4], 0 }
   0x5   :  { %18 = vsyncpa [#allocation4 + $0x1], 0 }
   0x6   :  { %19 = vsyncpa [#allocation6], 0 }
   0x7   :  { %20 = vsyncpa [#allocation9], 0 }
   0x8   :  { %21 = vsyncpa [#allocation12], 0 }
   0x9   :  { %22 = vsyncpa [#allocation15], 0 }
   0xa   :  { %23 = vsyncpa [#allocation18], 0  ;;  %s4051_s17 = smov 0   ;;  %s4053_s18 = smov 0  }
   0xb   :  { %s4055_s19 = smov 0   ;;  %s4057_s20 = smov 0  }
   0xc LB: > { %s3977_s21 = smov [#allocation5]   ;;  %s4072_s23 = sadd.s32 4294967295, %s3975_s20   ;;  %s3975_s20 = sphi %s4057_s20, %s4670_s20   ;;  %s3971_s19 = sphi %s4055_s19, %s4669_s19   ;;  %s3967_s18 = sphi %s4053_s18, %s4668_s18   ;;  %s3963_s17 = sphi %s4051_s17, %s4667_s17  }
   0xd   : > { %s308_s22 = sshll.u32 %s3977_s21, 4  ;;  %p2766_p0 = scmp.ge.s32.totalorder %s3975_s20, 1  ;;  %s4077_s22 = int_to_ptr.vmem [resolvable:$true] %s308_s22 }
   0xe   : > { %p4640_p1 = scmp.eq.s32.totalorder %s4072_s23, 0  ;;  %p296_p2 = scmp.lt.s32.totalorder %s3975_s20, 7 }
   0xf   : > { %s3978_s25 = smov [#allocation8]   ;;  %s3979_s28 = smov [#allocation11]  }
  0x10   : > { %p4079_p3 = pnand %p2766_p0, %p296_p2  ;;  %s332_s26 = sshll.u32 %s3978_s25, 4  ;;  %s4091_s26 = int_to_ptr.vmem [resolvable:$true] %s332_s26 }
  0x11   : > { %s356_s29 = sshll.u32 %s3979_s28, 4  ;;  %s4648_s1 = sld [smem:[#allocation28_spill]]  ;;  %s4093_s29 = int_to_ptr.vmem [resolvable:$true] %s356_s29 }
  0x12   : > { %s4645_s24 = scalar_select %p4079_p3, 1, 0 }
  0x13   : > { %p3510_p4 = pneg %p4079_p3 }
  0x14   : > { %4646 = sst [smem:[#allocation26_spill]] %s4645_s24 }
  0x15   : > { %p4087_p5 = pnand %p3510_p4, %p4640_p1 }
  0x17   : > { %s3611_s13 = scalar_lea.hbm %s4648_s1, 256  ;;  %p4103_p7 = pneg %p4087_p5 }
  0x18   : > { %p3612_p6 = scmp.ne.s32.totalorder %s4648_s1, %s3611_s13  ;;  %p3618_p10 = scmp.lt.u32.totalorder %s3611_s13, %s4648_s1 }
  0x1a   : > { %p3614_p8 = pnand %p4103_p7, %p3612_p6 }
  0x1c   : > { %p3615_p9 = pneg %p3614_p8 }
  0x1e   : > { %p3620_p11 = pnand %p3618_p10, %p3615_p9 }
  0x20   : > { %3623 = shalt.err (!%p3620_p11)
}
  0x21   : > { %s3624_s28 = scalar_lea.vmem %s4077_s22, 256  ;;  %p3632_p2 = scmp.lt.s32.totalorder %s4077_s22, %s4077_s22 }
  0x22   : > { %p3625_p12 = scmp.ne.s32.totalorder %s4077_s22, %s3624_s28  ;;  %p3633_p4 = scmp.lt.s32.totalorder %s3624_s28, %s3624_s28 }
  0x24   : > { %p3627_p13 = pnand %p3625_p12, %p4103_p7  ;;  %p3634_p6 = por %p3633_p4, %p3632_p2 }
  0x26   : > { %p3628_p0 = pneg %p3627_p13 }
  0x28   : > { %p3635_p8 = pnand %p3634_p6, %p3628_p0 }
  0x2a   : > { %3638 = shalt.err (!%p3635_p8)
}
  0x2b   : > { %s3980_s30 = smov 128   ;;  %s3981_s12 = smov 8  }
  0x2c   : > { %3513 = dma.hbm_to_vmem [thread:$0]  (!%p4087_p5), %s4648_s1, 256, %s4077_s22, [#allocation6], %s3980_s30, %s3980_s30, %s3981_s12  }
  0x2d   : > { %s3639_s25 = scalar_lea.hbm %s4629_s3, 4608 }
  0x2e   : > { %p3640_p9 = scmp.ne.s32.totalorder %s4629_s3, %s3639_s25  ;;  %p3646_p12 = scmp.lt.u32.totalorder %s3639_s25, %s4629_s3 }
  0x30   : > { %p3642_p10 = pnand %p3640_p9, %p4103_p7 }
  0x32   : > { %p3643_p11 = pneg %p3642_p10 }
  0x34   : > { %p3648_p13 = pnand %p3646_p12, %p3643_p11 }
  0x36   : > { %3651 = shalt.err (!%p3648_p13)
}
  0x37   : > { %s3652_s22 = scalar_lea.vmem %s4091_s26, 4608  ;;  %p3660_p6 = scmp.lt.s32.totalorder %s4091_s26, %s4091_s26 }
  0x38   : > { %p3653_p0 = scmp.ne.s32.totalorder %s4091_s26, %s3652_s22  ;;  %p3661_p8 = scmp.lt.s32.totalorder %s3652_s22, %s3652_s22 }
  0x3a   : > { %p3655_p2 = pnand %p3653_p0, %p4103_p7  ;;  %p3662_p9 = por %p3661_p8, %p3660_p6 }
  0x3c   : > { %p3656_p4 = pneg %p3655_p2 }
  0x3e   : > { %p3663_p10 = pnand %p3662_p9, %p3656_p4 }
  0x40   : > { %3666 = shalt.err (!%p3663_p10)
}
  0x41   : > { %3519 = dma.hbm_to_vmem [thread:$0]  (!%p4087_p5), %s4629_s3, 4608, %s4091_s26, [#allocation9], %s3980_s30, %s3980_s30, %s3981_s12  }
  0x42   : > { %s3667_s14 = scalar_lea.hbm %s4631_s5, 512 }
  0x43   : > { %p3668_p11 = scmp.ne.s32.totalorder %s4631_s5, %s3667_s14  ;;  %p3674_p0 = scmp.lt.u32.totalorder %s3667_s14, %s4631_s5 }
  0x45   : > { %p3670_p12 = pnand %p3668_p11, %p4103_p7 }
  0x47   : > { %p3671_p13 = pneg %p3670_p12 }
  0x49   : > { %p3676_p2 = pnand %p3674_p0, %p3671_p13 }
  0x4b   : > { %3679 = shalt.err (!%p3676_p2)
}
  0x4c   : > { %s3680_s26 = scalar_lea.vmem %s4093_s29, 512  ;;  %p3688_p9 = scmp.lt.s32.totalorder %s4093_s29, %s4093_s29 }
  0x4d   : > { %p3681_p4 = scmp.ne.s32.totalorder %s4093_s29, %s3680_s26  ;;  %p3689_p10 = scmp.lt.s32.totalorder %s3680_s26, %s3680_s26 }
  0x4f   : > { %p3683_p6 = pnand %p3681_p4, %p4103_p7  ;;  %p3690_p11 = por %p3689_p10, %p3688_p9 }
  0x51   : > { %p3684_p8 = pneg %p3683_p6 }
  0x53   : > { %p3691_p12 = pnand %p3690_p11, %p3684_p8 }
  0x55   : > { %3694 = shalt.err (!%p3691_p12)
}
  0x56   : > { %3525 = dma.hbm_to_vmem [thread:$0]  (!%p4087_p5), %s4631_s5, 512, %s4093_s29, [#allocation12], %s3980_s30, %s3980_s30, %s3981_s12  }
  0x57   : > { %s3982_s11 = smov [#allocation14]   ;;  %s3983_s13 = smov [#allocation17]  }
  0x58   : > { %s380_s24 = sshll.u32 %s3982_s11, 4  ;;  %s404_s14 = sshll.u32 %s3983_s13, 4  ;;  %s381_s24 = int_to_ptr.vmem [resolvable:$true] %s380_s24  ;;  %s405_s14 = int_to_ptr.vmem [resolvable:$true] %s404_s14 }
  0x59   : > { %s3695_s25 = scalar_lea.hbm %s4633_s7, 512 }
  0x5a   : > { %p3696_p13 = scmp.ne.s32.totalorder %s4633_s7, %s3695_s25  ;;  %p3702_p4 = scmp.lt.u32.totalorder %s3695_s25, %s4633_s7 }
  0x5c   : > { %p3698_p0 = pnand %p3696_p13, %p4103_p7 }
  0x5e   : > { %p3699_p2 = pneg %p3698_p0 }
  0x60   : > { %p3704_p6 = pnand %p3702_p4, %p3699_p2 }
  0x62   : > { %3707 = shalt.err (!%p3704_p6)
}
  0x63   : > { %s3708_s29 = scalar_lea.vmem %s381_s24, 512  ;;  %p3716_p11 = scmp.lt.s32.totalorder %s381_s24, %s381_s24 }
  0x64   : > { %p3709_p8 = scmp.ne.s32.totalorder %s381_s24, %s3708_s29  ;;  %p3717_p12 = scmp.lt.s32.totalorder %s3708_s29, %s3708_s29 }
  0x66   : > { %p3711_p9 = pnand %p3709_p8, %p4103_p7  ;;  %p3718_p1 = por %p3717_p12, %p3716_p11 }
  0x68   : > { %p3712_p10 = pneg %p3711_p9 }
  0x6a   : > { %p3719_p3 = pnand %p3718_p1, %p3712_p10 }
  0x6c   : > { %3722 = shalt.err (!%p3719_p3)
}
  0x6d   : > { %3531 = dma.hbm_to_vmem [thread:$0]  (!%p4087_p5), %s4633_s7, 512, %s381_s24, [#allocation15], %s3980_s30, %s3980_s30, %s3981_s12  }
  0x6e   : > { %s3723_s15 = scalar_lea.hbm %s4635_s9, 512 }
  0x6f   : > { %p3724_p1 = scmp.ne.s32.totalorder %s4635_s9, %s3723_s15  ;;  %p3730_p0 = scmp.lt.u32.totalorder %s3723_s15, %s4635_s9 }
  0x71   : > { %p3726_p3 = pnand %p3724_p1, %p4103_p7 }
  0x73   : > { %p3727_p13 = pneg %p3726_p3 }
  0x75   : > { %p3732_p2 = pnand %p3730_p0, %p3727_p13 }
  0x77   : > { %3735 = shalt.err (!%p3732_p2)
}
  0x78   : > { %s3736_s22 = scalar_lea.vmem %s405_s14, 512  ;;  %p3744_p9 = scmp.lt.s32.totalorder %s405_s14, %s405_s14 }
  0x79   : > { %p3737_p4 = scmp.ne.s32.totalorder %s405_s14, %s3736_s22  ;;  %p3745_p10 = scmp.lt.s32.totalorder %s3736_s22, %s3736_s22 }
  0x7b   : > { %p3739_p6 = pnand %p3737_p4, %p4103_p7  ;;  %p3746_p11 = por %p3745_p10, %p3744_p9 }
  0x7d   : > { %p3740_p8 = pneg %p3739_p6 }
  0x7f   : > { %p3747_p12 = pnand %p3746_p11, %p3740_p8 }
  0x81   : > { %3750 = shalt.err (!%p3747_p12)
}
  0x82   : > { %3537 = dma.hbm_to_vmem [thread:$0]  (!%p4087_p5), %s4635_s9, 512, %s405_s14, [#allocation18], %s3980_s30, %s3980_s30, %s3981_s12  }
  0x83   : > { %s3984_s1 = smov [#allocation7]   ;;  %s3985_s11 = smov [#allocation10]  }
  0x84   : > { %s322_s0 = sshll.u32 %s3984_s1, 4  ;;  %s346_s13 = sshll.u32 %s3985_s11, 4  ;;  %s323_s0 = int_to_ptr.vmem [resolvable:$true] %s322_s0  ;;  %s347_s13 = int_to_ptr.vmem [resolvable:$true] %s346_s13 }
  0x85   : > { %s3751_s25 = scalar_lea.hbm %s4628_s2, 16 }
  0x86   : > { %p3752_p1 = scmp.ne.s32.totalorder %s4628_s2, %s3751_s25  ;;  %p3758_p0 = scmp.lt.u32.totalorder %s3751_s25, %s4628_s2 }
  0x88   : > { %p3754_p3 = pnand %p3752_p1, %p4103_p7 }
  0x8a   : > { %p3755_p13 = pneg %p3754_p3 }
  0x8c   : > { %p3760_p2 = pnand %p3758_p0, %p3755_p13 }
  0x8e   : > { %3763 = shalt.err (!%p3760_p2)
}
  0x8f   : > { %s3764_s14 = scalar_lea.vmem %s323_s0, 16  ;;  %s3771_s29 = scalar_lea.vmem %s323_s0, 32 }
  0x90   : > { %p3765_p4 = scmp.ne.s32.totalorder %s323_s0, %s3764_s14  ;;  %p3772_p9 = scmp.lt.s32.totalorder %s323_s0, %s323_s0 }
  0x91   : > { %p3773_p10 = scmp.lt.s32.totalorder %s3771_s29, %s3764_s14 }
  0x92   : > { %p3767_p6 = pnand %p3765_p4, %p4103_p7 }
  0x93   : > { %p3774_p11 = por %p3773_p10, %p3772_p9 }
  0x94   : > { %p3768_p8 = pneg %p3767_p6 }
  0x96   : > { %p3775_p12 = pnand %p3774_p11, %p3768_p8 }
  0x98   : > { %3778 = shalt.err (!%p3775_p12)
}
  0x99   : > { %3516 = dma.hbm_to_vmem [thread:$0]  (!%p4087_p5), %s4628_s2, 16, %s323_s0, [#allocation6]  }
  0x9a   : > { %s3779_s25 = scalar_lea.hbm %s4630_s4, 16 }
  0x9b   : > { %p3780_p1 = scmp.ne.s32.totalorder %s4630_s4, %s3779_s25  ;;  %p3786_p0 = scmp.lt.u32.totalorder %s3779_s25, %s4630_s4 }
  0x9d   : > { %p3782_p3 = pnand %p3780_p1, %p4103_p7 }
  0x9f   : > { %p3783_p13 = pneg %p3782_p3 }
  0xa1   : > { %p3788_p2 = pnand %p3786_p0, %p3783_p13 }
  0xa3   : > { %3791 = shalt.err (!%p3788_p2)
}
  0xa4   : > { %s3792_s14 = scalar_lea.vmem %s347_s13, 16  ;;  %s3799_s0 = scalar_lea.vmem %s347_s13, 32 }
  0xa5   : > { %p3793_p4 = scmp.ne.s32.totalorder %s347_s13, %s3792_s14  ;;  %p3800_p9 = scmp.lt.s32.totalorder %s347_s13, %s347_s13 }
  0xa6   : > { %p3801_p10 = scmp.lt.s32.totalorder %s3799_s0, %s3792_s14 }
  0xa7   : > { %p3795_p6 = pnand %p3793_p4, %p4103_p7 }
  0xa8   : > { %p3802_p11 = por %p3801_p10, %p3800_p9 }
  0xa9   : > { %p3796_p8 = pneg %p3795_p6 }
  0xab   : > { %p3803_p12 = pnand %p3802_p11, %p3796_p8 }
  0xad   : > { %3806 = shalt.err (!%p3803_p12)
}
  0xae   : > { %3522 = dma.hbm_to_vmem [thread:$0]  (!%p4087_p5), %s4630_s4, 16, %s347_s13, [#allocation9]  }
  0xaf   : > { %s3986_s11 = smov [#allocation13]   ;;  %s3987_s21 = smov [#allocation16]  }
  0xb0   : > { %s370_s15 = sshll.u32 %s3986_s11, 4  ;;  %s394_s25 = sshll.u32 %s3987_s21, 4  ;;  %s371_s15 = int_to_ptr.vmem [resolvable:$true] %s370_s15  ;;  %s395_s25 = int_to_ptr.vmem [resolvable:$true] %s394_s25 }
  0xb1   : > { %s3807_s22 = scalar_lea.hbm %s4632_s6, 16 }
  0xb2   : > { %p3808_p1 = scmp.ne.s32.totalorder %s4632_s6, %s3807_s22  ;;  %p3814_p0 = scmp.lt.u32.totalorder %s3807_s22, %s4632_s6 }
  0xb4   : > { %p3810_p3 = pnand %p3808_p1, %p4103_p7 }
  0xb6   : > { %p3811_p13 = pneg %p3810_p3 }
  0xb8   : > { %p3816_p2 = pnand %p3814_p0, %p3811_p13 }
  0xba   : > { %3819 = shalt.err (!%p3816_p2)
}
  0xbb   : > { %s3820_s13 = scalar_lea.vmem %s371_s15, 16  ;;  %s3827_s1 = scalar_lea.vmem %s371_s15, 32 }
  0xbc   : > { %p3821_p4 = scmp.ne.s32.totalorder %s371_s15, %s3820_s13  ;;  %p3828_p9 = scmp.lt.s32.totalorder %s371_s15, %s371_s15 }
  0xbd   : > { %p3829_p10 = scmp.lt.s32.totalorder %s3827_s1, %s3820_s13 }
  0xbe   : > { %p3823_p6 = pnand %p3821_p4, %p4103_p7 }
  0xbf   : > { %p3830_p11 = por %p3829_p10, %p3828_p9 }
  0xc0   : > { %p3824_p8 = pneg %p3823_p6 }
  0xc2   : > { %p3831_p12 = pnand %p3830_p11, %p3824_p8 }
  0xc4   : > { %3834 = shalt.err (!%p3831_p12)
}
  0xc5   : > { %3528 = dma.hbm_to_vmem [thread:$0]  (!%p4087_p5), %s4632_s6, 16, %s371_s15, [#allocation12]  }
  0xc6   : > { %s3835_s22 = scalar_lea.hbm %s4634_s8, 16 }
  0xc7   : > { %p3836_p1 = scmp.ne.s32.totalorder %s4634_s8, %s3835_s22  ;;  %p3842_p0 = scmp.lt.u32.totalorder %s3835_s22, %s4634_s8 }
  0xc9   : > { %p3838_p3 = pnand %p3836_p1, %p4103_p7 }
  0xcb   : > { %p3839_p13 = pneg %p3838_p3 }
  0xcd   : > { %p3844_p2 = pnand %p3842_p0, %p3839_p13 }
  0xcf   : > { %3847 = shalt.err (!%p3844_p2)
}
  0xd0   : > { %s3848_s13 = scalar_lea.vmem %s395_s25, 16  ;;  %s3855_s15 = scalar_lea.vmem %s395_s25, 32 }
  0xd1   : > { %p3849_p4 = scmp.ne.s32.totalorder %s395_s25, %s3848_s13  ;;  %p3856_p9 = scmp.lt.s32.totalorder %s395_s25, %s395_s25 }
  0xd2   : > { %p3857_p10 = scmp.lt.s32.totalorder %s3855_s15, %s3848_s13 }
  0xd3   : > { %p3851_p6 = pnand %p3849_p4, %p4103_p7 }
  0xd4   : > { %p3858_p11 = por %p3857_p10, %p3856_p9 }
  0xd5   : > { %p3852_p8 = pneg %p3851_p6 }
  0xd7   : > { %p3859_p12 = pnand %p3858_p11, %p3852_p8 }
  0xd9   : > { %3862 = shalt.err (!%p3859_p12)
}
  0xda   : > { %3534 = dma.hbm_to_vmem [thread:$0]  (!%p4087_p5), %s4634_s8, 16, %s395_s25, [#allocation15]  }
  0xdb   : > { %s3988_s21 = smov [#allocation19]   ;;  %s3863_s24 = scalar_lea.hbm %s4636_s10, 16 }
  0xdc   : > { %s418_s28 = sshll.u32 %s3988_s21, 4  ;;  %p3864_p1 = scmp.ne.s32.totalorder %s4636_s10, %s3863_s24  ;;  %s419_s28 = int_to_ptr.vmem [resolvable:$true] %s418_s28 }
  0xdd   : > { %p3870_p0 = scmp.lt.u32.totalorder %s3863_s24, %s4636_s10 }
  0xde   : > { %p3866_p3 = pnand %p3864_p1, %p4103_p7 }
  0xe0   : > { %p3867_p13 = pneg %p3866_p3 }
  0xe2   : > { %p3872_p2 = pnand %p3870_p0, %p3867_p13 }
  0xe4   : > { %3875 = shalt.err (!%p3872_p2)
}
  0xe5   : > { %s3876_s25 = scalar_lea.vmem %s419_s28, 16  ;;  %s3883_s15 = scalar_lea.vmem %s419_s28, 32 }
  0xe6   : > { %p3877_p4 = scmp.ne.s32.totalorder %s419_s28, %s3876_s25  ;;  %p3884_p9 = scmp.lt.s32.totalorder %s419_s28, %s419_s28 }
  0xe7   : > { %p3885_p10 = scmp.lt.s32.totalorder %s3883_s15, %s3876_s25 }
  0xe8   : > { %p3879_p6 = pnand %p3877_p4, %p4103_p7 }
  0xe9   : > { %p3886_p11 = por %p3885_p10, %p3884_p9 }
  0xea   : > { %p3880_p8 = pneg %p3879_p6 }
  0xec   : > { %p3887_p12 = pnand %p3886_p11, %p3880_p8 }
  0xee   : > { %3890 = shalt.err (!%p3887_p12)
}
  0xef   : > { %3540 = dma.hbm_to_vmem [thread:$0]  (!%p4087_p5), %s4636_s10, 16, %s419_s28, [#allocation18]  }
  0xf0   : > { %s4312_s16 = sadd.s32 1, %s3975_s20   ;;  %s36_s27 = sadd.s32 1, %s3971_s19 }
  0xf1   : > { %s33_s21 = ssub.s32 %s3975_s20, %s4312_s16  ;;  %p43_p7 = scmp.ne.s32.totalorder %s3971_s19, %s3967_s18 }
  0xf2   : > { %p34_p1 = scmp.eq.s32.totalorder %s33_s21, 0  ;;  %p44_p3 = scmp.eq.s32.totalorder %s3975_s20, 0 }
  0xf3   : > { %p49_p13 = scmp.ne.s32.totalorder %s3967_s18, %s3963_s17  ;;  %p3555_p0 = scmp.lt.s32.totalorder %s3975_s20, 6 }
  0xf4   : > { %s4324_s26 = scalar_select %p34_p1, %s3971_s19, %s36_s27  }
  0xf5   : > { %p45_p2 = por %p44_p3, %p43_p7  ;;  %p4650_p4 = scmp.eq.s32.totalorder %s4072_s23, 0 }
  0xf6   : > { %s429_s24 = sand.u32 1, %s3971_s19   ;;  %s2906_s28 = sshll.u32 %s3975_s20, 10 }
  0xf7   : > { %p4328_p6 = por %p4650_p4, %p49_p13  ;;  %s2778_s14 = sshll.u32 %s429_s24, 6 }
  0xf8   : > { %s4652_s13 = sld [smem:[#allocation27_spill]]  ;;  %s433_s17 = scalar_lea.vmem [#allocation3], %s2778_s14 }
  0xf9   : > { %s440_s15 = sshll.u32 %s433_s17, 4  ;;  %p4339_p5 = pnand %p3555_p0, %p45_p2  ;;  %s4343_s15 = int_to_ptr.vmem [resolvable:$true] %s440_s15 }
  0xfa   : > { %s4345_s20 = scalar_lea.sflag [#allocation4], %s429_s24 }
  0xfb   : > { %p3893_p9 = pneg %p4339_p5 }
  0xfe   : > { %s4337_s25 = scalar_lea.hbm %s4652_s13, %s2906_s28  ;;  %s3896_s28 = scalar_lea.hbm %s4652_s13, 6144 }
  0xff   : > { %s3891_s11 = scalar_lea.hbm %s4337_s25, 1024  ;;  %p3897_p12 = scmp.lt.u32.totalorder %s4337_s25, %s4652_s13 }
 0x100   : > { %p3892_p8 = scmp.ne.s32.totalorder %s4337_s25, %s3891_s11  ;;  %p3898_p7 = scmp.lt.u32.totalorder %s3896_s28, %s3891_s11 }
 0x101   : > { %p3900_p3 = scmp.lt.u32.totalorder %s3891_s11, %s4337_s25 }
 0x102   : > { %p3894_p10 = pnand %p3893_p9, %p3892_p8  ;;  %p3899_p1 = por %p3898_p7, %p3897_p12 }
 0x104   : > { %p3895_p11 = pneg %p3894_p10  ;;  %p3901_p13 = por %p3900_p3, %p3899_p1 }
 0x106   : > { %p3902_p0 = pnand %p3901_p13, %p3895_p11 }
 0x108   : > { %3905 = shalt.err (!%p3902_p0)
}
 0x109   : > { %s3906_s24 = scalar_lea.vmem %s4343_s15, 1024  ;;  %s3989_s29 = smov [#allocation3]  }
 0x10a   : > { %p3907_p2 = scmp.ne.s32.totalorder %s4343_s15, %s3906_s24  ;;  %s3911_s17 = sshll.u32 %s3989_s29, 4  ;;  %s3912_s17 = int_to_ptr.vmem [resolvable:$false] %s3911_s17 }
 0x10b   : > { %s3913_s27 = scalar_lea.vmem %s3912_s17, 2048  ;;  %p3914_p10 = scmp.lt.s32.totalorder %s4343_s15, %s3912_s17 }
 0x10c   : > { %p3909_p4 = pnand %p3907_p2, %p3893_p9  ;;  %p3915_p12 = scmp.lt.s32.totalorder %s3913_s27, %s3906_s24 }
 0x10e   : > { %p3910_p8 = pneg %p3909_p4  ;;  %p3916_p7 = por %p3915_p12, %p3914_p10 }
 0x110   : > { %p3917_p1 = pnand %p3916_p7, %p3910_p8 }
 0x112   : > { %3920 = shalt.err (!%p3917_p1)
}
 0x113   : > { %3544 = dma.hbm_to_vmem [thread:$0]  (!%p4339_p5), %s4337_s25, 1024, %s4343_s15, %s4345_s20, %s3980_s30, %s3980_s30, %s3981_s12  }
 0x114   : > { %s4654_s11 = sld [smem:[#allocation26_spill]] }
 0x11a   : > { %p4655_p9 = scmp.ne.s32.totalorder %s4654_s11, 0 }
 0x11b   : > { %s454_s21 = sand.u32 (!%p4655_p9), 1, %s3967_s18  }
 0x11c   : > { %452 = sbr.rel (%p4655_p9) target bundleno = 1508 (0x5e4), region = 64  ;;  %s2782_s28 = sshll.u32 (!%p4655_p9), %s454_s21, 6 }
 0x11d   : > { %s455_s14 = scalar_lea.sflag (!%p4655_p9), [#allocation4], %s454_s21  ;;  %s4379_s0 = scalar_lea.vmem (!%p4655_p9), [#allocation3], %s2782_s28 }
 0x123   : > { %3938 = dma.done.wait (%p4328_p6), %s455_s14, 1024  }
 0x124   : > { %3940 = vsyncadd (%p4328_p6), %s455_s14, 4294966272  ;;  %p4656_p11 = scmp.eq.s32.totalorder %s4072_s23, 0 }
 0x126   : > { %3942 = dma.done.wait (%p4656_p11), [#allocation6], 272   ;;  %p4657_p5 = pmov %p4656_p11 }
 0x128   : > { %3944 = vsyncadd (%p4657_p5), [#allocation6], 4294967024  ;;  %p4658_p3 = pmov %p4657_p5 }
 0x12a   : > { %3946 = dma.done.wait (%p4658_p3), [#allocation9], 4624   ;;  %p4659_p13 = pmov %p4658_p3 }
 0x12b   : > { %p4660_p0 = pmov %p4658_p3 }
 0x12c   : > { %3948 = vsyncadd (%p4659_p13), [#allocation9], 4294962672 }
 0x12d   : > { %3950 = dma.done.wait (%p4660_p0), [#allocation12], 528   ;;  %p4661_p2 = pmov %p4660_p0 }
 0x12e   : > { %p4662_p6 = pmov %p4660_p0 }
 0x12f   : > { %3952 = vsyncadd (%p4661_p2), [#allocation12], 4294966768 }
 0x130   : > { %3954 = dma.done.wait (%p4662_p6), [#allocation15], 528   ;;  %p4663_p4 = pmov %p4660_p0 }
 0x131   : > { %p4664_p8 = pmov %p4660_p0 }
 0x132   : > { %3956 = vsyncadd (%p4663_p4), [#allocation15], 4294966768 }
 0x133   : > { %3958 = dma.done.wait (%p4664_p8), [#allocation18], 528   ;;  %p4665_p10 = pmov %p4660_p0 }
 0x134   : > { %vm559_vm0 = vcmask 130048   ;;  %v550_v0 = vld [vmem:[#allocation5] sm:$0xff]  ;;  %v551_v1 = vld [vmem:[#allocation5 + $0x8] sm:$0xff]  ;;  %v544_v7 = vld [vmem:[%s4379_s0 + $0x10] sm:$0xff]  ;;  %vm697_vm1 = vcmask 261120   ;;  %v3990_v11 = vmov 0.0  }
 0x135   : > { %3960 = vsyncadd (%p4665_p10), [#allocation18], 4294966768  ;;  %v542_v2 = vld [vmem:[%s4379_s0] sm:$0xff]  ;;  %v3318_v3 = vpack.c.bf16 %v551_v1, %v550_v0  ;;  %v543_v5 = vld [vmem:[%s4379_s0 + $0x8] sm:$0xff]  ;;  %701 = vst.msk [vmem:[#allocation2 + $0x18] sm:$0xff] %vm697_vm1, %v3990_v11  ;;  %p537_p12 = scmp.lt.s32.totalorder %s4072_s23, 5 }
 0x136   : > { %3066 = vmatprep.mubr.msk.f32.mxu0 %vm559_vm0, %v542_v2  ;;  %v546_v4 = vld [vmem:[%s4379_s0 + $0x20] sm:$0xff]  ;;  %v547_v6 = vld [vmem:[%s4379_s0 + $0x28] sm:$0xff]  ;;  %v548_v8 = vld [vmem:[%s4379_s0 + $0x30] sm:$0xff]  ;;  %698 = vst.msk [vmem:[#allocation2] sm:$0xff] %vm697_vm1, %v3990_v11  ;;  %s4666_s25 = sld [smem:[#allocation29_spill]] }
 0x137   : > { %3072 = vmatprep.mubr.msk.f32.mxu1 %vm559_vm0, %v546_v4  ;;  %3319 = vmatprep.subr.bf16.mxu0 %v3318_v3  ;;  %v545_v9 = vld [vmem:[%s4379_s0 + $0x18] sm:$0xff]  ;;  %699 = vst.msk [vmem:[#allocation2 + $0x8] sm:$0xff] %vm697_vm1, %v3990_v11  ;;  %700 = vst.msk [vmem:[#allocation2 + $0x10] sm:$0xff] %vm697_vm1, %v3990_v11  ;;  %v839_v18 = vld [vmem:[#allocation8 + $0x70] sm:$0xff]  ;;  %s4672_s23 = smov (!%p537_p12, %s4072_s23), 5 }
 0x138   : > { %3418 = vmatprep.subr.bf16.mxu1 %v3318_v3  ;;  %3321 = vmatpush3.bf16.msra.mxu0 %v3318_v3  ;;  %v549_v10 = vld [vmem:[%s4379_s0 + $0x38] sm:$0xff]  ;;  %702 = vst.msk [vmem:[#allocation2 + $0x20] sm:$0xff] %vm697_vm1, %v3990_v11  ;;  %703 = vst.msk [vmem:[#allocation2 + $0x28] sm:$0xff] %vm697_vm1, %v3990_v11  ;;  %v840_v19 = vld [vmem:[#allocation8 + $0x78] sm:$0xff]  ;;  %s2907_s30 = sshll.u32 %s4672_s23, 6 }
 0x139   : > { %3419 = vmatpush3.bf16.msra.mxu1 %v3318_v3  ;;  %704 = vst.msk [vmem:[#allocation2 + $0x30] sm:$0xff] %vm697_vm1, %v3990_v11  ;;  %705 = vst.msk [vmem:[#allocation2 + $0x38] sm:$0xff] %vm697_vm1, %v3990_v11  ;;  %v837_v12 = vld [vmem:[#allocation8 + $0x60] sm:$0xff]  ;;  %v838_v13 = vld [vmem:[#allocation8 + $0x68] sm:$0xff]  ;;  %v3326_v21 = vpack.c.bf16 %v840_v19, %v839_v18 }
 0x13a   : > { %706 = vst.msk [vmem:[#allocation2 + $0x40] sm:$0xff] %vm697_vm1, %v3990_v11  ;;  %707 = vst.msk [vmem:[#allocation2 + $0x48] sm:$0xff] %vm697_vm1, %v3990_v11  ;;  %v1283_v14 = vld [vmem:[#allocation8 + $0x80] sm:$0xff]  ;;  %v3322_v15 = vpack.c.bf16 %v838_v13, %v837_v12  ;;  %v1284_v16 = vld [vmem:[#allocation8 + $0x88] sm:$0xff] }
 0x13b   : > { %3067 = vmatmul.mubr.msk.f32.vlgmr.msra.gmra.mrb[0].mxu0 %vm559_vm0, %v543_v5  ;;  %708 = vst.msk [vmem:[#allocation2 + $0x50] sm:$0xff] %vm697_vm1, %v3990_v11  ;;  %709 = vst.msk [vmem:[#allocation2 + $0x58] sm:$0xff] %vm697_vm1, %v3990_v11  ;;  %v3346_v17 = vpack.c.bf16 %v1284_v16, %v1283_v14  ;;  %v1285_v20 = vld [vmem:[#allocation8 + $0x90] sm:$0xff]  ;;  %v1286_v22 = vld [vmem:[#allocation8 + $0x98] sm:$0xff] }
 0x13c   : > { %3073 = vmatmul.mubr.msk.f32.vlgmr.msra.gmra.mrb[0].mxu1 %vm559_vm0, %v547_v6  ;;  %3069 = vmatprep.mubr.msk.f32.mxu0 %vm559_vm0, %v544_v7  ;;  %v3350_v23 = vpack.c.bf16 %v1286_v22, %v1285_v20  ;;  %v831_v24 = vld [vmem:[#allocation8] sm:$0xff]  ;;  %v832_v25 = vld [vmem:[#allocation8 + $0x8] sm:$0xff]  ;;  %v2795_v30 = vld [vmem:[#allocation7] ss:$0 sm:$0xff]  ;;  %s541_s15 = scalar_lea.vmem %s4666_s25, %s2907_s30 }
 0x13d   : > { %3075 = vmatprep.mubr.msk.f32.mxu1 %vm559_vm0, %v548_v8  ;;  %3323 = vmatprep.subr.bf16.mxu1 %v3322_v15  ;;  %v3330_v26 = vpack.c.bf16 %v832_v25, %v831_v24  ;;  %v1277_v27 = vld [vmem:[#allocation8 + $0x20] sm:$0xff]  ;;  %v1278_v28 = vld [vmem:[#allocation8 + $0x28] sm:$0xff]  ;;  %v833_v55 = vld [vmem:[#allocation8 + $0x10] sm:$0xff] }
 0x13e   : > { %3325 = vmatpush3.bf16.msra.mxu1 %v3322_v15  ;;  %3347 = vmatprep.subr.bf16.mxu0 %v3346_v17  ;;  %v3354_v29 = vpack.c.bf16 %v1278_v28, %v1277_v27  ;;  %v834_v56 = vld [vmem:[#allocation8 + $0x18] sm:$0xff]  ;;  %v1279_v57 = vld [vmem:[#allocation8 + $0x30] sm:$0xff]  ;;  %v1087_v1 = vld [vmem:[#allocation8 + $0xc0] sm:$0xff] }
 0x13f   : > { %3070 = vmatmul.mubr.msk.f32.gmra.mrb[2].mxu0 %vm559_vm0, %v545_v9  ;;  %3327 = vmatprep.subr.bf16.mxu1 %v3326_v21  ;;  %v1280_v58 = vld [vmem:[#allocation8 + $0x38] sm:$0xff]  ;;  %v3334_v62 = vpack.c.bf16 %v834_v56, %v833_v55  ;;  %v1088_v2 = vld [vmem:[#allocation8 + $0xc8] sm:$0xff]  ;;  %v1533_v3 = vld [vmem:[#allocation8 + $0xe0] sm:$0xff] }
 0x140   : > { %3076 = vmatmul.mubr.msk.f32.gmra.mrb[2].mxu1 %vm559_vm0, %v549_v10  ;;  %3349 = vmatpush3.bf16.msra.mxu0 %v3346_v17  ;;  %v3358_v63 = vpack.c.bf16 %v1280_v58, %v1279_v57  ;;  %v1534_v4 = vld [vmem:[#allocation8 + $0xe8] sm:$0xff]  ;;  %v3338_v10 = vpack.c.bf16 %v1088_v2, %v1087_v1  ;;  %v823_v17 = vld [vmem:[#allocation2 + $0x7] sm:$0xff]  ;;  %v718_v2 = vlaneseq }
 0x141   : > { %3351 = vmatprep.subr.bf16.mxu0 %v3350_v23  ;;  %v3362_v11 = vpack.c.bf16 %v1534_v4, %v1533_v3  ;;  %v1268_v18 = vld [vmem:[#allocation2 + $0x8] sm:$0xff]  ;;  %v1698_v27 = vld [vmem:[#allocation8 + $0xa8] sm:$0xff] }
 0x142   : > { %3329 = vmatpush3.bf16.msra.mxu1 %v3326_v21  ;;  %v1089_v19 = vld [vmem:[#allocation8 + $0xd0] sm:$0xff]  ;;  %v1090_v22 = vld [vmem:[#allocation8 + $0xd8] sm:$0xff]  ;;  %v2151_v57 = vld [vmem:[#allocation11] sm:$0xff]  ;;  %v719_v3 = vshrl.u32 %v718_v2, 7 }
 0x143   : > { %3331 = vmatprep.subr.bf16.mxu1 %v3330_v26  ;;  %v1535_v24 = vld [vmem:[#allocation8 + $0xf0] sm:$0xff]  ;;  %v1536_v25 = vld [vmem:[#allocation8 + $0xf8] sm:$0xff] }
 0x144   : > { %3353 = vmatpush3.bf16.msra.mxu0 %v3350_v23  ;;  %v3342_v23 = vpack.c.bf16 %v1090_v22, %v1089_v19  ;;  %v3366_v28 = vpack.c.bf16 %v1536_v25, %v1535_v24  ;;  %v1945_v56 = vld [vmem:[#allocation2 + $0x51] sm:$0xff]  ;;  %v2152_v58 = vld [vmem:[#allocation11 + $0x8] sm:$0xff]  ;;  %v720_v4 = vadd.s32 8, %v719_v3  ;;  %v4579_v24 = vadd.s32 48, %v719_v3 }
 0x145   : > { %3355 = vmatprep.subr.bf16.mxu0 %v3354_v29 }
 0x20e   : > { %v3068_v31 = vpop.f32.mrb[0].mxu0 }
 0x20f   : > { %v3074_v32 = vpop.f32.mrb[0].mxu1  ;;  %v656_v33 = vadd.f32 %v3068_v31, %v2795_v30  ;;  %v650_v34 = vpop.f32.mrb[1].mxu0  ;;  %v1700_v31 = vld [vmem:[#allocation8 + $0xb8] sm:$0xff] }
 0x210   : > { %v676_v35 = vadd.f32 %v3074_v32, %v2795_v30  ;;  %v670_v36 = vpop.f32.mrb[1].mxu1  ;;  %v651_v37 = vadd.f32 %v2795_v30, %v650_v34  ;;  %v1692_v34 = vld [vmem:[#allocation8 + $0x48] sm:$0xff] }
 0x211   : > { %v671_v38 = vadd.f32 %v2795_v30, %v670_v36  ;;  %v690_v39 = vmax.f32 %v656_v33, 0.0  ;;  %v1691_v33 = vld [vmem:[#allocation8 + $0x40] sm:$0xff] }
 0x212   : > { %v694_v40 = vmax.f32 %v676_v35, 0.0  ;;  %v689_v41 = vmax.f32 %v651_v37, 0.0  ;;  %v3071_v42 = vpop.f32.mrb[2].mxu0  ;;  %v3378_v35 = vpack.c.bf16 %v1692_v34, %v1691_v33  ;;  %v1531_v36 = vld [vmem:[#allocation2 + $0x50] sm:$0xff]  ;;  %v773_v34 = vand.u32 7, %v4579_v24 }
 0x213   : > { %v693_v43 = vmax.f32 %v671_v38, 0.0  ;;  %v3077_v44 = vpop.f32.mrb[2].mxu1  ;;  %711 = vst.msk [vmem:[#allocation2 + $0x18] sm:$0xff] %vm697_vm1, %v690_v39  ;;  %v666_v45 = vadd.f32 %v3071_v42, %v2795_v30  ;;  %v660_v46 = vpop.f32.mrb[3].mxu0  ;;  %v1693_v38 = vld [vmem:[#allocation8 + $0x50] sm:$0xff]  ;;  %v1694_v39 = vld [vmem:[#allocation8 + $0x58] sm:$0xff] }
 0x214   : > { %715 = vst.msk [vmem:[#allocation2 + $0x38] sm:$0xff] %vm697_vm1, %v694_v40  ;;  %v686_v47 = vadd.f32 %v3077_v44, %v2795_v30  ;;  %v680_v48 = vpop.f32.mrb[3].mxu1  ;;  %710 = vst.msk [vmem:[#allocation2 + $0x10] sm:$0xff] %vm697_vm1, %v689_v41  ;;  %v661_v49 = vadd.f32 %v2795_v30, %v660_v46  ;;  %v3382_v41 = vpack.c.bf16 %v1694_v39, %v1693_v38  ;;  %v1948_v44 = vld [vmem:[#allocation8 + $0x108] sm:$0xff]  ;;  %vm1234_vm9 = vcmp.ge.s32.totalorder %v773_v34, 1 }
 0x215   : > { %714 = vst.msk [vmem:[#allocation2 + $0x30] sm:$0xff] %vm697_vm1, %v693_v43  ;;  %v681_v50 = vadd.f32 %v2795_v30, %v680_v48  ;;  %v692_v51 = vmax.f32 %v666_v45, 0.0  ;;  %v1699_v30 = vld [vmem:[#allocation8 + $0xb0] sm:$0xff]  ;;  %v1947_v43 = vld [vmem:[#allocation8 + $0x100] sm:$0xff] }
 0x216   : > { %v696_v52 = vmax.f32 %v686_v47, 0.0  ;;  %v691_v53 = vmax.f32 %v661_v49, 0.0  ;;  %v3374_v32 = vpack.c.bf16 %v1700_v31, %v1699_v30  ;;  %v3386_v46 = vpack.c.bf16 %v1948_v44, %v1947_v43 }
 0x217   : > { %v695_v54 = vmax.f32 %v681_v50, 0.0  ;;  %713 = vst.msk [vmem:[#allocation2 + $0x28] sm:$0xff] %vm697_vm1, %v692_v51 }
 0x218   : > { %717 = vst.msk [vmem:[#allocation2 + $0x48] sm:$0xff] %vm697_vm1, %v696_v52  ;;  %712 = vst.msk [vmem:[#allocation2 + $0x20] sm:$0xff] %vm697_vm1, %v691_v53  ;;  %v1949_v52 = vld [vmem:[#allocation8 + $0x110] sm:$0xff]  ;;  %v1950_v53 = vld [vmem:[#allocation8 + $0x118] sm:$0xff] }
 0x219   : > { %716 = vst.msk [vmem:[#allocation2 + $0x40] sm:$0xff] %vm697_vm1, %v695_v54  ;;  %v3390_v55 = vpack.c.bf16 %v1950_v53, %v1949_v52  ;;  %v2876_v53 = vld [vmem:[#allocation10] ss:$0 sm:$0xff] }
 0x21a   : > { %v4445_v0 = vld [vmem:[#allocation2 + $0x18] sm:$0xff] }
 0x21b   : > { %v824_v59 = vld [vmem:[#allocation2 + $0xf] sm:$0xff]  ;;  %v4441_v61 = vld [vmem:[#allocation2 + $0x17] sm:$0xff] }
 0x21c   : > { %v1269_v60 = vld [vmem:[#allocation2 + $0x10] sm:$0xff]  ;;  %3086 = vmatprep.mubr.msk.f32.mxu1 %vm697_vm1, %v824_v59  ;;  %v4479_v15 = vld [vmem:[#allocation2 + $0x38] sm:$0xff] }
 0x21d   : > { %3146 = vmatprep.mubr.msk.f32.mxu0 %vm697_vm1, %v1269_v60  ;;  %3087 = vmatmul.mubr.msk.f32.vlgmr.msra.gmra.mrb[4].mxu1 %vm697_vm1, %v4441_v61  ;;  %v4451_v5 = vld [vmem:[#allocation2 + $0x30] sm:$0xff] }
 0x21e   : > { %3147 = vmatmul.mubr.msk.f32.vlgmr.msra.gmra.mrb[4].mxu0 %vm697_vm1, %v4445_v0  ;;  %3333 = vmatpush3.bf16.msra.mxu1 %v3330_v26  ;;  %v4463_v9 = vld [vmem:[#allocation2 + $0x28] sm:$0xff]  ;;  %v4477_v14 = vld [vmem:[#allocation2 + $0x37] sm:$0xff] }
 0x21f   : > { %3357 = vmatpush3.bf16.msra.mxu0 %v3354_v29  ;;  %v4453_v6 = vld [vmem:[#allocation2 + $0x1f] sm:$0xff]  ;;  %v4457_v8 = vld [vmem:[#allocation2 + $0x27] sm:$0xff]  ;;  %3335 = vmatprep.subr.bf16.mxu1 %v3334_v62  ;;  %v4469_v12 = vld [vmem:[#allocation2 + $0x2f] sm:$0xff] }
 0x220   : > { %v4455_v7 = vld [vmem:[#allocation2 + $0x20] sm:$0xff]  ;;  %3359 = vmatprep.subr.bf16.mxu0 %v3358_v63  ;;  %3089 = vmatprep.mubr.msk.f32.mxu1 %vm697_vm1, %v4453_v6  ;;  %v1281_v21 = vld [vmem:[#allocation2 + $0x48] sm:$0xff]  ;;  %v1697_v26 = vld [vmem:[#allocation8 + $0xa0] sm:$0xff] }
 0x221   : > { %3149 = vmatprep.mubr.msk.f32.mxu0 %vm697_vm1, %v4455_v7  ;;  %3090 = vmatmul.mubr.msk.f32.gmra.mrb[6].mxu1 %vm697_vm1, %v4457_v8  ;;  %v4475_v13 = vld [vmem:[#allocation2 + $0x40] sm:$0xff]  ;;  %v3370_v29 = vpack.c.bf16 %v1698_v27, %v1697_v26  ;;  %v1085_v37 = vld [vmem:[#allocation2 + $0x4f] sm:$0xff] }
 0x222   : > { %3150 = vmatmul.mubr.msk.f32.gmra.mrb[6].mxu0 %vm697_vm1, %v4463_v9  ;;  %3092 = vmatprep.mubr.msk.f32.mxu1 %vm697_vm1, %v4469_v12  ;;  %v830_v16 = vld [vmem:[#allocation2 + $0x3f] sm:$0xff]  ;;  %v835_v20 = vld [vmem:[#allocation2 + $0x47] sm:$0xff]  ;;  %v1683_v40 = vld [vmem:[#allocation2 + $0x11] sm:$0xff] }
 0x223   : > { %3152 = vmatprep.mubr.msk.f32.mxu0 %vm697_vm1, %v4451_v5  ;;  %3337 = vmatpush3.bf16.msra.mxu1 %v3334_v62  ;;  %v1684_v42 = vld [vmem:[#allocation2 + $0x19] sm:$0xff]  ;;  %v1685_v45 = vld [vmem:[#allocation2 + $0x21] sm:$0xff]  ;;  %v1686_v47 = vld [vmem:[#allocation2 + $0x29] sm:$0xff] }
 0x224   : > { %3361 = vmatpush3.bf16.msra.mxu0 %v3358_v63  ;;  %3339 = vmatprep.subr.bf16.mxu1 %v3338_v10  ;;  %v1687_v48 = vld [vmem:[#allocation2 + $0x31] sm:$0xff]  ;;  %v1688_v49 = vld [vmem:[#allocation2 + $0x39] sm:$0xff]  ;;  %v1689_v50 = vld [vmem:[#allocation2 + $0x41] sm:$0xff] }
 0x225   : > { %3363 = vmatprep.subr.bf16.mxu0 %v3362_v11  ;;  %3093 = vmatmul.mubr.msk.f32.gmra.mrb[8].mxu1 %vm697_vm1, %v4477_v14  ;;  %v1695_v51 = vld [vmem:[#allocation2 + $0x49] sm:$0xff]  ;;  %v2299_v63 = vld [vmem:[#allocation14] sm:$0xff] }
 0x226   : > { %3153 = vmatmul.mubr.msk.f32.gmra.mrb[8].mxu0 %vm697_vm1, %v4479_v15  ;;  %3095 = vmatprep.mubr.msk.f32.mxu1 %vm697_vm1, %v830_v16  ;;  %v1682_v54 = vld [vmem:[#allocation2 + $0x9] sm:$0xff] }
 0x227   : > { %3155 = vmatprep.mubr.msk.f32.mxu0 %vm697_vm1, %v4475_v13 }
 0x229   : > { %3096 = vmatmul.mubr.msk.f32.gmra.mrb[10].mxu1 %vm697_vm1, %v835_v20 }
 0x22a   : > { %3156 = vmatmul.mubr.msk.f32.gmra.mrb[10].mxu0 %vm697_vm1, %v1281_v21  ;;  %3106 = vmatprep.mubr.msk.f32.mxu1 %vm697_vm1, %v823_v17 }
 0x22b   : > { %3166 = vmatprep.mubr.msk.f32.mxu0 %vm697_vm1, %v1268_v18 }
 0x22d   : > { %3107 = vmatmul.mubr.msk.f32.vlgmr.msra.gmra.mrb[4].mxu1 %vm697_vm1, %v824_v59  ;;  %v3394_v59 = vpack.c.bf16 %v2152_v58, %v2151_v57 }
 0x22e   : > { %3167 = vmatmul.mubr.msk.f32.vlgmr.msra.gmra.mrb[4].mxu0 %vm697_vm1, %v1269_v60  ;;  %3341 = vmatpush3.bf16.msra.mxu1 %v3338_v10  ;;  %v2153_v60 = vld [vmem:[#allocation11 + $0x10] sm:$0xff]  ;;  %v4571_v10 = vadd.s32 40, %v719_v3 }
 0x22f   : > { %3109 = vmatprep.mubr.msk.f32.mxu1 %vm697_vm1, %v4441_v61  ;;  %3169 = vmatprep.mubr.msk.f32.mxu0 %vm697_vm1, %v4445_v0 }
 0x230   : > { %3343 = vmatprep.subr.bf16.mxu1 %v3342_v23  ;;  %3365 = vmatpush3.bf16.msra.mxu0 %v3362_v11 }
 0x231   : > { %3110 = vmatmul.mubr.msk.f32.gmra.mrb[6].mxu1 %vm697_vm1, %v4453_v6  ;;  %3367 = vmatprep.subr.bf16.mxu0 %v3366_v28 }
 0x232   : > { %3170 = vmatmul.mubr.msk.f32.gmra.mrb[6].mxu0 %vm697_vm1, %v4455_v7  ;;  %3112 = vmatprep.mubr.msk.f32.mxu1 %vm697_vm1, %v4457_v8 }
 0x233   : > { %3172 = vmatprep.mubr.msk.f32.mxu0 %vm697_vm1, %v4463_v9  ;;  %3345 = vmatpush3.bf16.msra.mxu1 %v3342_v23 }
 0x234   : > { %3369 = vmatpush3.bf16.msra.mxu0 %v3366_v28  ;;  %3371 = vmatprep.subr.bf16.mxu1 %v3370_v29 }
 0x235   : > { %3113 = vmatmul.mubr.msk.f32.gmra.mrb[8].mxu1 %vm697_vm1, %v4469_v12  ;;  %3395 = vmatprep.subr.bf16.mxu0 %v3394_v59 }
 0x236   : > { %3173 = vmatmul.mubr.msk.f32.gmra.mrb[8].mxu0 %vm697_vm1, %v4451_v5  ;;  %3115 = vmatprep.mubr.msk.f32.mxu1 %vm697_vm1, %v4477_v14 }
 0x237   : > { %3175 = vmatprep.mubr.msk.f32.mxu0 %vm697_vm1, %v4479_v15 }
 0x239   : > { %3116 = vmatmul.mubr.msk.f32.gmra.mrb[10].mxu1 %vm697_vm1, %v830_v16 }
 0x23a   : > { %3176 = vmatmul.mubr.msk.f32.gmra.mrb[10].mxu0 %vm697_vm1, %v4475_v13  ;;  %3126 = vmatprep.mubr.msk.f32.mxu1 %vm697_vm1, %v4441_v61  ;;  %v2154_v61 = vld [vmem:[#allocation11 + $0x18] sm:$0xff] }
 0x23b   : > { %3186 = vmatprep.mubr.msk.f32.mxu0 %vm697_vm1, %v4445_v0  ;;  %v3398_v62 = vpack.c.bf16 %v2154_v61, %v2153_v60  ;;  %v2300_v0 = vld [vmem:[#allocation14 + $0x8] sm:$0xff] }
 0x23c   : > { %v4568_v1 = vpack.c.bf16 %v2300_v0, %v2299_v63  ;;  %v2301_v63 = vld [vmem:[#allocation14 + $0x10] sm:$0xff]  ;;  %v2302_v0 = vld [vmem:[#allocation14 + $0x18] sm:$0xff] }
 0x23d   : > { %3127 = vmatmul.mubr.msk.f32.vlgmr.msra.gmra.mrb[4].mxu1 %vm697_vm1, %v4453_v6  ;;  %v738_v6 = vand.u32 7, %v720_v4 }
 0x23e   : > { %3187 = vmatmul.mubr.msk.f32.vlgmr.msra.gmra.mrb[4].mxu0 %vm697_vm1, %v4455_v7  ;;  %3373 = vmatpush3.bf16.msra.mxu1 %v3370_v29  ;;  %v731_v7 = vand.u32 7, %v719_v3 }
 0x23f   : > { %3129 = vmatprep.mubr.msk.f32.mxu1 %vm697_vm1, %v4457_v8  ;;  %3189 = vmatprep.mubr.msk.f32.mxu0 %vm697_vm1, %v4463_v9  ;;  %v721_v8 = vadd.s32 16, %v719_v3  ;;  %vm1229_vm2 = vcmp.ge.s32.totalorder %v738_v6, 1  ;;  %vm2089_vm10 = vcmp.le.s32.totalorder %v738_v6, 6 }
 0x240   : > { %3375 = vmatprep.subr.bf16.mxu1 %v3374_v32  ;;  %3397 = vmatpush3.bf16.msra.mxu0 %v3394_v59  ;;  %vm1228_vm3 = vcmp.ge.s32.totalorder %v731_v7, 1  ;;  %vm2088_vm11 = vcmp.le.s32.totalorder %v731_v7, 6 }
 0x241   : > { %3130 = vmatmul.mubr.msk.f32.gmra.mrb[6].mxu1 %vm697_vm1, %v4469_v12  ;;  %3399 = vmatprep.subr.bf16.mxu0 %v3398_v62  ;;  %v745_v11 = vand.u32 7, %v721_v8  ;;  %v4573_v12 = vadd.s32 32, %v719_v3 }
 0x242   : > { %3190 = vmatmul.mubr.msk.f32.gmra.mrb[6].mxu0 %vm697_vm1, %v4451_v5  ;;  %3132 = vmatprep.mubr.msk.f32.mxu1 %vm697_vm1, %v4477_v14  ;;  %v722_v5 = vadd.s32 24, %v719_v3 }
 0x243   : > { %3192 = vmatprep.mubr.msk.f32.mxu0 %vm697_vm1, %v4479_v15  ;;  %3377 = vmatpush3.bf16.msra.mxu1 %v3374_v32  ;;  %vm1230_vm5 = vcmp.ge.s32.totalorder %v745_v11, 1  ;;  %v759_v23 = vand.u32 7, %v4573_v12  ;;  %vm2090_vm13 = vcmp.le.s32.totalorder %v745_v11, 6 }
 0x244   : > { %3379 = vmatprep.subr.bf16.mxu1 %v3378_v35  ;;  %3401 = vmatpush3.bf16.msra.mxu0 %v3398_v62  ;;  %v752_v9 = vand.u32 7, %v722_v5 }
 0x245   : > { %3133 = vmatmul.mubr.msk.f32.gmra.mrb[8].mxu1 %vm697_vm1, %v830_v16  ;;  %3403 = vmatprep.subr.bf16.mxu0 %v4568_v1  ;;  %vm1232_vm7 = vcmp.ge.s32.totalorder %v759_v23, 1  ;;  %vm2092_vm15 = vcmp.le.s32.totalorder %v759_v23, 6 }
 0x246   : > { %3193 = vmatmul.mubr.msk.f32.gmra.mrb[8].mxu0 %vm697_vm1, %v4475_v13  ;;  %3135 = vmatprep.mubr.msk.f32.mxu1 %vm697_vm1, %v835_v20  ;;  %vm1231_vm4 = vcmp.ge.s32.totalorder %v752_v9, 1  ;;  %v766_v20 = vand.u32 7, %v4571_v10  ;;  %vm2091_vm12 = vcmp.le.s32.totalorder %v752_v9, 6  ;;  %v3406_v10 = vpack.c.bf16 %v2302_v0, %v2301_v63 }
 0x247   : > { %3195 = vmatprep.mubr.msk.f32.mxu0 %vm697_vm1, %v1281_v21  ;;  %v4576_v21 = vadd.s32 56, %v719_v3 }
 0x248   : > { %vm1233_vm6 = vcmp.ge.s32.totalorder %v766_v20, 1  ;;  %vm2093_vm14 = vcmp.le.s32.totalorder %v766_v20, 6 }
 0x249   : > { %3136 = vmatmul.mubr.msk.f32.gmra.mrb[10].mxu1 %vm697_vm1, %v1085_v37  ;;  %v780_v32 = vand.u32 7, %v4576_v21 }
 0x24a   : > { %3196 = vmatmul.mubr.msk.f32.gmra.mrb[10].mxu0 %vm697_vm1, %v1531_v36  ;;  %3206 = vmatprep.mubr.msk.f32.mxu1 %vm697_vm1, %v1683_v40 }
 0x24b   : > { %vm1235_vm8 = vcmp.ge.s32.totalorder %v780_v32, 1  ;;  %vm2095_vm0 = vcmp.le.s32.totalorder %v780_v32, 6  ;;  %v2448_v32 = vld [vmem:[#allocation17 + $0x8] sm:$0xff] }
 0x24d   : > { %3207 = vmatmul.mubr.msk.f32.vlgmr.msra.gmra.mrb[12].mxu1 %vm697_vm1, %v1684_v42 }
 0x24e   : > { %3381 = vmatpush3.bf16.msra.mxu1 %v3378_v35  ;;  %3209 = vmatprep.mubr.msk.f32.mxu1 %vm697_vm1, %v1685_v45 }
 0x24f   : > { %3383 = vmatprep.subr.bf16.mxu1 %v3382_v41 }
 0x251   : > { %3210 = vmatmul.mubr.msk.f32.gmra.mrb[14].mxu1 %vm697_vm1, %v1686_v47 }
 0x252   : > { %3212 = vmatprep.mubr.msk.f32.mxu1 %vm697_vm1, %v1687_v48  ;;  %3385 = vmatpush3.bf16.msra.mxu1 %v3382_v41 }
 0x253   : > { %3387 = vmatprep.subr.bf16.mxu1 %v3386_v46 }
 0x255   : > { %3213 = vmatmul.mubr.msk.f32.gmra.mrb[16].mxu1 %vm697_vm1, %v1688_v49 }
 0x256   : > { %3215 = vmatprep.mubr.msk.f32.mxu1 %vm697_vm1, %v1689_v50 }
 0x259   : > { %3216 = vmatmul.mubr.msk.f32.gmra.mrb[18].mxu1 %vm697_vm1, %v1695_v51 }
 0x25a   : > { %3226 = vmatprep.mubr.msk.f32.mxu1 %vm697_vm1, %v1682_v54 }
 0x25d   : > { %3227 = vmatmul.mubr.msk.f32.vlgmr.msra.gmra.mrb[12].mxu1 %vm697_vm1, %v1683_v40 }
 0x25e   : > { %3389 = vmatpush3.bf16.msra.mxu1 %v3386_v46  ;;  %3229 = vmatprep.mubr.msk.f32.mxu1 %vm697_vm1, %v1684_v42 }
 0x25f   : > { %3391 = vmatprep.subr.bf16.mxu1 %v3390_v55 }
 0x261   : > { %3230 = vmatmul.mubr.msk.f32.gmra.mrb[14].mxu1 %vm697_vm1, %v1685_v45 }
 0x262   : > { %3232 = vmatprep.mubr.msk.f32.mxu1 %vm697_vm1, %v1686_v47  ;;  %3393 = vmatpush3.bf16.msra.mxu1 %v3390_v55 }
 0x265   : > { %3233 = vmatmul.mubr.msk.f32.gmra.mrb[16].mxu1 %vm697_vm1, %v1687_v48 }
 0x266   : > { %3235 = vmatprep.mubr.msk.f32.mxu1 %vm697_vm1, %v1688_v49 }
 0x269   : > { %3236 = vmatmul.mubr.msk.f32.gmra.mrb[18].mxu1 %vm697_vm1, %v1689_v50 }
 0x26a   : > { %3246 = vmatprep.mubr.msk.f32.mxu1 %vm697_vm1, %v1684_v42 }
 0x26d   : > { %3247 = vmatmul.mubr.msk.f32.vlgmr.msra.gmra.mrb[12].mxu1 %vm697_vm1, %v1685_v45 }
 0x26e   : > { %3249 = vmatprep.mubr.msk.f32.mxu1 %vm697_vm1, %v1686_v47 }
 0x271   : > { %3250 = vmatmul.mubr.msk.f32.gmra.mrb[14].mxu1 %vm697_vm1, %v1687_v48 }
 0x272   : > { %3252 = vmatprep.mubr.msk.f32.mxu1 %vm697_vm1, %v1688_v49 }
 0x275   : > { %3253 = vmatmul.mubr.msk.f32.gmra.mrb[16].mxu1 %vm697_vm1, %v1689_v50 }
 0x276   : > { %3255 = vmatprep.mubr.msk.f32.mxu1 %vm697_vm1, %v1695_v51 }
 0x279   : > { %3256 = vmatmul.mubr.msk.f32.gmra.mrb[18].mxu1 %vm697_vm1, %v1945_v56 }
 0x310   : > { %v3128_v13 = vpop.f32.mrb[4].mxu1 }
 0x311   : > { %v3188_v14 = vpop.f32.mrb[4].mxu0  ;;  %v1253_v15 = vsel %vm1229_vm2, %v3128_v13, 0.0  ;;  %v1181_v16 = vpop.f32.mrb[5].mxu1  ;;  %vm2094_vm2 = vcmp.le.s32.totalorder %v773_v34, 6  ;;  %v2877_v34 = vld [vmem:[#allocation13] ss:$0 sm:$0xff] }
 0x312   : > { %v1627_v17 = vpop.f32.mrb[5].mxu0  ;;  %v1675_v18 = vadd.f32 %v3188_v14, %v1253_v15  ;;  %v1252_v19 = vsel %vm1228_vm3, %v1181_v16, 0.0 }
 0x313   : > { %v1674_v22 = vadd.f32 %v1627_v17, %v1252_v19 }
 0x314   : > { %v3131_v25 = vpop.f32.mrb[6].mxu1 }
 0x315   : > { %v3191_v26 = vpop.f32.mrb[6].mxu0  ;;  %v1255_v27 = vsel %vm1231_vm4, %v3131_v25, 0.0  ;;  %v1191_v28 = vpop.f32.mrb[7].mxu1 }
 0x316   : > { %v1637_v29 = vpop.f32.mrb[7].mxu0  ;;  %v1677_v30 = vadd.f32 %v3191_v26, %v1255_v27  ;;  %v1254_v31 = vsel %vm1230_vm5, %v1191_v28, 0.0 }
 0x317   : > { %v1676_v33 = vadd.f32 %v1637_v29, %v1254_v31  ;;  %v2447_v31 = vld [vmem:[#allocation17] sm:$0xff] }
 0x318   : > { %v3134_v35 = vpop.f32.mrb[8].mxu1 }
 0x319   : > { %v3194_v36 = vpop.f32.mrb[8].mxu0  ;;  %v1257_v37 = vsel %vm1233_vm6, %v3134_v35, 0.0  ;;  %v1201_v38 = vpop.f32.mrb[9].mxu1 }
 0x31a   : > { %v1647_v39 = vpop.f32.mrb[9].mxu0  ;;  %v1679_v40 = vadd.f32 %v3194_v36, %v1257_v37  ;;  %v1256_v41 = vsel %vm1232_vm7, %v1201_v38, 0.0 }
 0x31b   : > { %v1678_v42 = vadd.f32 %v1647_v39, %v1256_v41  ;;  %v2449_v39 = vld [vmem:[#allocation17 + $0x10] sm:$0xff] }
 0x31c   : > { %v3137_v43 = vpop.f32.mrb[10].mxu1 }
 0x31d   : > { %v3197_v44 = vpop.f32.mrb[10].mxu0  ;;  %v1259_v45 = vsel %vm1235_vm8, %v3137_v43, 0.0  ;;  %v1211_v46 = vpop.f32.mrb[11].mxu1 }
 0x31e   : > { %v1657_v47 = vpop.f32.mrb[11].mxu0  ;;  %v1681_v48 = vadd.f32 %v3197_v44, %v1259_v45  ;;  %v1258_v49 = vsel %vm1234_vm9, %v1211_v46, 0.0 }
 0x31f   : > { %v1680_v50 = vadd.f32 %v1657_v47, %v1258_v49 }
 0x340   : > { %v3248_v51 = vpop.f32.mrb[12].mxu1 }
 0x341   : > { %v2113_v52 = vsel %vm2089_vm10, %v3248_v51, 0.0  ;;  %v2041_v54 = vpop.f32.mrb[13].mxu1 }
 0x342   : > { %v2121_v55 = vadd.f32 %v2113_v52, %v1675_v18  ;;  %v2112_v56 = vsel %vm2088_vm11, %v2041_v54, 0.0 }
 0x343   : > { %v2120_v57 = vadd.f32 %v2112_v56, %v1674_v22 }
 0x344   : > { %v2136_v58 = vadd.f32 %v2876_v53, %v2121_v55  ;;  %v3251_v59 = vpop.f32.mrb[14].mxu1 }
 0x345   : > { %v2135_v60 = vadd.f32 %v2876_v53, %v2120_v57  ;;  %v2115_v61 = vsel %vm2091_vm12, %v3251_v59, 0.0  ;;  %v2051_v62 = vpop.f32.mrb[15].mxu1 }
 0x346   : > { %v2123_v2 = vadd.f32 %v2115_v61, %v1677_v30  ;;  %v2114_v3 = vsel %vm2090_vm13, %v2051_v62, 0.0  ;;  %v2144_v6 = vmax.f32 %v2136_v58, 0.0  ;;  %v2886_v62 = vld [vmem:[#allocation16] ss:$0 sm:$0xff] }
 0x347   : > { %v2143_v4 = vmax.f32 %v2135_v60, 0.0  ;;  %v2122_v5 = vadd.f32 %v2114_v3, %v1676_v33  ;;  %v3410_v33 = vpack.c.bf16 %v2448_v32, %v2447_v31 }
 0x348   : > { %v2138_v7 = vadd.f32 %v2876_v53, %v2123_v2  ;;  %v3254_v8 = vpop.f32.mrb[16].mxu1 }
 0x349   : > { %v2137_v9 = vadd.f32 %v2876_v53, %v2122_v5  ;;  %v2117_v12 = vsel %vm2093_vm14, %v3254_v8, 0.0  ;;  %v2061_v11 = vpop.f32.mrb[17].mxu1  ;;  %3266 = vmatprep.mubr.msk.f32.mxu0 %vm697_vm1, %v2143_v4 }
 0x34a   : > { %v2125_v13 = vadd.f32 %v2117_v12, %v1679_v40  ;;  %v2116_v14 = vsel %vm2092_vm15, %v2061_v11, 0.0  ;;  %3267 = vmatmul.mubr.msk.f32.vlgmr.msra.gmra.mrb[12].mxu0 %vm697_vm1, %v2144_v6  ;;  %v2146_v17 = vmax.f32 %v2138_v7, 0.0  ;;  %v2450_v40 = vld [vmem:[#allocation17 + $0x18] sm:$0xff] }
 0x34b   : > { %v2145_v15 = vmax.f32 %v2137_v9, 0.0  ;;  %v2124_v16 = vadd.f32 %v2116_v14, %v1678_v42  ;;  %3405 = vmatpush3.bf16.msra.mxu0 %v4568_v1  ;;  %v3414_v46 = vpack.c.bf16 %v2450_v40, %v2449_v39 }
 0x34c   : > { %v2140_v18 = vadd.f32 %v2876_v53, %v2125_v13  ;;  %v3257_v19 = vpop.f32.mrb[18].mxu1  ;;  %3407 = vmatprep.subr.bf16.mxu0 %v3406_v10 }
 0x34d   : > { %v2139_v20 = vadd.f32 %v2876_v53, %v2124_v16  ;;  %v2119_v21 = vsel %vm2095_vm0, %v3257_v19, 0.0  ;;  %v2071_v22 = vpop.f32.mrb[19].mxu1  ;;  %3269 = vmatprep.mubr.msk.f32.mxu0 %vm697_vm1, %v2145_v15 }
 0x34e   : > { %v2127_v23 = vadd.f32 %v2119_v21, %v1681_v48  ;;  %v2118_v24 = vsel %vm2094_vm2, %v2071_v22, 0.0  ;;  %3270 = vmatmul.mubr.msk.f32.gmra.mrb[14].mxu0 %vm697_vm1, %v2146_v17  ;;  %v2148_v27 = vmax.f32 %v2140_v18, 0.0 }
 0x34f   : > { %v2147_v25 = vmax.f32 %v2139_v20, 0.0  ;;  %v2126_v26 = vadd.f32 %v2118_v24, %v1680_v50  ;;  %3409 = vmatpush3.bf16.msra.mxu0 %v3406_v10  ;;  %v2895_v24 = vld [vmem:[#allocation19] ss:$0 sm:$0xff] }
 0x350   : > { %v2142_v28 = vadd.f32 %v2876_v53, %v2127_v23  ;;  %3411 = vmatprep.subr.bf16.mxu0 %v3410_v33 }
 0x351   : > { %v2141_v29 = vadd.f32 %v2876_v53, %v2126_v26  ;;  %3272 = vmatprep.mubr.msk.f32.mxu0 %vm697_vm1, %v2147_v25 }
 0x352   : > { %3273 = vmatmul.mubr.msk.f32.gmra.mrb[16].mxu0 %vm697_vm1, %v2148_v27  ;;  %v2150_v30 = vmax.f32 %v2142_v28, 0.0 }
 0x353   : > { %v2149_v1 = vmax.f32 %v2141_v29, 0.0 }
 0x355   : > { %3275 = vmatprep.mubr.msk.f32.mxu0 %vm697_vm1, %v2149_v1 }
 0x356   : > { %3276 = vmatmul.mubr.msk.f32.gmra.mrb[18].mxu0 %vm697_vm1, %v2150_v30 }
 0x41d   : > { %v3268_v35 = vpop.f32.mrb[12].mxu0 }
 0x41e   : > { %v2258_v36 = vadd.f32 %v3268_v35, %v2877_v34  ;;  %v2252_v37 = vpop.f32.mrb[13].mxu0 }
 0x41f   : > { %v2253_v38 = vadd.f32 %v2877_v34, %v2252_v37 }
 0x420   : > { %v2292_v43 = vmax.f32 %v2258_v36, 0.0 }
 0x421   : > { %v2291_v41 = vmax.f32 %v2253_v38, 0.0  ;;  %v3271_v42 = vpop.f32.mrb[14].mxu0 }
 0x422   : > { %v2268_v44 = vadd.f32 %v3271_v42, %v2877_v34  ;;  %v2262_v45 = vpop.f32.mrb[15].mxu0 }
 0x423   : > { %v2263_v47 = vadd.f32 %v2877_v34, %v2262_v45  ;;  %3286 = vmatprep.mubr.msk.f32.mxu0 %vm697_vm1, %v2291_v41 }
 0x424   : > { %3287 = vmatmul.mubr.msk.f32.vlgmr.msra.gmra.mrb[20].mxu0 %vm697_vm1, %v2292_v43  ;;  %v2294_v50 = vmax.f32 %v2268_v44, 0.0 }
 0x425   : > { %v2293_v48 = vmax.f32 %v2263_v47, 0.0  ;;  %v3274_v49 = vpop.f32.mrb[16].mxu0  ;;  %3413 = vmatpush3.bf16.msra.mxu0 %v3410_v33 }
 0x426   : > { %v2278_v51 = vadd.f32 %v3274_v49, %v2877_v34  ;;  %v2272_v52 = vpop.f32.mrb[17].mxu0  ;;  %3415 = vmatprep.subr.bf16.mxu0 %v3414_v46 }
 0x427   : > { %v2273_v53 = vadd.f32 %v2877_v34, %v2272_v52  ;;  %3289 = vmatprep.mubr.msk.f32.mxu0 %vm697_vm1, %v2293_v48 }
 0x428   : > { %3290 = vmatmul.mubr.msk.f32.gmra.mrb[22].mxu0 %vm697_vm1, %v2294_v50  ;;  %v2296_v56 = vmax.f32 %v2278_v51, 0.0 }
 0x429   : > { %v2295_v54 = vmax.f32 %v2273_v53, 0.0  ;;  %v3277_v55 = vpop.f32.mrb[18].mxu0  ;;  %3417 = vmatpush3.bf16.msra.mxu0 %v3414_v46 }
 0x42a   : > { %v2288_v57 = vadd.f32 %v3277_v55, %v2877_v34  ;;  %v2282_v58 = vpop.f32.mrb[19].mxu0 }
 0x42b   : > { %v2283_v59 = vadd.f32 %v2877_v34, %v2282_v58  ;;  %3292 = vmatprep.mubr.msk.f32.mxu0 %vm697_vm1, %v2295_v54 }
 0x42c   : > { %3293 = vmatmul.mubr.msk.f32.gmra.mrb[24].mxu0 %vm697_vm1, %v2296_v56  ;;  %v2298_v61 = vmax.f32 %v2288_v57, 0.0 }
 0x42d   : > { %v2297_v60 = vmax.f32 %v2283_v59, 0.0 }
 0x42f   : > { %3295 = vmatprep.mubr.msk.f32.mxu0 %vm697_vm1, %v2297_v60 }
 0x430   : > { %3296 = vmatmul.mubr.msk.f32.gmra.mrb[26].mxu0 %vm697_vm1, %v2298_v61 }
 0x4f7   : > { %v3288_v63 = vpop.f32.mrb[20].mxu0 }
 0x4f8   : > { %v2406_v0 = vadd.f32 %v3288_v63, %v2886_v62  ;;  %v2400_v2 = vpop.f32.mrb[21].mxu0 }
 0x4f9   : > { %v2401_v3 = vadd.f32 %v2886_v62, %v2400_v2 }
 0x4fa   : > { %v2440_v6 = vmax.f32 %v2406_v0, 0.0 }
 0x4fb   : > { %v2439_v4 = vmax.f32 %v2401_v3, 0.0  ;;  %v3291_v5 = vpop.f32.mrb[22].mxu0 }
 0x4fc   : > { %v2416_v7 = vadd.f32 %v3291_v5, %v2886_v62  ;;  %v2410_v8 = vpop.f32.mrb[23].mxu0 }
 0x4fd   : > { %v2411_v10 = vadd.f32 %v2886_v62, %v2410_v8  ;;  %3306 = vmatprep.mubr.msk.f32.mxu0 %vm697_vm1, %v2439_v4 }
 0x4fe   : > { %3307 = vmatmul.mubr.msk.f32.vlgmr.msra.gmra.mrb[28].mxu0 %vm697_vm1, %v2440_v6  ;;  %v2442_v11 = vmax.f32 %v2416_v7, 0.0 }
 0x4ff   : > { %v2441_v9 = vmax.f32 %v2411_v10, 0.0  ;;  %v3294_v12 = vpop.f32.mrb[24].mxu0 }
 0x500   : > { %v2426_v13 = vadd.f32 %v3294_v12, %v2886_v62  ;;  %v2420_v14 = vpop.f32.mrb[25].mxu0 }
 0x501   : > { %v2421_v15 = vadd.f32 %v2886_v62, %v2420_v14  ;;  %3309 = vmatprep.mubr.msk.f32.mxu0 %vm697_vm1, %v2441_v9 }
 0x502   : > { %3310 = vmatmul.mubr.msk.f32.gmra.mrb[30].mxu0 %vm697_vm1, %v2442_v11  ;;  %v2444_v18 = vmax.f32 %v2426_v13, 0.0 }
 0x503   : > { %v2443_v16 = vmax.f32 %v2421_v15, 0.0  ;;  %v3297_v17 = vpop.f32.mrb[26].mxu0 }
 0x504   : > { %v2436_v19 = vadd.f32 %v3297_v17, %v2886_v62  ;;  %v2430_v20 = vpop.f32.mrb[27].mxu0 }
 0x505   : > { %v2431_v21 = vadd.f32 %v2886_v62, %v2430_v20  ;;  %3312 = vmatprep.mubr.msk.f32.mxu0 %vm697_vm1, %v2443_v16 }
 0x506   : > { %3313 = vmatmul.mubr.msk.f32.gmra.mrb[32].mxu0 %vm697_vm1, %v2444_v18  ;;  %v2446_v23 = vmax.f32 %v2436_v19, 0.0 }
 0x507   : > { %v2445_v22 = vmax.f32 %v2431_v21, 0.0 }
 0x509   : > { %3315 = vmatprep.mubr.msk.f32.mxu0 %vm697_vm1, %v2445_v22 }
 0x50a   : > { %3316 = vmatmul.mubr.msk.f32.gmra.mrb[34].mxu0 %vm697_vm1, %v2446_v23 }
 0x5d1   : > { %v3308_v25 = vpop.f32.mrb[28].mxu0 }
 0x5d2   : > { %v2554_v26 = vadd.f32 %v3308_v25, %v2895_v24  ;;  %v2548_v27 = vpop.f32.mrb[29].mxu0 }
 0x5d3   : > { %v2549_v28 = vadd.f32 %v2895_v24, %v2548_v27 }
 0x5d4   : > { %v2588_v29 = vmax.f32 %v2554_v26, 0.0 }
 0x5d5   : > { %v2587_v1 = vmax.f32 %v2549_v28, 0.0  ;;  %v3311_v30 = vpop.f32.mrb[30].mxu0 }
 0x5d6   : > { %2596 = vst [vmem:[%s541_s15 + $0x8] sm:$0xff] %v2588_v29  ;;  %v2564_v31 = vadd.f32 %v3311_v30, %v2895_v24  ;;  %v2558_v32 = vpop.f32.mrb[31].mxu0 }
 0x5d7   : > { %2595 = vst [vmem:[%s541_s15] sm:$0xff] %v2587_v1  ;;  %v2559_v33 = vadd.f32 %v2895_v24, %v2558_v32 }
 0x5d8   : > { %v2590_v34 = vmax.f32 %v2564_v31, 0.0 }
 0x5d9   : > { %v2589_v35 = vmax.f32 %v2559_v33, 0.0  ;;  %v3314_v36 = vpop.f32.mrb[32].mxu0 }
 0x5da   : > { %2598 = vst [vmem:[%s541_s15 + $0x18] sm:$0xff] %v2590_v34  ;;  %v2574_v37 = vadd.f32 %v3314_v36, %v2895_v24  ;;  %v2568_v38 = vpop.f32.mrb[33].mxu0 }
 0x5db   : > { %2597 = vst [vmem:[%s541_s15 + $0x10] sm:$0xff] %v2589_v35  ;;  %v2569_v39 = vadd.f32 %v2895_v24, %v2568_v38 }
 0x5dc   : > { %v2592_v40 = vmax.f32 %v2574_v37, 0.0 }
 0x5dd   : > { %v2591_v41 = vmax.f32 %v2569_v39, 0.0  ;;  %v3317_v42 = vpop.f32.mrb[34].mxu0 }
 0x5de   : > { %2600 = vst [vmem:[%s541_s15 + $0x28] sm:$0xff] %v2592_v40  ;;  %v2584_v43 = vadd.f32 %v3317_v42, %v2895_v24  ;;  %v2578_v44 = vpop.f32.mrb[35].mxu0 }
 0x5df   : > { %2599 = vst [vmem:[%s541_s15 + $0x20] sm:$0xff] %v2591_v41  ;;  %v2579_v45 = vadd.f32 %v2895_v24, %v2578_v44 }
 0x5e0   : > { %v2594_v46 = vmax.f32 %v2584_v43, 0.0 }
 0x5e1   : > { %v2593_v47 = vmax.f32 %v2579_v45, 0.0 }
 0x5e2   : > { %2602 = vst [vmem:[%s541_s15 + $0x38] sm:$0xff] %v2594_v46 }
 0x5e3   : > { %2601 = vst [vmem:[%s541_s15 + $0x30] sm:$0xff] %v2593_v47 }
 0x5e4 PF: > { %p26_p7 = scmp.ge.s32.totalorder %s4312_s16, 8   ;;  %s4667_s17 = smov %s3967_s18 }
 0x5e5   : > { %s4668_s18 = smov %s3971_s19  ;;  %s4669_s19 = smov %s4324_s26 }
 0x5e6   : > { %s4670_s20 = smov %s4312_s16  ;;  %28 = sbr.rel (!%p26_p7) target bundleno = 12 (0xc), region = 152 }
 0x5ed   :  { %2624 = vsyncpa [#allocation4], 1 }
 0x5ee   :  { %2626 = vsyncpa [#allocation4 + $0x1], 1 }
 0x5ef   :  { %2627 = vsyncpa [#allocation6], 1 }
 0x5f0   :  { %2628 = vsyncpa [#allocation9], 1 }
 0x5f1   :  { %2629 = vsyncpa [#allocation12], 1 }
 0x5f2   :  { %2630 = vsyncpa [#allocation15], 1 }
 0x5f3   :  { %2631 = vsyncpa [#allocation18], 1 }

// kernel: decoder_forward.3
= control target key start
LH: loop header
LB: loop body
LE: loop exit
PB: predicated region body
PF: predicated region fallthrough
CT: control target
= control target key end

     0   :  { %s7783_s17 = smov 0   ;;  %s9568_s0 = inlined_call_operand.vmem [shape: f32[6,256,32], index: 0, kind: input, shape index: {}]   ;;  %s9569_s1 = inlined_call_operand.vmem [shape: f32[9,32,32], index: 1, kind: input, shape index: {}]   ;;  %s9570_s2 = inlined_call_operand.vmem [shape: f32[1,32], index: 2, kind: input, shape index: {}]   ;;  %s9571_s3 = inlined_call_operand.vmem [shape: f32[32,32], index: 3, kind: input, shape index: {}]   ;;  %s9572_s4 = inlined_call_operand.vmem [shape: f32[1,32], index: 4, kind: input, shape index: {}]   ;;  %s9573_s5 = inlined_call_operand.vmem [shape: f32[32,32], index: 5, kind: input, shape index: {}]   ;;  %s9574_s6 = inlined_call_operand.vmem [shape: f32[1,32], index: 6, kind: input, shape index: {}]   ;;  %s9575_s7 = inlined_call_operand.vmem [shape: f32[32,128], index: 7, kind: input, shape index: {}]   ;;  %s9576_s8 = inlined_call_operand.vmem [shape: f32[1,128], index: 8, kind: input, shape index: {}]   ;;  %s9577_s9 = inlined_call_operand.vmem [shape: f32[128,128], index: 9, kind: input, shape index: {}]   ;;  %s9578_s10 = inlined_call_operand.vmem [shape: f32[1,128], index: 10, kind: input, shape index: {}]   ;;  %s9579_s11 = inlined_call_operand.vmem [shape: f32[6,256,128], index: 11, kind: output, shape index: {}]  }
   0x1 LB: > { %s5715_s18 = sadd.s32 4294967295, %s7720_s17   ;;  %p5719_p0 = scmp.ge.s32.totalorder %s7720_s17, 1  ;;  %s7720_s17 = sphi %s7783_s17, %s21_s17  }
   0x2   : > { %p337_p1 = scmp.lt.s32.totalorder %s7720_s17, 7 }
   0x4   : > { %p338_p2 = pnand %p5719_p0, %p337_p1 }
   0x6   : > { %341 = sbr.rel (%p338_p2) target bundleno = 1480 (0x5c8), region = 64 }
   0xd   : > { %v5724_v0 = vld [vmem:[%s9569_s1 + $0x60] sm:$0xff]  ;;  %v5725_v1 = vld [vmem:[%s9569_s1 + $0x68] sm:$0xff]  ;;  %v5726_v2 = vld [vmem:[%s9569_s1 + $0x70] sm:$0xff]  ;;  %p7802_p3 = scmp.lt.s32.totalorder %s5715_s18, 5  ;;  %vm419_vm0 = vcmask 261120   ;;  %v7722_v5 = vmov 0.0  }
   0xe   : > { %v7381_v3 = vpack.c.bf16 %v5725_v1, %v5724_v0  ;;  %v5727_v4 = vld [vmem:[%s9569_s1 + $0x78] sm:$0xff]  ;;  %423 = vst.msk [vmem:[#allocation2 + $0x18] sm:$0xff] %vm419_vm0, %v7722_v5  ;;  %424 = vst.msk [vmem:[#allocation2 + $0x20] sm:$0xff] %vm419_vm0, %v7722_v5  ;;  %v940_v7 = vld [vmem:[%s9569_s1] sm:$0xff] }
   0xf   : > { %421 = vst.msk [vmem:[#allocation2 + $0x8] sm:$0xff] %vm419_vm0, %v7722_v5  ;;  %422 = vst.msk [vmem:[#allocation2 + $0x10] sm:$0xff] %vm419_vm0, %v7722_v5  ;;  %v7385_v6 = vpack.c.bf16 %v5727_v4, %v5726_v2  ;;  %s9633_s18 = smov (!%p7802_p3, %s5715_s18), 5  ;;  %v941_v8 = vld [vmem:[%s9569_s1 + $0x8] sm:$0xff]  ;;  %v5832_v9 = vld [vmem:[%s9569_s1 + $0x80] sm:$0xff] }
  0x10   : > { %425 = vst.msk [vmem:[#allocation2 + $0x28] sm:$0xff] %vm419_vm0, %v7722_v5  ;;  %426 = vst.msk [vmem:[#allocation2 + $0x30] sm:$0xff] %vm419_vm0, %v7722_v5  ;;  %7382 = vmatprep.subr.bf16.mxu0 %v7381_v3  ;;  %7509 = vmatprep.subr.bf16.mxu1 %v7381_v3  ;;  %v5833_v10 = vld [vmem:[%s9569_s1 + $0x88] sm:$0xff]  ;;  %s6147_s19 = sshll.u32 %s9633_s18, 8  ;;  %v7873_v11 = vpack.c.bf16 %v941_v8, %v940_v7  ;;  %v942_v25 = vld [vmem:[%s9569_s1 + $0x10] sm:$0xff] }
  0x11   : > { %427 = vst.msk [vmem:[#allocation2 + $0x38] sm:$0xff] %vm419_vm0, %v7722_v5  ;;  %428 = vst.msk [vmem:[#allocation2 + $0x40] sm:$0xff] %vm419_vm0, %v7722_v5  ;;  %7384 = vmatpush3.bf16.msra.mxu0 %v7381_v3  ;;  %7511 = vmatpush3.bf16.msra.mxu1 %v7381_v3  ;;  %s7871_s22 = scalar_lea.vmem %s9568_s0, %s6147_s19  ;;  %v7875_v12 = vpack.c.bf16 %v5833_v10, %v5832_v9  ;;  %v943_v26 = vld [vmem:[%s9569_s1 + $0x18] sm:$0xff]  ;;  %v5834_v39 = vld [vmem:[%s9569_s1 + $0x90] sm:$0xff]  ;;  %s9499_s16 = scalar_lea.vmem %s9579_s11, %s6147_s19 }
  0x12   : > { %429 = vst.msk [vmem:[#allocation2 + $0x48] sm:$0xff] %vm419_vm0, %v7722_v5  ;;  %430 = vst.msk [vmem:[#allocation2 + $0x50] sm:$0xff] %vm419_vm0, %v7722_v5  ;;  %7386 = vmatprep.subr.bf16.mxu0 %v7385_v6  ;;  %7510 = vmatprep.subr.bf16.mxu1 %v7385_v6  ;;  %v387_v13 = vld [vmem:[%s7871_s22] sm:$0xff]  ;;  %v402_v14 = vld [vmem:[%s7871_s22 + $0x78] sm:$0xff]  ;;  %v7393_v43 = vpack.c.bf16 %v943_v26, %v942_v25 }
  0x13   : > { %431 = vst.msk [vmem:[#allocation2 + $0x58] sm:$0xff] %vm419_vm0, %v7722_v5  ;;  %432 = vst.msk [vmem:[#allocation2 + $0x60] sm:$0xff] %vm419_vm0, %v7722_v5  ;;  %v403_v15 = vld [vmem:[%s7871_s22 + $0x80] sm:$0xff]  ;;  %v388_v16 = vld [vmem:[%s7871_s22 + $0x8] sm:$0xff] }
  0x14   : > { %433 = vst.msk [vmem:[#allocation2 + $0x68] sm:$0xff] %vm419_vm0, %v7722_v5  ;;  %434 = vst.msk [vmem:[#allocation2 + $0x70] sm:$0xff] %vm419_vm0, %v7722_v5  ;;  %v404_v17 = vld [vmem:[%s7871_s22 + $0x88] sm:$0xff]  ;;  %v389_v18 = vld [vmem:[%s7871_s22 + $0x10] sm:$0xff] }
  0x15   : > { %435 = vst.msk [vmem:[#allocation2 + $0x78] sm:$0xff] %vm419_vm0, %v7722_v5  ;;  %436 = vst.msk [vmem:[#allocation2 + $0x80] sm:$0xff] %vm419_vm0, %v7722_v5  ;;  %7388 = vmatpush3.bf16.msra.mxu0 %v7385_v6  ;;  %7512 = vmatpush3.bf16.msra.mxu1 %v7385_v6  ;;  %v405_v19 = vld [vmem:[%s7871_s22 + $0x90] sm:$0xff]  ;;  %v390_v20 = vld [vmem:[%s7871_s22 + $0x18] sm:$0xff] }
  0x16   : > { %437 = vst.msk [vmem:[#allocation2 + $0x88] sm:$0xff] %vm419_vm0, %v7722_v5  ;;  %438 = vst.msk [vmem:[#allocation2 + $0x90] sm:$0xff] %vm419_vm0, %v7722_v5  ;;  %v406_v21 = vld [vmem:[%s7871_s22 + $0x98] sm:$0xff]  ;;  %7390 = vmatprep.subr.bf16.mxu0 %v7873_v11  ;;  %v391_v22 = vld [vmem:[%s7871_s22 + $0x20] sm:$0xff]  ;;  %7406 = vmatprep.subr.bf16.mxu1 %v7875_v12 }
  0x17   : > { %439 = vst.msk [vmem:[#allocation2 + $0x98] sm:$0xff] %vm419_vm0, %v7722_v5  ;;  %440 = vst.msk [vmem:[#allocation2 + $0xa0] sm:$0xff] %vm419_vm0, %v7722_v5  ;;  %v407_v23 = vld [vmem:[%s7871_s22 + $0xa0] sm:$0xff]  ;;  %v392_v24 = vld [vmem:[%s7871_s22 + $0x28] sm:$0xff] }
  0x18   : > { %441 = vst.msk [vmem:[#allocation2 + $0xa8] sm:$0xff] %vm419_vm0, %v7722_v5  ;;  %442 = vst.msk [vmem:[#allocation2 + $0xb0] sm:$0xff] %vm419_vm0, %v7722_v5  ;;  %v408_v27 = vld [vmem:[%s7871_s22 + $0xa8] sm:$0xff]  ;;  %v393_v28 = vld [vmem:[%s7871_s22 + $0x30] sm:$0xff] }
  0x19   : > { %443 = vst.msk [vmem:[#allocation2 + $0xb8] sm:$0xff] %vm419_vm0, %v7722_v5  ;;  %444 = vst.msk [vmem:[#allocation2 + $0xc0] sm:$0xff] %vm419_vm0, %v7722_v5  ;;  %v409_v29 = vld [vmem:[%s7871_s22 + $0xb0] sm:$0xff]  ;;  %v394_v30 = vld [vmem:[%s7871_s22 + $0x38] sm:$0xff] }
  0x1a   : > { %445 = vst.msk [vmem:[#allocation2 + $0xc8] sm:$0xff] %vm419_vm0, %v7722_v5  ;;  %446 = vst.msk [vmem:[#allocation2 + $0xd0] sm:$0xff] %vm419_vm0, %v7722_v5  ;;  %v410_v31 = vld [vmem:[%s7871_s22 + $0xb8] sm:$0xff]  ;;  %v395_v32 = vld [vmem:[%s7871_s22 + $0x40] sm:$0xff] }
  0x1b   : > { %447 = vst.msk [vmem:[#allocation2 + $0xd8] sm:$0xff] %vm419_vm0, %v7722_v5  ;;  %448 = vst.msk [vmem:[#allocation2 + $0xe0] sm:$0xff] %vm419_vm0, %v7722_v5  ;;  %v411_v33 = vld [vmem:[%s7871_s22 + $0xc0] sm:$0xff]  ;;  %v396_v34 = vld [vmem:[%s7871_s22 + $0x48] sm:$0xff] }
  0x1c   : > { %449 = vst.msk [vmem:[#allocation2 + $0xe8] sm:$0xff] %vm419_vm0, %v7722_v5  ;;  %450 = vst.msk [vmem:[#allocation2 + $0xf0] sm:$0xff] %vm419_vm0, %v7722_v5  ;;  %v412_v35 = vld [vmem:[%s7871_s22 + $0xc8] sm:$0xff]  ;;  %v397_v36 = vld [vmem:[%s7871_s22 + $0x50] sm:$0xff] }
  0x1d   : > { %451 = vst.msk [vmem:[#allocation2 + $0xf8] sm:$0xff] %vm419_vm0, %v7722_v5  ;;  %452 = vst.msk [vmem:[#allocation2 + $0x100] sm:$0xff] %vm419_vm0, %v7722_v5  ;;  %v413_v37 = vld [vmem:[%s7871_s22 + $0xd0] sm:$0xff]  ;;  %v398_v38 = vld [vmem:[%s7871_s22 + $0x58] sm:$0xff] }
  0x1e   : > { %453 = vst.msk [vmem:[#allocation2 + $0x108] sm:$0xff] %vm419_vm0, %v7722_v5  ;;  %454 = vst.msk [vmem:[#allocation2 + $0x110] sm:$0xff] %vm419_vm0, %v7722_v5  ;;  %v5835_v40 = vld [vmem:[%s9569_s1 + $0x98] sm:$0xff]  ;;  %v5792_v49 = vld [vmem:[%s9569_s1 + $0xc0] sm:$0xff] }
  0x1f   : > { %455 = vst.msk [vmem:[#allocation2 + $0x118] sm:$0xff] %vm419_vm0, %v7722_v5  ;;  %456 = vst.msk [vmem:[#allocation2 + $0x120] sm:$0xff] %vm419_vm0, %v7722_v5  ;;  %v414_v44 = vld [vmem:[%s7871_s22 + $0xd8] sm:$0xff]  ;;  %v5793_v50 = vld [vmem:[%s9569_s1 + $0xc8] sm:$0xff]  ;;  %v7409_v55 = vpack.c.bf16 %v5835_v40, %v5834_v39 }
  0x20   : > { %457 = vst.msk [vmem:[#allocation2 + $0x128] sm:$0xff] %vm419_vm0, %v7722_v5  ;;  %458 = vst.msk [vmem:[#allocation2 + $0x130] sm:$0xff] %vm419_vm0, %v7722_v5  ;;  %v7981_v56 = vpack.c.bf16 %v5793_v50, %v5792_v49  ;;  %v5828_v57 = vld [vmem:[%s9569_s1 + $0x20] sm:$0xff]  ;;  %v5829_v58 = vld [vmem:[%s9569_s1 + $0x28] sm:$0xff] }
  0x21   : > { %459 = vst.msk [vmem:[#allocation2 + $0x20] sm:$0xff] %vm419_vm0, %v387_v13  ;;  %474 = vst.msk [vmem:[#allocation2 + $0x98] sm:$0xff] %vm419_vm0, %v402_v14  ;;  %v399_v63 = vld [vmem:[%s7871_s22 + $0x60] sm:$0xff]  ;;  %v8007_v1 = vpack.c.bf16 %v5829_v58, %v5828_v57  ;;  %v400_v2 = vld [vmem:[%s7871_s22 + $0x68] sm:$0xff] }
  0x22   : > { %475 = vst.msk [vmem:[#allocation2 + $0xa0] sm:$0xff] %vm419_vm0, %v403_v15  ;;  %460 = vst.msk [vmem:[#allocation2 + $0x28] sm:$0xff] %vm419_vm0, %v388_v16  ;;  %v415_v0 = vld [vmem:[%s7871_s22 + $0xe0] sm:$0xff]  ;;  %v416_v3 = vld [vmem:[%s7871_s22 + $0xe8] sm:$0xff] }
  0x23   : > { %476 = vst.msk [vmem:[#allocation2 + $0xa8] sm:$0xff] %vm419_vm0, %v404_v17  ;;  %461 = vst.msk [vmem:[#allocation2 + $0x30] sm:$0xff] %vm419_vm0, %v389_v18  ;;  %v401_v4 = vld [vmem:[%s7871_s22 + $0x70] sm:$0xff]  ;;  %v418_v6 = vld [vmem:[%s7871_s22 + $0xf8] sm:$0xff] }
  0x24   : > { %477 = vst.msk [vmem:[#allocation2 + $0xb0] sm:$0xff] %vm419_vm0, %v405_v19  ;;  %462 = vst.msk [vmem:[#allocation2 + $0x38] sm:$0xff] %vm419_vm0, %v390_v20  ;;  %v417_v5 = vld [vmem:[%s7871_s22 + $0xf0] sm:$0xff] }
  0x25   : > { %478 = vst.msk [vmem:[#allocation2 + $0xb8] sm:$0xff] %vm419_vm0, %v406_v21  ;;  %463 = vst.msk [vmem:[#allocation2 + $0x40] sm:$0xff] %vm419_vm0, %v391_v22  ;;  %v908_v25 = vld [vmem:[#allocation2 + $0xf] sm:$0xff] }
  0x26   : > { %479 = vst.msk [vmem:[#allocation2 + $0xc0] sm:$0xff] %vm419_vm0, %v407_v23  ;;  %464 = vst.msk [vmem:[#allocation2 + $0x48] sm:$0xff] %vm419_vm0, %v392_v24 }
  0x27   : > { %480 = vst.msk [vmem:[#allocation2 + $0xc8] sm:$0xff] %vm419_vm0, %v408_v27  ;;  %465 = vst.msk [vmem:[#allocation2 + $0x50] sm:$0xff] %vm419_vm0, %v393_v28  ;;  %v5794_v27 = vld [vmem:[%s9569_s1 + $0xd0] sm:$0xff]  ;;  %v5795_v28 = vld [vmem:[%s9569_s1 + $0xd8] sm:$0xff] }
  0x28   : > { %481 = vst.msk [vmem:[#allocation2 + $0xd0] sm:$0xff] %vm419_vm0, %v409_v29  ;;  %466 = vst.msk [vmem:[#allocation2 + $0x58] sm:$0xff] %vm419_vm0, %v394_v30  ;;  %v7936_v41 = vld [vmem:[#allocation2 + $0x1f] sm:$0xff]  ;;  %v909_v29 = vld [vmem:[#allocation2 + $0x17] sm:$0xff] }
  0x29   : > { %482 = vst.msk [vmem:[#allocation2 + $0xd8] sm:$0xff] %vm419_vm0, %v410_v31  ;;  %467 = vst.msk [vmem:[#allocation2 + $0x60] sm:$0xff] %vm419_vm0, %v395_v32  ;;  %v7938_v42 = vld [vmem:[#allocation2 + $0x9f] sm:$0xff]  ;;  %6637 = vmatprep.mubr.msk.f32.mxu0 %vm419_vm0, %v7936_v41  ;;  %v7948_v45 = vld [vmem:[#allocation2 + $0x27] sm:$0xff]  ;;  %v7401_v31 = vpack.c.bf16 %v5795_v28, %v5794_v27 }
  0x2a   : > { %483 = vst.msk [vmem:[#allocation2 + $0xe0] sm:$0xff] %vm419_vm0, %v411_v33  ;;  %468 = vst.msk [vmem:[#allocation2 + $0x68] sm:$0xff] %vm419_vm0, %v396_v34  ;;  %6661 = vmatprep.mubr.msk.f32.mxu1 %vm419_vm0, %v7938_v42  ;;  %v7950_v46 = vld [vmem:[#allocation2 + $0xa7] sm:$0xff]  ;;  %v7952_v47 = vld [vmem:[#allocation2 + $0x2f] sm:$0xff]  ;;  %6638 = vmatmul.mubr.msk.f32.vlgmr.msra.gmra.mrb[0].mxu0 %vm419_vm0, %v7948_v45 }
  0x2b   : > { %484 = vst.msk [vmem:[#allocation2 + $0xe8] sm:$0xff] %vm419_vm0, %v412_v35  ;;  %469 = vst.msk [vmem:[#allocation2 + $0x70] sm:$0xff] %vm419_vm0, %v397_v36  ;;  %6662 = vmatmul.mubr.msk.f32.vlgmr.msra.gmra.mrb[0].mxu1 %vm419_vm0, %v7950_v46  ;;  %v7959_v48 = vld [vmem:[#allocation2 + $0xaf] sm:$0xff]  ;;  %7392 = vmatpush3.bf16.msra.mxu0 %v7873_v11  ;;  %v7970_v51 = vld [vmem:[#allocation2 + $0x37] sm:$0xff] }
  0x2c   : > { %485 = vst.msk [vmem:[#allocation2 + $0xf0] sm:$0xff] %vm419_vm0, %v413_v37  ;;  %470 = vst.msk [vmem:[#allocation2 + $0x78] sm:$0xff] %vm419_vm0, %v398_v38  ;;  %6640 = vmatprep.mubr.msk.f32.mxu0 %vm419_vm0, %v7952_v47  ;;  %v7972_v52 = vld [vmem:[#allocation2 + $0xb7] sm:$0xff]  ;;  %6664 = vmatprep.mubr.msk.f32.mxu1 %vm419_vm0, %v7959_v48  ;;  %v7976_v53 = vld [vmem:[#allocation2 + $0x3f] sm:$0xff] }
  0x2d   : > { %486 = vst.msk [vmem:[#allocation2 + $0xf8] sm:$0xff] %vm419_vm0, %v414_v44  ;;  %v7978_v54 = vld [vmem:[#allocation2 + $0xbf] sm:$0xff]  ;;  %7394 = vmatprep.subr.bf16.mxu0 %v7393_v43  ;;  %7408 = vmatpush3.bf16.msra.mxu1 %v7875_v12  ;;  %v7997_v59 = vld [vmem:[#allocation2 + $0x47] sm:$0xff]  ;;  %471 = vst.msk [vmem:[#allocation2 + $0x80] sm:$0xff] %vm419_vm0, %v399_v63 }
  0x2e   : > { %6641 = vmatmul.mubr.msk.f32.gmra.mrb[2].mxu0 %vm419_vm0, %v7970_v51  ;;  %v7999_v60 = vld [vmem:[#allocation2 + $0xc7] sm:$0xff]  ;;  %v8001_v61 = vld [vmem:[#allocation2 + $0x4f] sm:$0xff]  ;;  %7410 = vmatprep.subr.bf16.mxu1 %v7409_v55  ;;  %487 = vst.msk [vmem:[#allocation2 + $0x100] sm:$0xff] %vm419_vm0, %v415_v0  ;;  %472 = vst.msk [vmem:[#allocation2 + $0x88] sm:$0xff] %vm419_vm0, %v400_v2 }
  0x2f   : > { %6665 = vmatmul.mubr.msk.f32.gmra.mrb[2].mxu1 %vm419_vm0, %v7972_v52  ;;  %6643 = vmatprep.mubr.msk.f32.mxu0 %vm419_vm0, %v7976_v53  ;;  %v8003_v62 = vld [vmem:[#allocation2 + $0xcf] sm:$0xff]  ;;  %488 = vst.msk [vmem:[#allocation2 + $0x108] sm:$0xff] %vm419_vm0, %v416_v3  ;;  %473 = vst.msk [vmem:[#allocation2 + $0x90] sm:$0xff] %vm419_vm0, %v401_v4  ;;  %v8028_v7 = vld [vmem:[#allocation2 + $0x57] sm:$0xff] }
  0x30   : > { %6667 = vmatprep.mubr.msk.f32.mxu1 %vm419_vm0, %v7978_v54  ;;  %7396 = vmatpush3.bf16.msra.mxu0 %v7393_v43  ;;  %v8030_v8 = vld [vmem:[#allocation2 + $0xd7] sm:$0xff]  ;;  %489 = vst.msk [vmem:[#allocation2 + $0x110] sm:$0xff] %vm419_vm0, %v417_v5  ;;  %490 = vst.msk [vmem:[#allocation2 + $0x118] sm:$0xff] %vm419_vm0, %v418_v6  ;;  %v8034_v9 = vld [vmem:[#allocation2 + $0x5f] sm:$0xff] }
  0x31   : > { %7412 = vmatpush3.bf16.msra.mxu1 %v7409_v55  ;;  %7398 = vmatprep.subr.bf16.mxu0 %v7981_v56  ;;  %v8036_v10 = vld [vmem:[#allocation2 + $0xdf] sm:$0xff]  ;;  %v8047_v11 = vld [vmem:[#allocation2 + $0x67] sm:$0xff]  ;;  %v8116_v32 = vld [vmem:[#allocation2 + $0x30] sm:$0xff] }
  0x32   : > { %6644 = vmatmul.mubr.msk.f32.gmra.mrb[4].mxu0 %vm419_vm0, %v7997_v59  ;;  %7414 = vmatprep.subr.bf16.mxu1 %v8007_v1  ;;  %v8049_v12 = vld [vmem:[#allocation2 + $0xe7] sm:$0xff]  ;;  %v8051_v13 = vld [vmem:[#allocation2 + $0x6f] sm:$0xff]  ;;  %v5831_v34 = vld [vmem:[%s9569_s1 + $0x38] sm:$0xff] }
  0x33   : > { %6668 = vmatmul.mubr.msk.f32.gmra.mrb[4].mxu1 %vm419_vm0, %v7999_v60  ;;  %6646 = vmatprep.mubr.msk.f32.mxu0 %vm419_vm0, %v8001_v61  ;;  %v8053_v14 = vld [vmem:[#allocation2 + $0xef] sm:$0xff]  ;;  %v8063_v15 = vld [vmem:[#allocation2 + $0x77] sm:$0xff]  ;;  %v8099_v26 = vld [vmem:[#allocation2 + $0x20] sm:$0xff] }
  0x34   : > { %6670 = vmatprep.mubr.msk.f32.mxu1 %vm419_vm0, %v8003_v62  ;;  %v8065_v16 = vld [vmem:[#allocation2 + $0xf7] sm:$0xff]  ;;  %v8067_v17 = vld [vmem:[#allocation2 + $0x7f] sm:$0xff]  ;;  %v8114_v30 = vld [vmem:[#allocation2 + $0x28] sm:$0xff] }
  0x35   : > { %v8069_v18 = vld [vmem:[#allocation2 + $0xff] sm:$0xff]  ;;  %v8079_v19 = vld [vmem:[#allocation2 + $0x87] sm:$0xff]  ;;  %v5830_v33 = vld [vmem:[%s9569_s1 + $0x30] sm:$0xff] }
  0x36   : > { %6647 = vmatmul.mubr.msk.f32.gmra.mrb[6].mxu0 %vm419_vm0, %v8028_v7  ;;  %v8081_v20 = vld [vmem:[#allocation2 + $0x107] sm:$0xff]  ;;  %v8083_v21 = vld [vmem:[#allocation2 + $0x8f] sm:$0xff]  ;;  %v8095_v23 = vld [vmem:[#allocation2 + $0x97] sm:$0xff]  ;;  %v7417_v39 = vpack.c.bf16 %v5831_v34, %v5830_v33 }
  0x37   : > { %6671 = vmatmul.mubr.msk.f32.gmra.mrb[6].mxu1 %vm419_vm0, %v8030_v8  ;;  %6649 = vmatprep.mubr.msk.f32.mxu0 %vm419_vm0, %v8034_v9  ;;  %v8085_v22 = vld [vmem:[#allocation2 + $0x10f] sm:$0xff]  ;;  %v8097_v24 = vld [vmem:[#allocation2 + $0x117] sm:$0xff]  ;;  %v5940_v35 = vld [vmem:[%s9569_s1 + $0xa0] sm:$0xff] }
  0x38   : > { %6673 = vmatprep.mubr.msk.f32.mxu1 %vm419_vm0, %v8036_v10  ;;  %9592 = vst [vmem:[#allocation3_spill] sm:$0xff] %v8085_v22  ;;  %9593 = vst [vmem:[#allocation4_spill] sm:$0xff] %v8097_v24  ;;  %v5941_v36 = vld [vmem:[%s9569_s1 + $0xa8] sm:$0xff]  ;;  %v8136_v37 = vld [vmem:[#allocation2 + $0x38] sm:$0xff] }
  0x39   : > { %v8140_v38 = vld [vmem:[#allocation2 + $0x40] sm:$0xff]  ;;  %v8143_v40 = vpack.c.bf16 %v5941_v36, %v5940_v35  ;;  %v8159_v44 = vld [vmem:[#allocation2 + $0x48] sm:$0xff]  ;;  %v8161_v49 = vld [vmem:[#allocation2 + $0x50] sm:$0xff] }
  0x3a   : > { %6650 = vmatmul.mubr.msk.f32.gmra.mrb[8].mxu0 %vm419_vm0, %v8047_v11  ;;  %v5900_v43 = vld [vmem:[%s9569_s1 + $0xe0] sm:$0xff]  ;;  %v8189_v57 = vld [vmem:[#allocation2 + $0x70] sm:$0xff]  ;;  %v8199_v58 = vld [vmem:[#allocation2 + $0x78] sm:$0xff] }
  0x3b   : > { %6674 = vmatmul.mubr.msk.f32.gmra.mrb[8].mxu1 %vm419_vm0, %v8049_v12  ;;  %6652 = vmatprep.mubr.msk.f32.mxu0 %vm419_vm0, %v8051_v13  ;;  %v8176_v55 = vld [vmem:[#allocation2 + $0x60] sm:$0xff]  ;;  %v8211_v0 = vld [vmem:[#allocation2 + $0x88] sm:$0xff]  ;;  %v8223_v2 = vld [vmem:[#allocation2 + $0x98] sm:$0xff] }
  0x3c   : > { %6676 = vmatprep.mubr.msk.f32.mxu1 %vm419_vm0, %v8053_v14  ;;  %v8201_v63 = vld [vmem:[#allocation2 + $0x80] sm:$0xff]  ;;  %v8235_v4 = vld [vmem:[#allocation2 + $0xa8] sm:$0xff]  ;;  %v8237_v5 = vld [vmem:[#allocation2 + $0xb0] sm:$0xff] }
  0x3d   : > { %v8225_v3 = vld [vmem:[#allocation2 + $0xa0] sm:$0xff]  ;;  %v8247_v6 = vld [vmem:[#allocation2 + $0xb8] sm:$0xff]  ;;  %v8259_v27 = vld [vmem:[#allocation2 + $0xc8] sm:$0xff] }
  0x3e   : > { %6653 = vmatmul.mubr.msk.f32.gmra.mrb[10].mxu0 %vm419_vm0, %v8063_v15  ;;  %v8261_v28 = vld [vmem:[#allocation2 + $0xd0] sm:$0xff]  ;;  %v8283_v33 = vld [vmem:[#allocation2 + $0xe8] sm:$0xff]  ;;  %v8295_v35 = vld [vmem:[#allocation2 + $0xf8] sm:$0xff] }
  0x3f   : > { %6677 = vmatmul.mubr.msk.f32.gmra.mrb[10].mxu1 %vm419_vm0, %v8065_v16  ;;  %6655 = vmatprep.mubr.msk.f32.mxu0 %vm419_vm0, %v8067_v17  ;;  %v8285_v34 = vld [vmem:[#allocation2 + $0xf0] sm:$0xff]  ;;  %9595 = vst [vmem:[#allocation6_spill] sm:$0xff] %v8295_v35  ;;  %v8297_v36 = vld [vmem:[#allocation2 + $0x100] sm:$0xff] }
  0x40   : > { %6679 = vmatprep.mubr.msk.f32.mxu1 %vm419_vm0, %v8069_v18  ;;  %9594 = vst [vmem:[#allocation5_spill] sm:$0xff] %v8285_v34  ;;  %9596 = vst [vmem:[#allocation7_spill] sm:$0xff] %v8297_v36 }
  0x42   : > { %6656 = vmatmul.mubr.msk.f32.gmra.mrb[12].mxu0 %vm419_vm0, %v8079_v19 }
  0x43   : > { %6680 = vmatmul.mubr.msk.f32.gmra.mrb[12].mxu1 %vm419_vm0, %v8081_v20  ;;  %6658 = vmatprep.mubr.msk.f32.mxu0 %vm419_vm0, %v8083_v21 }
  0x44   : > { %6682 = vmatprep.mubr.msk.f32.mxu1 %vm419_vm0, %v8085_v22  ;;  %v5903_v22 = vld [vmem:[%s9569_s1 + $0xf8] sm:$0xff] }
  0x46   : > { %6659 = vmatmul.mubr.msk.f32.gmra.mrb[14].mxu0 %vm419_vm0, %v8095_v23 }
  0x47   : > { %6683 = vmatmul.mubr.msk.f32.gmra.mrb[14].mxu1 %vm419_vm0, %v8097_v24  ;;  %6693 = vmatprep.mubr.msk.f32.mxu0 %vm419_vm0, %v908_v25  ;;  %v8249_v25 = vld [vmem:[#allocation2 + $0xc0] sm:$0xff]  ;;  %v5943_v24 = vld [vmem:[%s9569_s1 + $0xb8] sm:$0xff] }
  0x48   : > { %6805 = vmatprep.mubr.msk.f32.mxu1 %vm419_vm0, %v8099_v26 }
  0x4a   : > { %6694 = vmatmul.mubr.msk.f32.vlgmr.msra.gmra.mrb[0].mxu0 %vm419_vm0, %v909_v29  ;;  %v8271_v29 = vld [vmem:[#allocation2 + $0xd8] sm:$0xff] }
  0x4b   : > { %6806 = vmatmul.mubr.msk.f32.vlgmr.msra.gmra.mrb[16].mxu1 %vm419_vm0, %v8114_v30  ;;  %7400 = vmatpush3.bf16.msra.mxu0 %v7981_v56  ;;  %v8187_v56 = vld [vmem:[#allocation2 + $0x68] sm:$0xff] }
  0x4c   : > { %6696 = vmatprep.mubr.msk.f32.mxu0 %vm419_vm0, %v7936_v41  ;;  %6808 = vmatprep.mubr.msk.f32.mxu1 %vm419_vm0, %v8116_v32  ;;  %v5901_v41 = vld [vmem:[%s9569_s1 + $0xe8] sm:$0xff] }
  0x4d   : > { %7402 = vmatprep.subr.bf16.mxu0 %v7401_v31  ;;  %7416 = vmatpush3.bf16.msra.mxu1 %v8007_v1  ;;  %v8163_v50 = vpack.c.bf16 %v5901_v41, %v5900_v43  ;;  %v8213_v1 = vld [vmem:[#allocation2 + $0x90] sm:$0xff]  ;;  %v8319_v41 = vld [vmem:[#allocation2 + $0x118] sm:$0xff] }
  0x4e   : > { %6697 = vmatmul.mubr.msk.f32.gmra.mrb[2].mxu0 %vm419_vm0, %v7948_v45  ;;  %7418 = vmatprep.subr.bf16.mxu1 %v7417_v39  ;;  %v8174_v45 = vld [vmem:[#allocation2 + $0x58] sm:$0xff]  ;;  %v8309_v43 = vld [vmem:[#allocation2 + $0x110] sm:$0xff] }
  0x4f   : > { %6809 = vmatmul.mubr.msk.f32.gmra.mrb[18].mxu1 %vm419_vm0, %v8136_v37  ;;  %6699 = vmatprep.mubr.msk.f32.mxu0 %vm419_vm0, %v7952_v47  ;;  %9598 = vst [vmem:[#allocation9_spill] sm:$0xff] %v8309_v43 }
  0x50   : > { %6811 = vmatprep.mubr.msk.f32.mxu1 %vm419_vm0, %v8140_v38  ;;  %7404 = vmatpush3.bf16.msra.mxu0 %v7401_v31  ;;  %v8273_v31 = vld [vmem:[#allocation2 + $0xe0] sm:$0xff] }
  0x51   : > { %7420 = vmatpush3.bf16.msra.mxu1 %v7417_v39  ;;  %7430 = vmatprep.subr.bf16.mxu0 %v8143_v40  ;;  %v8307_v39 = vld [vmem:[#allocation2 + $0x108] sm:$0xff] }
  0x52   : > { %6700 = vmatmul.mubr.msk.f32.gmra.mrb[4].mxu0 %vm419_vm0, %v7970_v51  ;;  %7422 = vmatprep.subr.bf16.mxu1 %v8163_v50  ;;  %9597 = vst [vmem:[#allocation8_spill] sm:$0xff] %v8307_v39 }
  0x53   : > { %6812 = vmatmul.mubr.msk.f32.gmra.mrb[20].mxu1 %vm419_vm0, %v8159_v44  ;;  %6702 = vmatprep.mubr.msk.f32.mxu0 %vm419_vm0, %v7976_v53 }
  0x54   : > { %6814 = vmatprep.mubr.msk.f32.mxu1 %vm419_vm0, %v8161_v49 }
  0x56   : > { %6703 = vmatmul.mubr.msk.f32.gmra.mrb[6].mxu0 %vm419_vm0, %v7997_v59 }
  0x57   : > { %6815 = vmatmul.mubr.msk.f32.gmra.mrb[22].mxu1 %vm419_vm0, %v8174_v45  ;;  %6705 = vmatprep.mubr.msk.f32.mxu0 %vm419_vm0, %v8001_v61 }
  0x58   : > { %6817 = vmatprep.mubr.msk.f32.mxu1 %vm419_vm0, %v8176_v55 }
  0x5a   : > { %6706 = vmatmul.mubr.msk.f32.gmra.mrb[8].mxu0 %vm419_vm0, %v8028_v7 }
  0x5b   : > { %6818 = vmatmul.mubr.msk.f32.gmra.mrb[24].mxu1 %vm419_vm0, %v8187_v56  ;;  %6708 = vmatprep.mubr.msk.f32.mxu0 %vm419_vm0, %v8034_v9 }
  0x5c   : > { %6820 = vmatprep.mubr.msk.f32.mxu1 %vm419_vm0, %v8189_v57 }
  0x5e   : > { %6709 = vmatmul.mubr.msk.f32.gmra.mrb[10].mxu0 %vm419_vm0, %v8047_v11 }
  0x5f   : > { %6821 = vmatmul.mubr.msk.f32.gmra.mrb[26].mxu1 %vm419_vm0, %v8199_v58  ;;  %6711 = vmatprep.mubr.msk.f32.mxu0 %vm419_vm0, %v8051_v13 }
  0x60   : > { %6823 = vmatprep.mubr.msk.f32.mxu1 %vm419_vm0, %v8201_v63 }
  0x62   : > { %6712 = vmatmul.mubr.msk.f32.gmra.mrb[12].mxu0 %vm419_vm0, %v8063_v15 }
  0x63   : > { %6824 = vmatmul.mubr.msk.f32.gmra.mrb[28].mxu1 %vm419_vm0, %v8211_v0  ;;  %6714 = vmatprep.mubr.msk.f32.mxu0 %vm419_vm0, %v8067_v17 }
  0x64   : > { %6826 = vmatprep.mubr.msk.f32.mxu1 %vm419_vm0, %v8213_v1 }
  0x66   : > { %6715 = vmatmul.mubr.msk.f32.gmra.mrb[14].mxu0 %vm419_vm0, %v8079_v19 }
  0x67   : > { %6827 = vmatmul.mubr.msk.f32.gmra.mrb[30].mxu1 %vm419_vm0, %v8223_v2  ;;  %6717 = vmatprep.mubr.msk.f32.mxu0 %vm419_vm0, %v8083_v21 }
  0x68   : > { %6829 = vmatprep.mubr.msk.f32.mxu1 %vm419_vm0, %v8225_v3 }
  0x6a   : > { %6718 = vmatmul.mubr.msk.f32.gmra.mrb[16].mxu0 %vm419_vm0, %v8095_v23 }
  0x6b   : > { %6830 = vmatmul.mubr.msk.f32.gmra.mrb[32].mxu1 %vm419_vm0, %v8235_v4  ;;  %6720 = vmatprep.mubr.msk.f32.mxu0 %vm419_vm0, %v7938_v42 }
  0x6c   : > { %6832 = vmatprep.mubr.msk.f32.mxu1 %vm419_vm0, %v8237_v5 }
  0x6e   : > { %6721 = vmatmul.mubr.msk.f32.gmra.mrb[18].mxu0 %vm419_vm0, %v7950_v46 }
  0x6f   : > { %6833 = vmatmul.mubr.msk.f32.gmra.mrb[34].mxu1 %vm419_vm0, %v8247_v6  ;;  %6723 = vmatprep.mubr.msk.f32.mxu0 %vm419_vm0, %v7959_v48 }
  0x70   : > { %6835 = vmatprep.mubr.msk.f32.mxu1 %vm419_vm0, %v8249_v25 }
  0x72   : > { %6724 = vmatmul.mubr.msk.f32.gmra.mrb[20].mxu0 %vm419_vm0, %v7972_v52 }
  0x73   : > { %6836 = vmatmul.mubr.msk.f32.gmra.mrb[36].mxu1 %vm419_vm0, %v8259_v27  ;;  %6726 = vmatprep.mubr.msk.f32.mxu0 %vm419_vm0, %v7978_v54 }
  0x74   : > { %6838 = vmatprep.mubr.msk.f32.mxu1 %vm419_vm0, %v8261_v28 }
  0x76   : > { %6727 = vmatmul.mubr.msk.f32.gmra.mrb[22].mxu0 %vm419_vm0, %v7999_v60 }
  0x77   : > { %6839 = vmatmul.mubr.msk.f32.gmra.mrb[38].mxu1 %vm419_vm0, %v8271_v29  ;;  %6729 = vmatprep.mubr.msk.f32.mxu0 %vm419_vm0, %v8003_v62 }
  0x78   : > { %6841 = vmatprep.mubr.msk.f32.mxu1 %vm419_vm0, %v8273_v31 }
  0x7a   : > { %6730 = vmatmul.mubr.msk.f32.gmra.mrb[24].mxu0 %vm419_vm0, %v8030_v8 }
  0x7b   : > { %6842 = vmatmul.mubr.msk.f32.gmra.mrb[40].mxu1 %vm419_vm0, %v8283_v33  ;;  %6732 = vmatprep.mubr.msk.f32.mxu0 %vm419_vm0, %v8036_v10 }
  0x7c   : > { %6844 = vmatprep.mubr.msk.f32.mxu1 %vm419_vm0, %v8285_v34  ;;  %v5902_v34 = vld [vmem:[%s9569_s1 + $0xf0] sm:$0xff] }
  0x7e   : > { %6733 = vmatmul.mubr.msk.f32.gmra.mrb[26].mxu0 %vm419_vm0, %v8049_v12 }
  0x7f   : > { %6845 = vmatmul.mubr.msk.f32.gmra.mrb[42].mxu1 %vm419_vm0, %v8295_v35  ;;  %6735 = vmatprep.mubr.msk.f32.mxu0 %vm419_vm0, %v8053_v14  ;;  %v2053_v35 = vld [vmem:[#allocation2 + $0x10] sm:$0xff] }
  0x80   : > { %6847 = vmatprep.mubr.msk.f32.mxu1 %vm419_vm0, %v8297_v36  ;;  %v5942_v36 = vld [vmem:[%s9569_s1 + $0xb0] sm:$0xff] }
  0x82   : > { %6736 = vmatmul.mubr.msk.f32.gmra.mrb[28].mxu0 %vm419_vm0, %v8065_v16 }
  0x83   : > { %6848 = vmatmul.mubr.msk.f32.gmra.mrb[44].mxu1 %vm419_vm0, %v8307_v39  ;;  %6738 = vmatprep.mubr.msk.f32.mxu0 %vm419_vm0, %v8069_v18  ;;  %v7433_v39 = vpack.c.bf16 %v5943_v24, %v5942_v36  ;;  %v5937_v24 = vld [vmem:[%s9569_s1 + $0x48] sm:$0xff] }
  0x84   : > { %6850 = vmatprep.mubr.msk.f32.mxu1 %vm419_vm0, %v8309_v43  ;;  %v2054_v43 = vld [vmem:[#allocation2 + $0x18] sm:$0xff] }
  0x86   : > { %6739 = vmatmul.mubr.msk.f32.gmra.mrb[30].mxu0 %vm419_vm0, %v8081_v20 }
  0x87   : > { %6851 = vmatmul.mubr.msk.f32.gmra.mrb[46].mxu1 %vm419_vm0, %v8319_v41  ;;  %6749 = vmatprep.mubr.msk.f32.mxu0 %vm419_vm0, %v7952_v47  ;;  %v5936_v47 = vld [vmem:[%s9569_s1 + $0x40] sm:$0xff] }
  0x88   : > { %6861 = vmatprep.mubr.msk.f32.mxu1 %vm419_vm0, %v2053_v35  ;;  %v8355_v35 = vpack.c.bf16 %v5937_v24, %v5936_v47 }
  0x8a   : > { %6750 = vmatmul.mubr.msk.f32.vlgmr.msra.gmra.mrb[0].mxu0 %vm419_vm0, %v7970_v51  ;;  %v7425_v51 = vpack.c.bf16 %v5903_v22, %v5902_v34  ;;  %v8554_v22 = vld [vmem:[#allocation2 + $0x79] sm:$0xff] }
  0x8b   : > { %6862 = vmatmul.mubr.msk.f32.vlgmr.msra.gmra.mrb[16].mxu1 %vm419_vm0, %v2054_v43  ;;  %7432 = vmatpush3.bf16.msra.mxu0 %v8143_v40  ;;  %v8592_v40 = vld [vmem:[#allocation2 + $0xb1] sm:$0xff]  ;;  %v3072_v43 = vld [vmem:[#allocation2 + $0x19] sm:$0xff] }
  0x8c   : > { %6752 = vmatprep.mubr.msk.f32.mxu0 %vm419_vm0, %v7976_v53  ;;  %6864 = vmatprep.mubr.msk.f32.mxu1 %vm419_vm0, %v8099_v26  ;;  %v9602_v53 = vld [vmem:[#allocation6_spill] sm:$0xff]  ;;  %v6011_v34 = vld [vmem:[%s9569_s1 + $0x118] sm:$0xff] }
  0x8d   : > { %7434 = vmatprep.subr.bf16.mxu0 %v7433_v39  ;;  %7424 = vmatpush3.bf16.msra.mxu1 %v8163_v50  ;;  %v8566_v26 = vld [vmem:[#allocation2 + $0x89] sm:$0xff] }
  0x8e   : > { %6753 = vmatmul.mubr.msk.f32.gmra.mrb[2].mxu0 %vm419_vm0, %v7997_v59  ;;  %7426 = vmatprep.subr.bf16.mxu1 %v7425_v51  ;;  %v1534_v59 = vld [vmem:[#allocation2 + $0x127] sm:$0xff] }
  0x8f   : > { %6865 = vmatmul.mubr.msk.f32.gmra.mrb[18].mxu1 %vm419_vm0, %v8114_v30  ;;  %6755 = vmatprep.mubr.msk.f32.mxu0 %vm419_vm0, %v8001_v61  ;;  %v5938_v61 = vld [vmem:[%s9569_s1 + $0x50] sm:$0xff] }
  0x90   : > { %6867 = vmatprep.mubr.msk.f32.mxu1 %vm419_vm0, %v8116_v32  ;;  %7436 = vmatpush3.bf16.msra.mxu0 %v7433_v39  ;;  %v8568_v30 = vld [vmem:[#allocation2 + $0x91] sm:$0xff]  ;;  %v8614_v50 = vld [vmem:[#allocation2 + $0xc9] sm:$0xff] }
  0x91   : > { %7428 = vmatpush3.bf16.msra.mxu1 %v7425_v51  ;;  %7438 = vmatprep.subr.bf16.mxu0 %v8355_v35 }
  0x92   : > { %6756 = vmatmul.mubr.msk.f32.gmra.mrb[4].mxu0 %vm419_vm0, %v8028_v7  ;;  %v9604_v7 = vld [vmem:[#allocation8_spill] sm:$0xff] }
  0x93   : > { %6868 = vmatmul.mubr.msk.f32.gmra.mrb[20].mxu1 %vm419_vm0, %v8136_v37  ;;  %6758 = vmatprep.mubr.msk.f32.mxu0 %vm419_vm0, %v8034_v9 }
  0x94   : > { %6870 = vmatprep.mubr.msk.f32.mxu1 %vm419_vm0, %v8140_v38 }
  0x96   : > { %6759 = vmatmul.mubr.msk.f32.gmra.mrb[6].mxu0 %vm419_vm0, %v8047_v11  ;;  %v6008_v11 = vld [vmem:[%s9569_s1 + $0x100] sm:$0xff] }
  0x97   : > { %6871 = vmatmul.mubr.msk.f32.gmra.mrb[22].mxu1 %vm419_vm0, %v8159_v44  ;;  %6761 = vmatprep.mubr.msk.f32.mxu0 %vm419_vm0, %v8051_v13  ;;  %v8501_v13 = vld [vmem:[#allocation2 + $0x39] sm:$0xff] }
  0x98   : > { %6873 = vmatprep.mubr.msk.f32.mxu1 %vm419_vm0, %v8161_v49 }
  0x9a   : > { %6762 = vmatmul.mubr.msk.f32.gmra.mrb[8].mxu0 %vm419_vm0, %v8063_v15 }
  0x9b   : > { %6874 = vmatmul.mubr.msk.f32.gmra.mrb[24].mxu1 %vm419_vm0, %v8174_v45  ;;  %6764 = vmatprep.mubr.msk.f32.mxu0 %vm419_vm0, %v8067_v17  ;;  %v8519_v17 = vld [vmem:[#allocation2 + $0x51] sm:$0xff] }
  0x9c   : > { %6876 = vmatprep.mubr.msk.f32.mxu1 %vm419_vm0, %v8176_v55 }
  0x9e   : > { %6765 = vmatmul.mubr.msk.f32.gmra.mrb[10].mxu0 %vm419_vm0, %v8079_v19  ;;  %v8532_v19 = vld [vmem:[#allocation2 + $0x61] sm:$0xff] }
  0x9f   : > { %6877 = vmatmul.mubr.msk.f32.gmra.mrb[26].mxu1 %vm419_vm0, %v8187_v56  ;;  %6767 = vmatprep.mubr.msk.f32.mxu0 %vm419_vm0, %v8083_v21  ;;  %v8544_v21 = vld [vmem:[#allocation2 + $0x71] sm:$0xff] }
  0xa0   : > { %6879 = vmatprep.mubr.msk.f32.mxu1 %vm419_vm0, %v8189_v57 }
  0xa2   : > { %6768 = vmatmul.mubr.msk.f32.gmra.mrb[12].mxu0 %vm419_vm0, %v8095_v23  ;;  %v8556_v23 = vld [vmem:[#allocation2 + $0x81] sm:$0xff] }
  0xa3   : > { %6880 = vmatmul.mubr.msk.f32.gmra.mrb[28].mxu1 %vm419_vm0, %v8199_v58  ;;  %6770 = vmatprep.mubr.msk.f32.mxu0 %vm419_vm0, %v7938_v42  ;;  %v9599_v42 = vld [vmem:[#allocation3_spill] sm:$0xff] }
  0xa4   : > { %6882 = vmatprep.mubr.msk.f32.mxu1 %vm419_vm0, %v8201_v63 }
  0xa6   : > { %6771 = vmatmul.mubr.msk.f32.gmra.mrb[14].mxu0 %vm419_vm0, %v7950_v46  ;;  %v9600_v46 = vld [vmem:[#allocation5_spill] sm:$0xff] }
  0xa7   : > { %6883 = vmatmul.mubr.msk.f32.gmra.mrb[30].mxu1 %vm419_vm0, %v8211_v0  ;;  %6773 = vmatprep.mubr.msk.f32.mxu0 %vm419_vm0, %v7959_v48  ;;  %v1533_v48 = vld [vmem:[#allocation2 + $0x11f] sm:$0xff] }
  0xa8   : > { %6885 = vmatprep.mubr.msk.f32.mxu1 %vm419_vm0, %v8213_v1 }
  0xaa   : > { %6774 = vmatmul.mubr.msk.f32.gmra.mrb[16].mxu0 %vm419_vm0, %v7972_v52  ;;  %v9601_v52 = vld [vmem:[#allocation4_spill] sm:$0xff] }
  0xab   : > { %6886 = vmatmul.mubr.msk.f32.gmra.mrb[32].mxu1 %vm419_vm0, %v8223_v2  ;;  %6776 = vmatprep.mubr.msk.f32.mxu0 %vm419_vm0, %v7978_v54  ;;  %v9603_v54 = vld [vmem:[#allocation7_spill] sm:$0xff] }
  0xac   : > { %6888 = vmatprep.mubr.msk.f32.mxu1 %vm419_vm0, %v8225_v3 }
  0xae   : > { %6777 = vmatmul.mubr.msk.f32.gmra.mrb[18].mxu0 %vm419_vm0, %v7999_v60  ;;  %v8469_v60 = vld [vmem:[#allocation2 + $0x21] sm:$0xff] }
  0xaf   : > { %6889 = vmatmul.mubr.msk.f32.gmra.mrb[34].mxu1 %vm419_vm0, %v8235_v4  ;;  %6779 = vmatprep.mubr.msk.f32.mxu0 %vm419_vm0, %v8003_v62  ;;  %v5939_v62 = vld [vmem:[%s9569_s1 + $0x58] sm:$0xff] }
  0xb0   : > { %6891 = vmatprep.mubr.msk.f32.mxu1 %vm419_vm0, %v8237_v5  ;;  %v7441_v9 = vpack.c.bf16 %v5939_v62, %v5938_v61  ;;  %v4290_v61 = vld [vmem:[%s9571_s3 + $0x10] sm:$0xff] }
  0xb2   : > { %6780 = vmatmul.mubr.msk.f32.gmra.mrb[20].mxu0 %vm419_vm0, %v8030_v8  ;;  %v8484_v8 = vld [vmem:[#allocation2 + $0x29] sm:$0xff] }
  0xb3   : > { %6892 = vmatmul.mubr.msk.f32.gmra.mrb[36].mxu1 %vm419_vm0, %v8247_v6  ;;  %6782 = vmatprep.mubr.msk.f32.mxu0 %vm419_vm0, %v8036_v10  ;;  %v8486_v10 = vld [vmem:[#allocation2 + $0x31] sm:$0xff] }
  0xb4   : > { %6894 = vmatprep.mubr.msk.f32.mxu1 %vm419_vm0, %v8249_v25 }
  0xb6   : > { %6783 = vmatmul.mubr.msk.f32.gmra.mrb[22].mxu0 %vm419_vm0, %v8049_v12  ;;  %v6009_v12 = vld [vmem:[%s9569_s1 + $0x108] sm:$0xff] }
  0xb7   : > { %6895 = vmatmul.mubr.msk.f32.gmra.mrb[38].mxu1 %vm419_vm0, %v8259_v27  ;;  %6785 = vmatprep.mubr.msk.f32.mxu0 %vm419_vm0, %v8053_v14  ;;  %v8505_v14 = vld [vmem:[#allocation2 + $0x41] sm:$0xff]  ;;  %v8507_v15 = vpack.c.bf16 %v6009_v12, %v6008_v11 }
  0xb8   : > { %6897 = vmatprep.mubr.msk.f32.mxu1 %vm419_vm0, %v8261_v28 }
  0xba   : > { %6786 = vmatmul.mubr.msk.f32.gmra.mrb[24].mxu0 %vm419_vm0, %v8065_v16  ;;  %v8517_v16 = vld [vmem:[#allocation2 + $0x49] sm:$0xff] }
  0xbb   : > { %6898 = vmatmul.mubr.msk.f32.gmra.mrb[40].mxu1 %vm419_vm0, %v8271_v29  ;;  %6788 = vmatprep.mubr.msk.f32.mxu0 %vm419_vm0, %v8069_v18  ;;  %v8530_v18 = vld [vmem:[#allocation2 + $0x59] sm:$0xff] }
  0xbc   : > { %6900 = vmatprep.mubr.msk.f32.mxu1 %vm419_vm0, %v8273_v31 }
  0xbe   : > { %6789 = vmatmul.mubr.msk.f32.gmra.mrb[26].mxu0 %vm419_vm0, %v8081_v20  ;;  %v8542_v20 = vld [vmem:[#allocation2 + $0x69] sm:$0xff] }
  0xbf   : > { %6901 = vmatmul.mubr.msk.f32.gmra.mrb[42].mxu1 %vm419_vm0, %v8283_v33  ;;  %6791 = vmatprep.mubr.msk.f32.mxu0 %vm419_vm0, %v9599_v42 }
  0xc0   : > { %6903 = vmatprep.mubr.msk.f32.mxu1 %vm419_vm0, %v9600_v46 }
  0xc2   : > { %6792 = vmatmul.mubr.msk.f32.gmra.mrb[28].mxu0 %vm419_vm0, %v9601_v52 }
  0xc3   : > { %6904 = vmatmul.mubr.msk.f32.gmra.mrb[44].mxu1 %vm419_vm0, %v9602_v53  ;;  %6794 = vmatprep.mubr.msk.f32.mxu0 %vm419_vm0, %v1533_v48 }
  0xc4   : > { %6906 = vmatprep.mubr.msk.f32.mxu1 %vm419_vm0, %v9603_v54 }
  0xc6   : > { %6795 = vmatmul.mubr.msk.f32.gmra.mrb[30].mxu0 %vm419_vm0, %v1534_v59  ;;  %v4288_v59 = vld [vmem:[%s9571_s3] sm:$0xff] }
  0xc7   : > { %6907 = vmatmul.mubr.msk.f32.gmra.mrb[46].mxu1 %vm419_vm0, %v9604_v7  ;;  %6973 = vmatprep.mubr.msk.f32.mxu0 %vm419_vm0, %v8469_v60 }
  0xc8   : > { %6917 = vmatprep.mubr.msk.f32.mxu1 %vm419_vm0, %v8116_v32  ;;  %v8578_v32 = vld [vmem:[#allocation2 + $0x99] sm:$0xff] }
  0xca   : > { %6974 = vmatmul.mubr.msk.f32.vlgmr.msra.gmra.mrb[32].mxu0 %vm419_vm0, %v8484_v8 }
  0xcb   : > { %6918 = vmatmul.mubr.msk.f32.vlgmr.msra.gmra.mrb[16].mxu1 %vm419_vm0, %v8136_v37  ;;  %7440 = vmatpush3.bf16.msra.mxu0 %v8355_v35  ;;  %v8580_v37 = vld [vmem:[#allocation2 + $0xa1] sm:$0xff] }
  0xcc   : > { %6920 = vmatprep.mubr.msk.f32.mxu1 %vm419_vm0, %v8140_v38  ;;  %6976 = vmatprep.mubr.msk.f32.mxu0 %vm419_vm0, %v8486_v10  ;;  %v8590_v38 = vld [vmem:[#allocation2 + $0xa9] sm:$0xff] }
  0xcd   : > { %7442 = vmatprep.subr.bf16.mxu0 %v7441_v9 }
  0xce   : > { %6977 = vmatmul.mubr.msk.f32.gmra.mrb[34].mxu0 %vm419_vm0, %v8501_v13 }
  0xcf   : > { %6921 = vmatmul.mubr.msk.f32.gmra.mrb[18].mxu1 %vm419_vm0, %v8159_v44  ;;  %6979 = vmatprep.mubr.msk.f32.mxu0 %vm419_vm0, %v8505_v14  ;;  %v8602_v44 = vld [vmem:[#allocation2 + $0xb9] sm:$0xff] }
  0xd0   : > { %6923 = vmatprep.mubr.msk.f32.mxu1 %vm419_vm0, %v8161_v49  ;;  %7444 = vmatpush3.bf16.msra.mxu0 %v7441_v9  ;;  %v8604_v49 = vld [vmem:[#allocation2 + $0xc1] sm:$0xff] }
  0xd1   : > { %7446 = vmatprep.subr.bf16.mxu0 %v8507_v15 }
  0xd2   : > { %6980 = vmatmul.mubr.msk.f32.gmra.mrb[36].mxu0 %vm419_vm0, %v8517_v16 }
  0xd3   : > { %6924 = vmatmul.mubr.msk.f32.gmra.mrb[20].mxu1 %vm419_vm0, %v8174_v45  ;;  %6982 = vmatprep.mubr.msk.f32.mxu0 %vm419_vm0, %v8519_v17  ;;  %v8616_v45 = vld [vmem:[#allocation2 + $0xd1] sm:$0xff] }
  0xd4   : > { %6926 = vmatprep.mubr.msk.f32.mxu1 %vm419_vm0, %v8176_v55  ;;  %v8626_v55 = vld [vmem:[#allocation2 + $0xd9] sm:$0xff] }
  0xd6   : > { %6983 = vmatmul.mubr.msk.f32.gmra.mrb[38].mxu0 %vm419_vm0, %v8530_v18 }
  0xd7   : > { %6927 = vmatmul.mubr.msk.f32.gmra.mrb[22].mxu1 %vm419_vm0, %v8187_v56  ;;  %6985 = vmatprep.mubr.msk.f32.mxu0 %vm419_vm0, %v8532_v19  ;;  %v8628_v56 = vld [vmem:[#allocation2 + $0xe1] sm:$0xff] }
  0xd8   : > { %6929 = vmatprep.mubr.msk.f32.mxu1 %vm419_vm0, %v8189_v57  ;;  %v8638_v57 = vld [vmem:[#allocation2 + $0xe9] sm:$0xff] }
  0xda   : > { %6986 = vmatmul.mubr.msk.f32.gmra.mrb[40].mxu0 %vm419_vm0, %v8542_v20 }
  0xdb   : > { %6930 = vmatmul.mubr.msk.f32.gmra.mrb[24].mxu1 %vm419_vm0, %v8199_v58  ;;  %6988 = vmatprep.mubr.msk.f32.mxu0 %vm419_vm0, %v8544_v21  ;;  %v8640_v58 = vld [vmem:[#allocation2 + $0xf1] sm:$0xff] }
  0xdc   : > { %6932 = vmatprep.mubr.msk.f32.mxu1 %vm419_vm0, %v8201_v63  ;;  %v8650_v63 = vld [vmem:[#allocation2 + $0xf9] sm:$0xff] }
  0xde   : > { %6989 = vmatmul.mubr.msk.f32.gmra.mrb[42].mxu0 %vm419_vm0, %v8554_v22 }
  0xdf   : > { %6933 = vmatmul.mubr.msk.f32.gmra.mrb[26].mxu1 %vm419_vm0, %v8211_v0  ;;  %6991 = vmatprep.mubr.msk.f32.mxu0 %vm419_vm0, %v8556_v23  ;;  %v8652_v0 = vld [vmem:[#allocation2 + $0x101] sm:$0xff] }
  0xe0   : > { %6935 = vmatprep.mubr.msk.f32.mxu1 %vm419_vm0, %v8213_v1 }
  0xe2   : > { %6992 = vmatmul.mubr.msk.f32.gmra.mrb[44].mxu0 %vm419_vm0, %v8566_v26 }
  0xe3   : > { %6936 = vmatmul.mubr.msk.f32.gmra.mrb[28].mxu1 %vm419_vm0, %v8223_v2  ;;  %6994 = vmatprep.mubr.msk.f32.mxu0 %vm419_vm0, %v8568_v30 }
  0xe4   : > { %6938 = vmatprep.mubr.msk.f32.mxu1 %vm419_vm0, %v8225_v3  ;;  %v9605_v3 = vld [vmem:[#allocation9_spill] sm:$0xff] }
  0xe6   : > { %6995 = vmatmul.mubr.msk.f32.gmra.mrb[46].mxu0 %vm419_vm0, %v8578_v32 }
  0xe7   : > { %6939 = vmatmul.mubr.msk.f32.gmra.mrb[30].mxu1 %vm419_vm0, %v8235_v4  ;;  %6997 = vmatprep.mubr.msk.f32.mxu0 %vm419_vm0, %v8580_v37  ;;  %v8666_v4 = vld [vmem:[#allocation2 + $0x109] sm:$0xff] }
  0xe8   : > { %6941 = vmatprep.mubr.msk.f32.mxu1 %vm419_vm0, %v8237_v5  ;;  %v2679_v5 = vld [vmem:[#allocation2 + $0x120] sm:$0xff] }
  0xea   : > { %6998 = vmatmul.mubr.msk.f32.gmra.mrb[48].mxu0 %vm419_vm0, %v8590_v38 }
  0xeb   : > { %6942 = vmatmul.mubr.msk.f32.gmra.mrb[32].mxu1 %vm419_vm0, %v8247_v6  ;;  %7000 = vmatprep.mubr.msk.f32.mxu0 %vm419_vm0, %v8592_v40  ;;  %v8668_v6 = vld [vmem:[#allocation2 + $0x111] sm:$0xff] }
  0xec   : > { %6944 = vmatprep.mubr.msk.f32.mxu1 %vm419_vm0, %v8249_v25 }
  0xee   : > { %7001 = vmatmul.mubr.msk.f32.gmra.mrb[50].mxu0 %vm419_vm0, %v8602_v44 }
  0xef   : > { %6945 = vmatmul.mubr.msk.f32.gmra.mrb[34].mxu1 %vm419_vm0, %v8259_v27  ;;  %7003 = vmatprep.mubr.msk.f32.mxu0 %vm419_vm0, %v8604_v49 }
  0xf0   : > { %6947 = vmatprep.mubr.msk.f32.mxu1 %vm419_vm0, %v8261_v28  ;;  %v2680_v28 = vld [vmem:[#allocation2 + $0x128] sm:$0xff] }
  0xf2   : > { %7004 = vmatmul.mubr.msk.f32.gmra.mrb[52].mxu0 %vm419_vm0, %v8614_v50 }
  0xf3   : > { %6948 = vmatmul.mubr.msk.f32.gmra.mrb[36].mxu1 %vm419_vm0, %v8271_v29  ;;  %7006 = vmatprep.mubr.msk.f32.mxu0 %vm419_vm0, %v8616_v45  ;;  %v8681_v29 = vld [vmem:[#allocation2 + $0x119] sm:$0xff] }
  0xf4   : > { %6950 = vmatprep.mubr.msk.f32.mxu1 %vm419_vm0, %v8273_v31  ;;  %v3071_v31 = vld [vmem:[#allocation2 + $0x11] sm:$0xff] }
  0xf6   : > { %7007 = vmatmul.mubr.msk.f32.gmra.mrb[54].mxu0 %vm419_vm0, %v8626_v55 }
  0xf7   : > { %6951 = vmatmul.mubr.msk.f32.gmra.mrb[38].mxu1 %vm419_vm0, %v8283_v33  ;;  %7009 = vmatprep.mubr.msk.f32.mxu0 %vm419_vm0, %v8628_v56  ;;  %v6010_v33 = vld [vmem:[%s9569_s1 + $0x110] sm:$0xff] }
  0xf8   : > { %6953 = vmatprep.mubr.msk.f32.mxu1 %vm419_vm0, %v9600_v46 }
  0xfa   : > { %7010 = vmatmul.mubr.msk.f32.gmra.mrb[56].mxu0 %vm419_vm0, %v8638_v57 }
  0xfb   : > { %6954 = vmatmul.mubr.msk.f32.gmra.mrb[40].mxu1 %vm419_vm0, %v9602_v53  ;;  %7012 = vmatprep.mubr.msk.f32.mxu0 %vm419_vm0, %v8640_v58 }
  0xfc   : > { %6956 = vmatprep.mubr.msk.f32.mxu1 %vm419_vm0, %v9603_v54 }
  0xfe   : > { %v8654_v1 = vpop.f32.mrb[0].mxu1  ;;  %7013 = vmatmul.mubr.msk.f32.gmra.mrb[58].mxu0 %vm419_vm0, %v8650_v63 }
  0xff   : > { %6957 = vmatmul.mubr.msk.f32.gmra.mrb[42].mxu1 %vm419_vm0, %v9604_v7  ;;  %v8660_v2 = vpop.f32.mrb[1].mxu1  ;;  %7015 = vmatprep.mubr.msk.f32.mxu0 %vm419_vm0, %v8652_v0  ;;  %v4291_v7 = vld [vmem:[%s9571_s3 + $0x18] sm:$0xff] }
 0x100   : > { %6959 = vmatprep.mubr.msk.f32.mxu1 %vm419_vm0, %v9605_v3  ;;  %v7457_v9 = vpack.c.bf16 %v4291_v7, %v4290_v61 }
 0x102   : > { %v8670_v25 = vpop.f32.mrb[2].mxu1  ;;  %7016 = vmatmul.mubr.msk.f32.gmra.mrb[60].mxu0 %vm419_vm0, %v8666_v4 }
 0x103   : > { %6960 = vmatmul.mubr.msk.f32.gmra.mrb[44].mxu1 %vm419_vm0, %v8319_v41  ;;  %v8676_v27 = vpop.f32.mrb[3].mxu1  ;;  %7018 = vmatprep.mubr.msk.f32.mxu0 %vm419_vm0, %v8668_v6  ;;  %v7449_v41 = vpack.c.bf16 %v6011_v34, %v6010_v33 }
 0x104   : > { %6962 = vmatprep.mubr.msk.f32.mxu1 %vm419_vm0, %v2679_v5 }
 0x106   : > { %v8689_v36 = vpop.f32.mrb[4].mxu1  ;;  %7019 = vmatmul.mubr.msk.f32.gmra.mrb[62].mxu0 %vm419_vm0, %v8681_v29 }
 0x107   : > { %6963 = vmatmul.mubr.msk.f32.gmra.mrb[46].mxu1 %vm419_vm0, %v2680_v28  ;;  %v8694_v39 = vpop.f32.mrb[5].mxu1  ;;  %7029 = vmatprep.mubr.msk.f32.mxu0 %vm419_vm0, %v3071_v31 }
 0x10a   : > { %v8697_v47 = vpop.f32.mrb[6].mxu1  ;;  %7030 = vmatmul.mubr.msk.f32.vlgmr.msra.gmra.mrb[32].mxu0 %vm419_vm0, %v3072_v43 }
 0x10b   : > { %v8700_v24 = vpop.f32.mrb[7].mxu1  ;;  %7448 = vmatpush3.bf16.msra.mxu0 %v8507_v15  ;;  %7032 = vmatprep.mubr.msk.f32.mxu0 %vm419_vm0, %v8469_v60  ;;  %v4289_v60 = vld [vmem:[%s9571_s3 + $0x8] sm:$0xff] }
 0x10c   : > { %7450 = vmatprep.subr.bf16.mxu0 %v7449_v41  ;;  %v7453_v62 = vpack.c.bf16 %v4289_v60, %v4288_v59 }
 0x10e   : > { %v8705_v51 = vpop.f32.mrb[8].mxu1  ;;  %7033 = vmatmul.mubr.msk.f32.gmra.mrb[34].mxu0 %vm419_vm0, %v8484_v8  ;;  %7454 = vmatprep.subr.bf16.mxu1 %v7453_v62 }
 0x10f   : > { %v8709_v35 = vpop.f32.mrb[9].mxu1  ;;  %7035 = vmatprep.mubr.msk.f32.mxu0 %vm419_vm0, %v8486_v10  ;;  %7452 = vmatpush3.bf16.msra.mxu0 %v7449_v41 }
 0x110   : > { %7456 = vmatpush3.bf16.msra.mxu1 %v7453_v62 }
 0x111   : > { %7458 = vmatprep.subr.bf16.mxu1 %v7457_v9 }
 0x112   : > { %v8713_v42 = vpop.f32.mrb[10].mxu1  ;;  %7036 = vmatmul.mubr.msk.f32.gmra.mrb[36].mxu0 %vm419_vm0, %v8501_v13 }
 0x113   : > { %v8717_v46 = vpop.f32.mrb[11].mxu1  ;;  %7038 = vmatprep.mubr.msk.f32.mxu0 %vm419_vm0, %v8505_v14 }
 0x114   : > { %7460 = vmatpush3.bf16.msra.mxu1 %v7457_v9 }
 0x116   : > { %v8721_v48 = vpop.f32.mrb[12].mxu1  ;;  %7039 = vmatmul.mubr.msk.f32.gmra.mrb[38].mxu0 %vm419_vm0, %v8517_v16 }
 0x117   : > { %v8725_v52 = vpop.f32.mrb[13].mxu1  ;;  %7041 = vmatprep.mubr.msk.f32.mxu0 %vm419_vm0, %v8519_v17 }
 0x11a   : > { %v8729_v53 = vpop.f32.mrb[14].mxu1  ;;  %7042 = vmatmul.mubr.msk.f32.gmra.mrb[40].mxu0 %vm419_vm0, %v8530_v18 }
 0x11b   : > { %v8733_v54 = vpop.f32.mrb[15].mxu1  ;;  %7044 = vmatprep.mubr.msk.f32.mxu0 %vm419_vm0, %v8532_v19 }
 0x11e   : > { %7045 = vmatmul.mubr.msk.f32.gmra.mrb[42].mxu0 %vm419_vm0, %v8542_v20 }
 0x11f   : > { %7047 = vmatprep.mubr.msk.f32.mxu0 %vm419_vm0, %v8544_v21 }
 0x122   : > { %7048 = vmatmul.mubr.msk.f32.gmra.mrb[44].mxu0 %vm419_vm0, %v8554_v22 }
 0x123   : > { %7050 = vmatprep.mubr.msk.f32.mxu0 %vm419_vm0, %v8556_v23 }
 0x126   : > { %7051 = vmatmul.mubr.msk.f32.gmra.mrb[46].mxu0 %vm419_vm0, %v8566_v26 }
 0x127   : > { %7053 = vmatprep.mubr.msk.f32.mxu0 %vm419_vm0, %v8568_v30 }
 0x12a   : > { %7054 = vmatmul.mubr.msk.f32.gmra.mrb[48].mxu0 %vm419_vm0, %v8578_v32 }
 0x12b   : > { %7056 = vmatprep.mubr.msk.f32.mxu0 %vm419_vm0, %v8580_v37 }
 0x12e   : > { %7057 = vmatmul.mubr.msk.f32.gmra.mrb[50].mxu0 %vm419_vm0, %v8590_v38 }
 0x12f   : > { %7059 = vmatprep.mubr.msk.f32.mxu0 %vm419_vm0, %v8592_v40 }
 0x132   : > { %7060 = vmatmul.mubr.msk.f32.gmra.mrb[52].mxu0 %vm419_vm0, %v8602_v44 }
 0x133   : > { %7062 = vmatprep.mubr.msk.f32.mxu0 %vm419_vm0, %v8604_v49 }
 0x136   : > { %7063 = vmatmul.mubr.msk.f32.gmra.mrb[54].mxu0 %vm419_vm0, %v8614_v50 }
 0x137   : > { %7065 = vmatprep.mubr.msk.f32.mxu0 %vm419_vm0, %v8616_v45 }
 0x13a   : > { %7066 = vmatmul.mubr.msk.f32.gmra.mrb[56].mxu0 %vm419_vm0, %v8626_v55 }
 0x13b   : > { %7068 = vmatprep.mubr.msk.f32.mxu0 %vm419_vm0, %v8628_v56 }
 0x13e   : > { %7069 = vmatmul.mubr.msk.f32.gmra.mrb[58].mxu0 %vm419_vm0, %v8638_v57 }
 0x13f   : > { %7071 = vmatprep.mubr.msk.f32.mxu0 %vm419_vm0, %v8640_v58 }
 0x142   : > { %7072 = vmatmul.mubr.msk.f32.gmra.mrb[60].mxu0 %vm419_vm0, %v8650_v63 }
 0x143   : > { %7074 = vmatprep.mubr.msk.f32.mxu0 %vm419_vm0, %v8652_v0 }
 0x146   : > { %7075 = vmatmul.mubr.msk.f32.gmra.mrb[62].mxu0 %vm419_vm0, %v8666_v4 }
 0x147   : > { %7085 = vmatprep.mubr.msk.f32.mxu0 %vm419_vm0, %v8486_v10 }
 0x14a   : > { %7086 = vmatmul.mubr.msk.f32.vlgmr.msra.gmra.mrb[32].mxu0 %vm419_vm0, %v8501_v13 }
 0x14b   : > { %7088 = vmatprep.mubr.msk.f32.mxu0 %vm419_vm0, %v8505_v14 }
 0x14e   : > { %7089 = vmatmul.mubr.msk.f32.gmra.mrb[34].mxu0 %vm419_vm0, %v8517_v16 }
 0x14f   : > { %7091 = vmatprep.mubr.msk.f32.mxu0 %vm419_vm0, %v8519_v17 }
 0x152   : > { %7092 = vmatmul.mubr.msk.f32.gmra.mrb[36].mxu0 %vm419_vm0, %v8530_v18 }
 0x153   : > { %7094 = vmatprep.mubr.msk.f32.mxu0 %vm419_vm0, %v8532_v19 }
 0x156   : > { %7095 = vmatmul.mubr.msk.f32.gmra.mrb[38].mxu0 %vm419_vm0, %v8542_v20 }
 0x157   : > { %7097 = vmatprep.mubr.msk.f32.mxu0 %vm419_vm0, %v8544_v21 }
 0x15a   : > { %7098 = vmatmul.mubr.msk.f32.gmra.mrb[40].mxu0 %vm419_vm0, %v8554_v22 }
 0x15b   : > { %7100 = vmatprep.mubr.msk.f32.mxu0 %vm419_vm0, %v8556_v23 }
 0x15d   : > { %v8813_v8 = vpop.f32.mrb[0].mxu0 }
 0x15e   : > { %v8815_v10 = vpop.f32.mrb[1].mxu0  ;;  %7101 = vmatmul.mubr.msk.f32.gmra.mrb[42].mxu0 %vm419_vm0, %v8566_v26 }
 0x15f   : > { %7103 = vmatprep.mubr.msk.f32.mxu0 %vm419_vm0, %v8568_v30 }
 0x161   : > { %v8821_v11 = vpop.f32.mrb[2].mxu0 }
 0x162   : > { %v8823_v12 = vpop.f32.mrb[3].mxu0  ;;  %7104 = vmatmul.mubr.msk.f32.gmra.mrb[44].mxu0 %vm419_vm0, %v8578_v32 }
 0x163   : > { %7106 = vmatprep.mubr.msk.f32.mxu0 %vm419_vm0, %v8580_v37 }
 0x165   : > { %v8829_v13 = vpop.f32.mrb[4].mxu0 }
 0x166   : > { %v8831_v14 = vpop.f32.mrb[5].mxu0  ;;  %7107 = vmatmul.mubr.msk.f32.gmra.mrb[46].mxu0 %vm419_vm0, %v8590_v38 }
 0x167   : > { %7109 = vmatprep.mubr.msk.f32.mxu0 %vm419_vm0, %v8592_v40  ;;  %v3697_v40 = vld [vmem:[#allocation2 + $0x121] sm:$0xff] }
 0x169   : > { %v8837_v15 = vpop.f32.mrb[6].mxu0 }
 0x16a   : > { %v8839_v16 = vpop.f32.mrb[7].mxu0  ;;  %7110 = vmatmul.mubr.msk.f32.gmra.mrb[48].mxu0 %vm419_vm0, %v8602_v44 }
 0x16b   : > { %7112 = vmatprep.mubr.msk.f32.mxu0 %vm419_vm0, %v8604_v49 }
 0x16d   : > { %v8845_v17 = vpop.f32.mrb[8].mxu0 }
 0x16e   : > { %v8847_v18 = vpop.f32.mrb[9].mxu0  ;;  %7113 = vmatmul.mubr.msk.f32.gmra.mrb[50].mxu0 %vm419_vm0, %v8614_v50 }
 0x16f   : > { %7115 = vmatprep.mubr.msk.f32.mxu0 %vm419_vm0, %v8616_v45 }
 0x171   : > { %v8853_v19 = vpop.f32.mrb[10].mxu0 }
 0x172   : > { %v8855_v20 = vpop.f32.mrb[11].mxu0  ;;  %7116 = vmatmul.mubr.msk.f32.gmra.mrb[52].mxu0 %vm419_vm0, %v8626_v55  ;;  %v3698_v55 = vld [vmem:[#allocation2 + $0x129] sm:$0xff] }
 0x173   : > { %7118 = vmatprep.mubr.msk.f32.mxu0 %vm419_vm0, %v8628_v56 }
 0x175   : > { %v8861_v21 = vpop.f32.mrb[12].mxu0 }
 0x176   : > { %v8863_v22 = vpop.f32.mrb[13].mxu0  ;;  %7119 = vmatmul.mubr.msk.f32.gmra.mrb[54].mxu0 %vm419_vm0, %v8638_v57 }
 0x177   : > { %7121 = vmatprep.mubr.msk.f32.mxu0 %vm419_vm0, %v8640_v58 }
 0x179   : > { %v8869_v23 = vpop.f32.mrb[14].mxu0 }
 0x17a   : > { %v8871_v26 = vpop.f32.mrb[15].mxu0  ;;  %7122 = vmatmul.mubr.msk.f32.gmra.mrb[56].mxu0 %vm419_vm0, %v8650_v63 }
 0x17b   : > { %7124 = vmatprep.mubr.msk.f32.mxu0 %vm419_vm0, %v8652_v0 }
 0x17d   : > { %v6775_v30 = vpop.f32.mrb[16].mxu0 }
 0x17e   : > { %v8878_v32 = vadd.f32 %v6775_v30, %v8654_v1  ;;  %v1782_v37 = vpop.f32.mrb[17].mxu0  ;;  %7125 = vmatmul.mubr.msk.f32.gmra.mrb[58].mxu0 %vm419_vm0, %v8666_v4 }
 0x17f   : > { %v8883_v38 = vadd.f32 %v1782_v37, %v8660_v2  ;;  %7127 = vmatprep.mubr.msk.f32.mxu0 %vm419_vm0, %v8668_v6 }
 0x181   : > { %v6778_v44 = vpop.f32.mrb[18].mxu0 }
 0x182   : > { %v8888_v49 = vadd.f32 %v6778_v44, %v8670_v25  ;;  %v1792_v50 = vpop.f32.mrb[19].mxu0  ;;  %7128 = vmatmul.mubr.msk.f32.gmra.mrb[60].mxu0 %vm419_vm0, %v8681_v29  ;;  %v491_v25 = vlaneseq }
 0x183   : > { %v8893_v45 = vadd.f32 %v1792_v50, %v8676_v27  ;;  %7130 = vmatprep.mubr.msk.f32.mxu0 %vm419_vm0, %v3697_v40 }
 0x184   : > { %v8918_v33 = vshrl.u32 %v491_v25, 7 }
 0x185   : > { %v6781_v56 = vpop.f32.mrb[20].mxu0 }
 0x186   : > { %v8897_v57 = vadd.f32 %v6781_v56, %v8689_v36  ;;  %v1802_v58 = vpop.f32.mrb[21].mxu0  ;;  %7131 = vmatmul.mubr.msk.f32.gmra.mrb[62].mxu0 %vm419_vm0, %v3698_v55  ;;  %v528_v41 = vand.u32 15, %v8918_v33  ;;  %v496_v59 = vadd.s32 32, %v8918_v33 }
 0x187   : > { %v8901_v63 = vadd.f32 %v1802_v58, %v8694_v39 }
 0x188   : > { %vm1893_vm1 = vcmp.ge.s32.totalorder %v528_v41, 1  ;;  %v556_v7 = vand.u32 15, %v496_v59 }
 0x189   : > { %v6784_v0 = vpop.f32.mrb[22].mxu0  ;;  %v1989_v61 = vsel %vm1893_vm1, %v8815_v10, 0.0  ;;  %v500_v10 = vadd.s32 64, %v8918_v33 }
 0x18a   : > { %v8904_v1 = vadd.f32 %v6784_v0, %v8697_v47  ;;  %v1812_v2 = vpop.f32.mrb[23].mxu0  ;;  %v494_v47 = vadd.s32 16, %v8918_v33  ;;  %vm1897_vm3 = vcmp.ge.s32.totalorder %v556_v7, 1 }
 0x18b   : > { %v8907_v3 = vadd.f32 %v1812_v2, %v8700_v24  ;;  %v1993_v55 = vsel %vm1897_vm3, %v8831_v14, 0.0  ;;  %v584_v0 = vand.u32 15, %v500_v10  ;;  %v504_v14 = vadd.s32 96, %v8918_v33 }
 0x18d   : > { %v6787_v4 = vpop.f32.mrb[24].mxu0  ;;  %vm1901_vm5 = vcmp.ge.s32.totalorder %v584_v0, 1 }
 0x18e   : > { %v8910_v5 = vadd.f32 %v6787_v4, %v8705_v51  ;;  %v1822_v6 = vpop.f32.mrb[25].mxu0 }
 0x18f   : > { %v8913_v27 = vadd.f32 %v1822_v6, %v8709_v35 }
 0x191   : > { %v6790_v28 = vpop.f32.mrb[26].mxu0 }
 0x192   : > { %v8916_v29 = vadd.f32 %v6790_v28, %v8713_v42  ;;  %v1832_v31 = vpop.f32.mrb[27].mxu0 }
 0x193   : > { %v8921_v34 = vadd.f32 %v1832_v31, %v8717_v46  ;;  %v542_v46 = vand.u32 15, %v494_v47  ;;  %v612_v47 = vand.u32 15, %v504_v14 }
 0x195   : > { %v6793_v36 = vpop.f32.mrb[28].mxu0  ;;  %vm1895_vm2 = vcmp.ge.s32.totalorder %v542_v46, 1  ;;  %vm1905_vm7 = vcmp.ge.s32.totalorder %v612_v47, 1 }
 0x196   : > { %v8924_v39 = vadd.f32 %v6793_v36, %v8721_v48  ;;  %v1842_v43 = vpop.f32.mrb[29].mxu0  ;;  %v1991_v37 = vsel %vm1895_vm2, %v8823_v12, 0.0  ;;  %v502_v12 = vadd.s32 80, %v8918_v33  ;;  %v1997_v36 = vsel %vm1901_vm5, %v8847_v18, 0.0 }
 0x197   : > { %v8929_v24 = vadd.f32 %v1842_v43, %v8725_v52 }
 0x198   : > { %v598_v28 = vand.u32 15, %v502_v12 }
 0x199   : > { %v6796_v51 = vpop.f32.mrb[30].mxu0 }
 0x19a   : > { %v8932_v35 = vadd.f32 %v6796_v51, %v8729_v53  ;;  %v1852_v42 = vpop.f32.mrb[31].mxu0  ;;  %v498_v53 = vadd.s32 48, %v8918_v33  ;;  %vm1903_vm6 = vcmp.ge.s32.totalorder %v598_v28, 1 }
 0x19b   : > { %v8936_v48 = vadd.f32 %v1852_v42, %v8733_v54  ;;  %v1999_v42 = vsel %vm1903_vm6, %v8855_v20, 0.0 }
 0x19c   : > { %v570_v44 = vand.u32 15, %v498_v53 }
 0x19e   : > { %v6919_v60 = vpop.f32.mrb[16].mxu1  ;;  %vm1899_vm4 = vcmp.ge.s32.totalorder %v570_v44, 1 }
 0x19f   : > { %v8940_v62 = vadd.f32 %v6919_v60, %v8813_v8  ;;  %v2848_v52 = vpop.f32.mrb[17].mxu1  ;;  %v1995_v4 = vsel %vm1899_vm4, %v8839_v16, 0.0  ;;  %v506_v16 = vadd.s32 112, %v8918_v33 }
 0x1a0   : > { %v8943_v9 = vadd.f32 %v2848_v52, %v1989_v61  ;;  %v2001_v52 = vsel %vm1905_vm7, %v8863_v22, 0.0 }
 0x1a1   : > { %v626_v60 = vand.u32 15, %v506_v16 }
 0x1a2   : > { %v6922_v30 = vpop.f32.mrb[18].mxu1 }
 0x1a3   : > { %v8947_v40 = vadd.f32 %v6922_v30, %v8821_v11  ;;  %v2858_v54 = vpop.f32.mrb[19].mxu1  ;;  %vm1907_vm8 = vcmp.ge.s32.totalorder %v626_v60, 1 }
 0x1a4   : > { %v8950_v8 = vadd.f32 %v2858_v54, %v1991_v37  ;;  %v2003_v54 = vsel %vm1907_vm8, %v8871_v26, 0.0 }
 0x1a6   : > { %v6925_v50 = vpop.f32.mrb[20].mxu1 }
 0x1a7   : > { %v8954_v56 = vadd.f32 %v6925_v50, %v8829_v13  ;;  %v2868_v58 = vpop.f32.mrb[21].mxu1 }
 0x1a8   : > { %v8957_v11 = vadd.f32 %v2868_v58, %v1993_v55 }
 0x1aa   : > { %v6928_v2 = vpop.f32.mrb[22].mxu1 }
 0x1ab   : > { %v8961_v6 = vadd.f32 %v6928_v2, %v8837_v15  ;;  %v2878_v25 = vpop.f32.mrb[23].mxu1 }
 0x1ac   : > { %v8964_v13 = vadd.f32 %v2878_v25, %v1995_v4 }
 0x1ae   : > { %v6931_v31 = vpop.f32.mrb[24].mxu1 }
 0x1af   : > { %v8968_v43 = vadd.f32 %v6931_v31, %v8845_v17  ;;  %v2888_v41 = vpop.f32.mrb[25].mxu1  ;;  %v508_v17 = vadd.s32 128, %v8918_v33 }
 0x1b0   : > { %v8971_v15 = vadd.f32 %v2888_v41, %v1997_v36 }
 0x1b1   : > { %v640_v20 = vand.u32 15, %v508_v17 }
 0x1b2   : > { %v6934_v51 = vpop.f32.mrb[26].mxu1 }
 0x1b3   : > { %v8975_v46 = vadd.f32 %v6934_v51, %v8853_v19  ;;  %v2898_v59 = vpop.f32.mrb[27].mxu1  ;;  %v510_v19 = vadd.s32 144, %v8918_v33  ;;  %vm1909_vm9 = vcmp.ge.s32.totalorder %v640_v20, 1 }
 0x1b4   : > { %v8977_v18 = vadd.f32 %v2898_v59, %v1999_v42  ;;  %v2005_v0 = vsel %vm1909_vm9, %v8883_v38, 0.0  ;;  %v516_v38 = vadd.s32 192, %v8918_v33 }
 0x1b5   : > { %v654_v22 = vand.u32 15, %v510_v19 }
 0x1b6   : > { %v6937_v61 = vpop.f32.mrb[28].mxu1 }
 0x1b7   : > { %v8982_v7 = vadd.f32 %v6937_v61, %v8861_v21  ;;  %v2908_v53 = vpop.f32.mrb[29].mxu1  ;;  %v512_v21 = vadd.s32 160, %v8918_v33  ;;  %vm1911_vm10 = vcmp.ge.s32.totalorder %v654_v22, 1 }
 0x1b8   : > { %v8984_v30 = vadd.f32 %v2908_v53, %v2001_v52  ;;  %v2007_v28 = vsel %vm1911_vm10, %v8893_v45, 0.0  ;;  %v518_v45 = vadd.s32 208, %v8918_v33 }
 0x1b9   : > { %v668_v26 = vand.u32 15, %v512_v21 }
 0x1ba   : > { %v6940_v37 = vpop.f32.mrb[30].mxu1 }
 0x1bb   : > { %v8989_v44 = vadd.f32 %v6940_v37, %v8869_v23  ;;  %v2918_v10 = vpop.f32.mrb[31].mxu1  ;;  %v514_v23 = vadd.s32 176, %v8918_v33  ;;  %vm1913_vm11 = vcmp.ge.s32.totalorder %v668_v26, 1 }
 0x1bc   : > { %v8991_v50 = vadd.f32 %v2918_v10, %v2003_v54  ;;  %v2009_v47 = vsel %vm1913_vm11, %v8901_v63, 0.0  ;;  %v520_v63 = vadd.s32 224, %v8918_v33 }
 0x1be   : > { %v6943_v55 = vpop.f32.mrb[32].mxu1 }
 0x1bf   : > { %v8995_v58 = vadd.f32 %v8878_v32, %v6943_v55  ;;  %v2928_v12 = vpop.f32.mrb[33].mxu1  ;;  %v682_v32 = vand.u32 15, %v514_v23 }
 0x1c0   : > { %v8998_v2 = vadd.f32 %v2928_v12, %v2005_v0 }
 0x1c1   : > { %vm1915_vm12 = vcmp.ge.s32.totalorder %v682_v32, 1 }
 0x1c2   : > { %v6946_v4 = vpop.f32.mrb[34].mxu1  ;;  %v2011_v60 = vsel %vm1915_vm12, %v8907_v3, 0.0  ;;  %v522_v3 = vadd.s32 240, %v8918_v33 }
 0x1c3   : > { %v9002_v25 = vadd.f32 %v8888_v49, %v6946_v4  ;;  %v2938_v14 = vpop.f32.mrb[35].mxu1  ;;  %v696_v49 = vand.u32 15, %v516_v38  ;;  %v493_v38 = vadd.s32 8, %v8918_v33 }
 0x1c4   : > { %v9005_v31 = vadd.f32 %v2938_v14, %v2007_v28 }
 0x1c5   : > { %vm1917_vm13 = vcmp.ge.s32.totalorder %v696_v49, 1 }
 0x1c6   : > { %v6949_v36 = vpop.f32.mrb[36].mxu1  ;;  %v2013_v20 = vsel %vm1917_vm13, %v8913_v27, 0.0 }
 0x1c7   : > { %v9009_v41 = vadd.f32 %v8897_v57, %v6949_v36  ;;  %v2948_v16 = vpop.f32.mrb[37].mxu1  ;;  %v710_v57 = vand.u32 15, %v518_v45  ;;  %v535_v36 = vand.u32 15, %v493_v38  ;;  %v9059_v45 = vld [vmem:[%s9570_s2] ss:$0 sm:$0xff] }
 0x1c8   : > { %v9012_v51 = vadd.f32 %v2948_v16, %v2009_v47 }
 0x1c9   : > { %vm1919_vm14 = vcmp.ge.s32.totalorder %v710_v57, 1  ;;  %vm4058_vm2 = vcmp.le.s32.totalorder %v535_v36, 14 }
 0x1ca   : > { %v6952_v42 = vpop.f32.mrb[38].mxu1  ;;  %v2015_v22 = vsel %vm1919_vm14, %v8921_v34, 0.0 }
 0x1cb   : > { %v9016_v59 = vadd.f32 %v8904_v1, %v6952_v42  ;;  %v2958_v17 = vpop.f32.mrb[39].mxu1  ;;  %v724_v1 = vand.u32 15, %v520_v63 }
 0x1cc   : > { %v9019_v61 = vadd.f32 %v2958_v17, %v2011_v60  ;;  %v499_v17 = vadd.s32 56, %v8918_v33 }
 0x1cd   : > { %vm1921_vm15 = vcmp.ge.s32.totalorder %v724_v1, 1  ;;  %v4654_v1 = vld [vmem:[%s9573_s5 + $0x10] sm:$0xff] }
 0x1ce   : > { %v6955_v52 = vpop.f32.mrb[40].mxu1  ;;  %v2017_v12 = vsel %vm1921_vm15, %v8929_v24, 0.0  ;;  %v4653_v24 = vld [vmem:[%s9573_s5 + $0x8] sm:$0xff] }
 0x1cf   : > { %v9023_v53 = vadd.f32 %v8910_v5, %v6955_v52  ;;  %v2968_v19 = vpop.f32.mrb[41].mxu1  ;;  %v738_v5 = vand.u32 15, %v522_v3  ;;  %v4655_v3 = vld [vmem:[%s9573_s5 + $0x18] sm:$0xff] }
 0x1d0   : > { %v9026_v37 = vadd.f32 %v2968_v19, %v2013_v20 }
 0x1d1   : > { %vm1923_vm1 = vcmp.ge.s32.totalorder %v738_v5, 1 }
 0x1d2   : > { %v6958_v54 = vpop.f32.mrb[42].mxu1  ;;  %v2019_v34 = vsel %vm1923_vm1, %v8936_v48, 0.0  ;;  %v497_v48 = vadd.s32 40, %v8918_v33 }
 0x1d3   : > { %v9030_v10 = vadd.f32 %v8916_v29, %v6958_v54  ;;  %v2978_v21 = vpop.f32.mrb[43].mxu1 }
 0x1d4   : > { %v9033_v55 = vadd.f32 %v2978_v21, %v2015_v22  ;;  %v563_v60 = vand.u32 15, %v497_v48  ;;  %v501_v21 = vadd.s32 72, %v8918_v33 }
 0x1d6   : > { %v6961_v0 = vpop.f32.mrb[44].mxu1  ;;  %vm9072_vm4 = vcmp.le.s32.totalorder %v563_v60, 14 }
 0x1d7   : > { %v9036_v27 = vadd.f32 %v8924_v39, %v6961_v0  ;;  %v2988_v26 = vpop.f32.mrb[45].mxu1  ;;  %v4652_v39 = vld [vmem:[%s9573_s5] sm:$0xff] }
 0x1d8   : > { %v9039_v23 = vadd.f32 %v2988_v26, %v2017_v12  ;;  %v7461_v32 = vpack.c.bf16 %v4653_v24, %v4652_v39 }
 0x1da   : > { %v6964_v4 = vpop.f32.mrb[46].mxu1  ;;  %7462 = vmatprep.subr.bf16.mxu1 %v7461_v32 }
 0x1db   : > { %v9042_v29 = vadd.f32 %v8932_v35, %v6964_v4  ;;  %v2998_v28 = vpop.f32.mrb[47].mxu1  ;;  %v495_v35 = vadd.s32 24, %v8918_v33  ;;  %v7465_v4 = vpack.c.bf16 %v4655_v3, %v4654_v1 }
 0x1dc   : > { %v9045_v14 = vadd.f32 %v2998_v28, %v2019_v34 }
 0x1dd   : > { %v549_v47 = vand.u32 15, %v495_v35 }
 0x1df   : > { %vm4060_vm3 = vcmp.le.s32.totalorder %v549_v47, 14 }
 0x21d   : > { %v7087_v16 = vpop.f32.mrb[32].mxu0 }
 0x21e   : > { %v4154_v49 = vsel %vm4058_vm2, %v7087_v16, 0.0  ;;  %v3866_v42 = vpop.f32.mrb[33].mxu0 }
 0x21f   : > { %v4186_v57 = vadd.f32 %v4154_v49, %v8940_v62  ;;  %v4185_v63 = vadd.f32 %v3866_v42, %v8943_v9  ;;  %v577_v9 = vand.u32 15, %v499_v17 }
 0x221   : > { %v4225_v52 = vadd.f32 %v9059_v45, %v4186_v57  ;;  %v4224_v20 = vadd.f32 %v9059_v45, %v4185_v63  ;;  %v7090_v19 = vpop.f32.mrb[34].mxu0  ;;  %vm9085_vm5 = vcmp.le.s32.totalorder %v577_v9, 14 }
 0x222   : > { %v4156_v54 = vsel %vm4060_vm3, %v7090_v19, 0.0  ;;  %v3876_v22 = vpop.f32.mrb[35].mxu0 }
 0x223   : > { %v4257_v5 = vmax.f32 %v4225_v52, 0.0  ;;  %v4256_v0 = vmax.f32 %v4224_v20, 0.0  ;;  %v4188_v12 = vadd.f32 %v4156_v54, %v8947_v40  ;;  %v4187_v26 = vadd.f32 %v3876_v22, %v8950_v8 }
 0x224   : > { %v591_v40 = vand.u32 15, %v501_v21  ;;  %v503_v8 = vadd.s32 88, %v8918_v33 }
 0x225   : > { %v4227_v34 = vadd.f32 %v9059_v45, %v4188_v12  ;;  %v4226_v28 = vadd.f32 %v9059_v45, %v4187_v26  ;;  %v7093_v39 = vpop.f32.mrb[36].mxu0  ;;  %7141 = vmatprep.mubr.msk.f32.mxu1 %vm419_vm0, %v4256_v0 }
 0x226   : > { %v4158_v24 = vsel %vm9072_vm4, %v7093_v39, 0.0  ;;  %v3886_v38 = vpop.f32.mrb[37].mxu0  ;;  %7142 = vmatmul.mubr.msk.f32.vlgmr.msra.gmra.mrb[48].mxu1 %vm419_vm0, %v4257_v5  ;;  %vm9098_vm6 = vcmp.le.s32.totalorder %v591_v40, 14 }
 0x227   : > { %v4259_v35 = vmax.f32 %v4227_v34, 0.0  ;;  %v4258_v48 = vmax.f32 %v4226_v28, 0.0  ;;  %v4190_v47 = vadd.f32 %v4158_v24, %v8954_v56  ;;  %v4189_v16 = vadd.f32 %v3886_v38, %v8957_v11  ;;  %7464 = vmatpush3.bf16.msra.mxu1 %v7461_v32 }
 0x228   : > { %7466 = vmatprep.subr.bf16.mxu1 %v7465_v4  ;;  %v605_v56 = vand.u32 15, %v503_v8  ;;  %v505_v11 = vadd.s32 104, %v8918_v33 }
 0x229   : > { %v4229_v49 = vadd.f32 %v9059_v45, %v4190_v47  ;;  %v4228_v42 = vadd.f32 %v9059_v45, %v4189_v16  ;;  %v7096_v60 = vpop.f32.mrb[38].mxu0  ;;  %7144 = vmatprep.mubr.msk.f32.mxu1 %vm419_vm0, %v4258_v48 }
 0x22a   : > { %v4160_v17 = vsel %vm9085_vm5, %v7096_v60, 0.0  ;;  %v3896_v57 = vpop.f32.mrb[39].mxu0  ;;  %7145 = vmatmul.mubr.msk.f32.gmra.mrb[50].mxu1 %vm419_vm0, %v4259_v35  ;;  %vm9111_vm7 = vcmp.le.s32.totalorder %v605_v56, 14 }
 0x22b   : > { %v4261_v32 = vmax.f32 %v4229_v49, 0.0  ;;  %v4260_v52 = vmax.f32 %v4228_v42, 0.0  ;;  %v4192_v20 = vadd.f32 %v4160_v17, %v8961_v6  ;;  %v4191_v19 = vadd.f32 %v3896_v57, %v8964_v13  ;;  %7468 = vmatpush3.bf16.msra.mxu1 %v7465_v4 }
 0x22c   : > { %v619_v6 = vand.u32 15, %v505_v11  ;;  %v507_v13 = vadd.s32 120, %v8918_v33 }
 0x22d   : > { %v4231_v1 = vadd.f32 %v9059_v45, %v4192_v20  ;;  %v4230_v3 = vadd.f32 %v9059_v45, %v4191_v19  ;;  %v7099_v54 = vpop.f32.mrb[40].mxu0  ;;  %7147 = vmatprep.mubr.msk.f32.mxu1 %vm419_vm0, %v4260_v52 }
 0x22e   : > { %v4162_v22 = vsel %vm9098_vm6, %v7099_v54, 0.0  ;;  %v3906_v62 = vpop.f32.mrb[41].mxu0  ;;  %7148 = vmatmul.mubr.msk.f32.gmra.mrb[52].mxu1 %vm419_vm0, %v4261_v32  ;;  %vm9124_vm8 = vcmp.le.s32.totalorder %v619_v6, 14 }
 0x22f   : > { %v4263_v21 = vmax.f32 %v4231_v1, 0.0  ;;  %v4262_v5 = vmax.f32 %v4230_v3, 0.0  ;;  %v4194_v0 = vadd.f32 %v4162_v22, %v8968_v43  ;;  %v4193_v12 = vadd.f32 %v3906_v62, %v8971_v15 }
 0x230   : > { %v633_v43 = vand.u32 15, %v507_v13  ;;  %v509_v15 = vadd.s32 136, %v8918_v33 }
 0x231   : > { %v4233_v26 = vadd.f32 %v9059_v45, %v4194_v0  ;;  %v4232_v4 = vadd.f32 %v9059_v45, %v4193_v12  ;;  %v7102_v34 = vpop.f32.mrb[42].mxu0  ;;  %7150 = vmatprep.mubr.msk.f32.mxu1 %vm419_vm0, %v4262_v5 }
 0x232   : > { %v4164_v28 = vsel %vm9111_vm7, %v7102_v34, 0.0  ;;  %v3916_v39 = vpop.f32.mrb[43].mxu0  ;;  %7151 = vmatmul.mubr.msk.f32.gmra.mrb[54].mxu1 %vm419_vm0, %v4263_v21  ;;  %vm9137_vm9 = vcmp.le.s32.totalorder %v633_v43, 14 }
 0x233   : > { %v4265_v38 = vmax.f32 %v4233_v26, 0.0  ;;  %v4264_v36 = vmax.f32 %v4232_v4, 0.0  ;;  %v4196_v40 = vadd.f32 %v4164_v28, %v8975_v46  ;;  %v4195_v8 = vadd.f32 %v3916_v39, %v8977_v18 }
 0x234   : > { %v647_v46 = vand.u32 15, %v509_v15  ;;  %v511_v18 = vadd.s32 152, %v8918_v33 }
 0x235   : > { %v4235_v35 = vadd.f32 %v9059_v45, %v4196_v40  ;;  %v4234_v48 = vadd.f32 %v9059_v45, %v4195_v8  ;;  %v7105_v47 = vpop.f32.mrb[44].mxu0  ;;  %7153 = vmatprep.mubr.msk.f32.mxu1 %vm419_vm0, %v4264_v36 }
 0x236   : > { %v4166_v16 = vsel %vm9124_vm8, %v7105_v47, 0.0  ;;  %v3926_v49 = vpop.f32.mrb[45].mxu0  ;;  %7154 = vmatmul.mubr.msk.f32.gmra.mrb[56].mxu1 %vm419_vm0, %v4265_v38  ;;  %vm9150_vm10 = vcmp.le.s32.totalorder %v647_v46, 14 }
 0x237   : > { %v4267_v60 = vmax.f32 %v4235_v35, 0.0  ;;  %v4266_v17 = vmax.f32 %v4234_v48, 0.0  ;;  %v4198_v57 = vadd.f32 %v4166_v16, %v8982_v7  ;;  %v4197_v63 = vadd.f32 %v3926_v49, %v8984_v30 }
 0x238   : > { %v661_v7 = vand.u32 15, %v511_v18  ;;  %v513_v30 = vadd.s32 168, %v8918_v33 }
 0x239   : > { %v4237_v56 = vadd.f32 %v9059_v45, %v4198_v57  ;;  %v4236_v11 = vadd.f32 %v9059_v45, %v4197_v63  ;;  %v7108_v32 = vpop.f32.mrb[46].mxu0  ;;  %7156 = vmatprep.mubr.msk.f32.mxu1 %vm419_vm0, %v4266_v17 }
 0x23a   : > { %v4168_v52 = vsel %vm9137_vm9, %v7108_v32, 0.0  ;;  %v3936_v20 = vpop.f32.mrb[47].mxu0  ;;  %7157 = vmatmul.mubr.msk.f32.gmra.mrb[58].mxu1 %vm419_vm0, %v4267_v60  ;;  %vm9163_vm11 = vcmp.le.s32.totalorder %v661_v7, 14 }
 0x23b   : > { %v4269_v1 = vmax.f32 %v4237_v56, 0.0  ;;  %v4268_v3 = vmax.f32 %v4236_v11, 0.0  ;;  %v4200_v54 = vadd.f32 %v4168_v52, %v8989_v44  ;;  %v4199_v22 = vadd.f32 %v3936_v20, %v8991_v50 }
 0x23c   : > { %v675_v44 = vand.u32 15, %v513_v30  ;;  %v515_v50 = vadd.s32 184, %v8918_v33 }
 0x23d   : > { %v4239_v62 = vadd.f32 %v9059_v45, %v4200_v54  ;;  %v4238_v9 = vadd.f32 %v9059_v45, %v4199_v22  ;;  %v7111_v6 = vpop.f32.mrb[48].mxu0  ;;  %7159 = vmatprep.mubr.msk.f32.mxu1 %vm419_vm0, %v4268_v3 }
 0x23e   : > { %v4170_v13 = vsel %vm9150_vm10, %v7111_v6, 0.0  ;;  %v3946_v21 = vpop.f32.mrb[49].mxu0  ;;  %7160 = vmatmul.mubr.msk.f32.gmra.mrb[60].mxu1 %vm419_vm0, %v4269_v1  ;;  %vm9176_vm12 = vcmp.le.s32.totalorder %v675_v44, 14 }
 0x23f   : > { %v4271_v0 = vmax.f32 %v4239_v62, 0.0  ;;  %v4270_v12 = vmax.f32 %v4238_v9, 0.0  ;;  %v4202_v26 = vadd.f32 %v4170_v13, %v8995_v58  ;;  %v4201_v4 = vadd.f32 %v3946_v21, %v8998_v2 }
 0x240   : > { %v689_v58 = vand.u32 15, %v515_v50  ;;  %v517_v2 = vadd.s32 200, %v8918_v33 }
 0x241   : > { %v4241_v34 = vadd.f32 %v9059_v45, %v4202_v26  ;;  %v4240_v28 = vadd.f32 %v9059_v45, %v4201_v4  ;;  %v7114_v39 = vpop.f32.mrb[50].mxu0  ;;  %7162 = vmatprep.mubr.msk.f32.mxu1 %vm419_vm0, %v4270_v12 }
 0x242   : > { %v4172_v24 = vsel %vm9163_vm11, %v7114_v39, 0.0  ;;  %v3956_v43 = vpop.f32.mrb[51].mxu0  ;;  %7163 = vmatmul.mubr.msk.f32.gmra.mrb[62].mxu1 %vm419_vm0, %v4271_v0  ;;  %vm9189_vm13 = vcmp.le.s32.totalorder %v689_v58, 14 }
 0x243   : > { %v4273_v38 = vmax.f32 %v4241_v34, 0.0  ;;  %v4272_v36 = vmax.f32 %v4240_v28, 0.0  ;;  %v4204_v40 = vadd.f32 %v4172_v24, %v9002_v25  ;;  %v4203_v8 = vadd.f32 %v3956_v43, %v9005_v31 }
 0x244   : > { %v703_v25 = vand.u32 15, %v517_v2  ;;  %v519_v31 = vadd.s32 216, %v8918_v33 }
 0x245   : > { %v4243_v35 = vadd.f32 %v9059_v45, %v4204_v40  ;;  %v4242_v48 = vadd.f32 %v9059_v45, %v4203_v8  ;;  %v7117_v47 = vpop.f32.mrb[52].mxu0  ;;  %7165 = vmatprep.mubr.msk.f32.mxu1 %vm419_vm0, %v4272_v36 }
 0x246   : > { %v4174_v16 = vsel %vm9176_vm12, %v7117_v47, 0.0  ;;  %v3966_v49 = vpop.f32.mrb[53].mxu0  ;;  %7166 = vmatmul.mubr.msk.f32.gmra.mrb[64].mxu1 %vm419_vm0, %v4273_v38  ;;  %vm9202_vm14 = vcmp.le.s32.totalorder %v703_v25, 14 }
 0x247   : > { %v4275_v46 = vmax.f32 %v4243_v35, 0.0  ;;  %v4274_v18 = vmax.f32 %v4242_v48, 0.0  ;;  %v4206_v60 = vadd.f32 %v4174_v16, %v9009_v41  ;;  %v4205_v17 = vadd.f32 %v3966_v49, %v9012_v51 }
 0x248   : > { %v717_v41 = vand.u32 15, %v519_v31  ;;  %v521_v51 = vadd.s32 232, %v8918_v33 }
 0x249   : > { %v4245_v57 = vadd.f32 %v9059_v45, %v4206_v60  ;;  %v4244_v63 = vadd.f32 %v9059_v45, %v4205_v17  ;;  %v7120_v56 = vpop.f32.mrb[54].mxu0  ;;  %7168 = vmatprep.mubr.msk.f32.mxu1 %vm419_vm0, %v4274_v18 }
 0x24a   : > { %v4176_v11 = vsel %vm9189_vm13, %v7120_v56, 0.0  ;;  %v3976_v32 = vpop.f32.mrb[55].mxu0  ;;  %7169 = vmatmul.mubr.msk.f32.gmra.mrb[66].mxu1 %vm419_vm0, %v4275_v46  ;;  %vm9215_vm15 = vcmp.le.s32.totalorder %v717_v41, 14  ;;  %v5019_v56 = vld [vmem:[%s9575_s7 + $0x18] sm:$0xff] }
 0x24b   : > { %v4277_v20 = vmax.f32 %v4245_v57, 0.0  ;;  %v4276_v19 = vmax.f32 %v4244_v63, 0.0  ;;  %v4208_v7 = vadd.f32 %v4176_v11, %v9016_v59  ;;  %v4207_v30 = vadd.f32 %v3976_v32, %v9019_v61  ;;  %v5018_v63 = vld [vmem:[%s9575_s7 + $0x10] sm:$0xff] }
 0x24c   : > { %v731_v59 = vand.u32 15, %v521_v51  ;;  %v523_v61 = vadd.s32 248, %v8918_v33 }
 0x24d   : > { %v4247_v1 = vadd.f32 %v9059_v45, %v4208_v7  ;;  %v4246_v3 = vadd.f32 %v9059_v45, %v4207_v30  ;;  %v7123_v54 = vpop.f32.mrb[56].mxu0  ;;  %7171 = vmatprep.mubr.msk.f32.mxu1 %vm419_vm0, %v4276_v19 }
 0x24e   : > { %v4178_v22 = vsel %vm9202_vm14, %v7123_v54, 0.0  ;;  %v3986_v62 = vpop.f32.mrb[57].mxu0  ;;  %7172 = vmatmul.mubr.msk.f32.gmra.mrb[68].mxu1 %vm419_vm0, %v4277_v20  ;;  %vm9228_vm1 = vcmp.le.s32.totalorder %v731_v59, 14  ;;  %v7473_v20 = vpack.c.bf16 %v5019_v56, %v5018_v63 }
 0x24f   : > { %v4279_v6 = vmax.f32 %v4247_v1, 0.0  ;;  %v4278_v13 = vmax.f32 %v4246_v3, 0.0  ;;  %v4210_v21 = vadd.f32 %v4178_v22, %v9023_v53  ;;  %v4209_v5 = vadd.f32 %v3986_v62, %v9026_v37 }
 0x250   : > { %v745_v53 = vand.u32 15, %v523_v61 }
 0x251   : > { %v4249_v44 = vadd.f32 %v9059_v45, %v4210_v21  ;;  %v4248_v50 = vadd.f32 %v9059_v45, %v4209_v5  ;;  %v7126_v0 = vpop.f32.mrb[58].mxu0  ;;  %7174 = vmatprep.mubr.msk.f32.mxu1 %vm419_vm0, %v4278_v13 }
 0x252   : > { %v4180_v12 = vsel %vm9215_vm15, %v7126_v0, 0.0  ;;  %v3996_v26 = vpop.f32.mrb[59].mxu0  ;;  %7175 = vmatmul.mubr.msk.f32.gmra.mrb[70].mxu1 %vm419_vm0, %v4279_v6  ;;  %vm4088_vm2 = vcmp.le.s32.totalorder %v745_v53, 14 }
 0x253   : > { %v4281_v4 = vmax.f32 %v4249_v44, 0.0  ;;  %v4280_v37 = vmax.f32 %v4248_v50, 0.0  ;;  %v4212_v34 = vadd.f32 %v4180_v12, %v9030_v10  ;;  %v4211_v28 = vadd.f32 %v3996_v26, %v9033_v55 }
 0x255   : > { %v4251_v39 = vadd.f32 %v9059_v45, %v4212_v34  ;;  %v4250_v24 = vadd.f32 %v9059_v45, %v4211_v28  ;;  %v7129_v43 = vpop.f32.mrb[60].mxu0  ;;  %7177 = vmatprep.mubr.msk.f32.mxu1 %vm419_vm0, %v4280_v37 }
 0x256   : > { %v4182_v15 = vsel %vm9228_vm1, %v7129_v43, 0.0  ;;  %v4006_v58 = vpop.f32.mrb[61].mxu0  ;;  %7178 = vmatmul.mubr.msk.f32.gmra.mrb[72].mxu1 %vm419_vm0, %v4281_v4 }
 0x257   : > { %v4283_v2 = vmax.f32 %v4251_v39, 0.0  ;;  %v4282_v38 = vmax.f32 %v4250_v24, 0.0  ;;  %v4214_v10 = vadd.f32 %v4182_v15, %v9036_v27  ;;  %v4213_v55 = vadd.f32 %v4006_v58, %v9039_v23 }
 0x259   : > { %v4253_v36 = vadd.f32 %v9059_v45, %v4214_v10  ;;  %v4252_v40 = vadd.f32 %v9059_v45, %v4213_v55  ;;  %v7132_v8 = vpop.f32.mrb[62].mxu0  ;;  %7180 = vmatprep.mubr.msk.f32.mxu1 %vm419_vm0, %v4282_v38 }
 0x25a   : > { %v4184_v35 = vsel %vm4088_vm2, %v7132_v8, 0.0  ;;  %v4016_v48 = vpop.f32.mrb[63].mxu0  ;;  %7181 = vmatmul.mubr.msk.f32.gmra.mrb[74].mxu1 %vm419_vm0, %v4283_v2 }
 0x25b   : > { %v4285_v47 = vmax.f32 %v4253_v36, 0.0  ;;  %v4284_v16 = vmax.f32 %v4252_v40, 0.0  ;;  %v4216_v49 = vadd.f32 %v4184_v35, %v9042_v29  ;;  %v4215_v42 = vadd.f32 %v4016_v48, %v9045_v14  ;;  %v5016_v29 = vld [vmem:[%s9575_s7] sm:$0xff]  ;;  %v5017_v14 = vld [vmem:[%s9575_s7 + $0x8] sm:$0xff] }
 0x25c   : > { %v7469_v46 = vpack.c.bf16 %v5017_v14, %v5016_v29 }
 0x25d   : > { %v4255_v27 = vadd.f32 %v9059_v45, %v4216_v49  ;;  %v4254_v23 = vadd.f32 %v9059_v45, %v4215_v42  ;;  %7183 = vmatprep.mubr.msk.f32.mxu1 %vm419_vm0, %v4284_v16  ;;  %v9263_v45 = vld [vmem:[%s9572_s4] ss:$0 sm:$0xff] }
 0x25e   : > { %7184 = vmatmul.mubr.msk.f32.gmra.mrb[76].mxu1 %vm419_vm0, %v4285_v47  ;;  %7470 = vmatprep.subr.bf16.mxu1 %v7469_v46 }
 0x25f   : > { %v4287_v25 = vmax.f32 %v4255_v27, 0.0  ;;  %v4286_v31 = vmax.f32 %v4254_v23, 0.0 }
 0x261   : > { %7186 = vmatprep.mubr.msk.f32.mxu1 %vm419_vm0, %v4286_v31 }
 0x262   : > { %7187 = vmatmul.mubr.msk.f32.gmra.mrb[78].mxu1 %vm419_vm0, %v4287_v25 }
 0x2f9   : > { %v7143_v18 = vpop.f32.mrb[48].mxu1 }
 0x2fa   : > { %v4467_v60 = vadd.f32 %v7143_v18, %v9263_v45  ;;  %v4461_v17 = vpop.f32.mrb[49].mxu1 }
 0x2fb   : > { %v4462_v57 = vadd.f32 %v9263_v45, %v4461_v17 }
 0x2fc   : > { %v4621_v52 = vmax.f32 %v4467_v60, 0.0 }
 0x2fd   : > { %v4620_v11 = vmax.f32 %v4462_v57, 0.0  ;;  %v7146_v32 = vpop.f32.mrb[50].mxu1 }
 0x2fe   : > { %v4477_v41 = vadd.f32 %v7146_v32, %v9263_v45  ;;  %v4471_v51 = vpop.f32.mrb[51].mxu1 }
 0x2ff   : > { %v4472_v19 = vadd.f32 %v9263_v45, %v4471_v51  ;;  %7197 = vmatprep.mubr.msk.f32.mxu1 %vm419_vm0, %v4620_v11 }
 0x300   : > { %7198 = vmatmul.mubr.msk.f32.vlgmr.msra.gmra.mrb[80].mxu1 %vm419_vm0, %v4621_v52  ;;  %v4623_v1 = vmax.f32 %v4477_v41, 0.0 }
 0x301   : > { %v4622_v7 = vmax.f32 %v4472_v19, 0.0  ;;  %v7149_v30 = vpop.f32.mrb[52].mxu1  ;;  %7472 = vmatpush3.bf16.msra.mxu1 %v7469_v46 }
 0x302   : > { %v4487_v3 = vadd.f32 %v7149_v30, %v9263_v45  ;;  %v4481_v54 = vpop.f32.mrb[53].mxu1  ;;  %7474 = vmatprep.subr.bf16.mxu1 %v7473_v20 }
 0x303   : > { %v4482_v22 = vadd.f32 %v9263_v45, %v4481_v54  ;;  %7200 = vmatprep.mubr.msk.f32.mxu1 %vm419_vm0, %v4622_v7 }
 0x304   : > { %7201 = vmatmul.mubr.msk.f32.gmra.mrb[82].mxu1 %vm419_vm0, %v4623_v1  ;;  %v4625_v59 = vmax.f32 %v4487_v3, 0.0 }
 0x305   : > { %v4624_v62 = vmax.f32 %v4482_v22, 0.0  ;;  %v7152_v9 = vpop.f32.mrb[54].mxu1  ;;  %7476 = vmatpush3.bf16.msra.mxu1 %v7473_v20 }
 0x306   : > { %v4497_v61 = vadd.f32 %v7152_v9, %v9263_v45  ;;  %v4491_v6 = vpop.f32.mrb[55].mxu1 }
 0x307   : > { %v4492_v13 = vadd.f32 %v9263_v45, %v4491_v6  ;;  %7203 = vmatprep.mubr.msk.f32.mxu1 %vm419_vm0, %v4624_v62 }
 0x308   : > { %7204 = vmatmul.mubr.msk.f32.gmra.mrb[84].mxu1 %vm419_vm0, %v4625_v59  ;;  %v4627_v44 = vmax.f32 %v4497_v61, 0.0 }
 0x309   : > { %v4626_v21 = vmax.f32 %v4492_v13, 0.0  ;;  %v7155_v5 = vpop.f32.mrb[56].mxu1 }
 0x30a   : > { %v4507_v50 = vadd.f32 %v7155_v5, %v9263_v45  ;;  %v4501_v0 = vpop.f32.mrb[57].mxu1 }
 0x30b   : > { %v4502_v12 = vadd.f32 %v9263_v45, %v4501_v0  ;;  %7206 = vmatprep.mubr.msk.f32.mxu1 %vm419_vm0, %v4626_v21 }
 0x30c   : > { %7207 = vmatmul.mubr.msk.f32.gmra.mrb[86].mxu1 %vm419_vm0, %v4627_v44  ;;  %v4629_v53 = vmax.f32 %v4507_v50, 0.0 }
 0x30d   : > { %v4628_v26 = vmax.f32 %v4502_v12, 0.0  ;;  %v7158_v33 = vpop.f32.mrb[58].mxu1 }
 0x30e   : > { %v4517_v4 = vadd.f32 %v7158_v33, %v9263_v45  ;;  %v4511_v37 = vpop.f32.mrb[59].mxu1 }
 0x30f   : > { %v4512_v34 = vadd.f32 %v9263_v45, %v4511_v37  ;;  %7209 = vmatprep.mubr.msk.f32.mxu1 %vm419_vm0, %v4628_v26 }
 0x310   : > { %7210 = vmatmul.mubr.msk.f32.gmra.mrb[88].mxu1 %vm419_vm0, %v4629_v53  ;;  %v4631_v24 = vmax.f32 %v4517_v4, 0.0 }
 0x311   : > { %v4630_v28 = vmax.f32 %v4512_v34, 0.0  ;;  %v7161_v39 = vpop.f32.mrb[60].mxu1  ;;  %v5380_v34 = vld [vmem:[%s9577_s9] sm:$0xff] }
 0x312   : > { %v4527_v43 = vadd.f32 %v7161_v39, %v9263_v45  ;;  %v4521_v15 = vpop.f32.mrb[61].mxu1 }
 0x313   : > { %v4522_v58 = vadd.f32 %v9263_v45, %v4521_v15  ;;  %7212 = vmatprep.mubr.msk.f32.mxu1 %vm419_vm0, %v4630_v28  ;;  %v5381_v28 = vld [vmem:[%s9577_s9 + $0x8] sm:$0xff]  ;;  %v5384_v15 = vld [vmem:[%s9577_s9 + $0x20] sm:$0xff] }
 0x314   : > { %7213 = vmatmul.mubr.msk.f32.gmra.mrb[90].mxu1 %vm419_vm0, %v4631_v24  ;;  %v4633_v10 = vmax.f32 %v4527_v43, 0.0  ;;  %v7477_v39 = vpack.c.bf16 %v5381_v28, %v5380_v34  ;;  %v5383_v24 = vld [vmem:[%s9577_s9 + $0x18] sm:$0xff] }
 0x315   : > { %v4632_v2 = vmax.f32 %v4522_v58, 0.0  ;;  %v7164_v38 = vpop.f32.mrb[62].mxu1  ;;  %v5385_v58 = vld [vmem:[%s9577_s9 + $0x28] sm:$0xff] }
 0x316   : > { %v4537_v55 = vadd.f32 %v7164_v38, %v9263_v45  ;;  %v4531_v36 = vpop.f32.mrb[63].mxu1  ;;  %7478 = vmatprep.subr.bf16.mxu0 %v7477_v39  ;;  %v5386_v38 = vld [vmem:[%s9577_s9 + $0x30] sm:$0xff] }
 0x317   : > { %v4532_v40 = vadd.f32 %v9263_v45, %v4531_v36  ;;  %7215 = vmatprep.mubr.msk.f32.mxu1 %vm419_vm0, %v4632_v2  ;;  %7480 = vmatpush3.bf16.msra.mxu0 %v7477_v39  ;;  %v7485_v2 = vpack.c.bf16 %v5385_v58, %v5384_v15  ;;  %v5388_v36 = vld [vmem:[%s9577_s9 + $0x40] sm:$0xff] }
 0x318   : > { %7216 = vmatmul.mubr.msk.f32.gmra.mrb[92].mxu1 %vm419_vm0, %v4633_v10  ;;  %v4635_v48 = vmax.f32 %v4537_v55, 0.0  ;;  %v5387_v10 = vld [vmem:[%s9577_s9 + $0x38] sm:$0xff] }
 0x319   : > { %v4634_v8 = vmax.f32 %v4532_v40, 0.0  ;;  %v7167_v35 = vpop.f32.mrb[64].mxu1  ;;  %v7489_v55 = vpack.c.bf16 %v5387_v10, %v5386_v38  ;;  %v5389_v40 = vld [vmem:[%s9577_s9 + $0x48] sm:$0xff] }
 0x31a   : > { %v4547_v47 = vadd.f32 %v7167_v35, %v9263_v45  ;;  %v4541_v16 = vpop.f32.mrb[65].mxu1  ;;  %v5390_v35 = vld [vmem:[%s9577_s9 + $0x50] sm:$0xff] }
 0x31b   : > { %v4542_v49 = vadd.f32 %v9263_v45, %v4541_v16  ;;  %7218 = vmatprep.mubr.msk.f32.mxu1 %vm419_vm0, %v4634_v8  ;;  %v7493_v8 = vpack.c.bf16 %v5389_v40, %v5388_v36  ;;  %v5392_v16 = vld [vmem:[%s9577_s9 + $0x60] sm:$0xff] }
 0x31c   : > { %7219 = vmatmul.mubr.msk.f32.gmra.mrb[94].mxu1 %vm419_vm0, %v4635_v48  ;;  %v4637_v23 = vmax.f32 %v4547_v47, 0.0  ;;  %v5391_v48 = vld [vmem:[%s9577_s9 + $0x58] sm:$0xff] }
 0x31d   : > { %v4636_v42 = vmax.f32 %v4542_v49, 0.0  ;;  %v7170_v27 = vpop.f32.mrb[66].mxu1  ;;  %v7497_v47 = vpack.c.bf16 %v5391_v48, %v5390_v35  ;;  %v5393_v49 = vld [vmem:[%s9577_s9 + $0x68] sm:$0xff] }
 0x31e   : > { %v4557_v25 = vadd.f32 %v7170_v27, %v9263_v45  ;;  %v4551_v31 = vpop.f32.mrb[67].mxu1  ;;  %v5394_v27 = vld [vmem:[%s9577_s9 + $0x70] sm:$0xff] }
 0x31f   : > { %v4552_v29 = vadd.f32 %v9263_v45, %v4551_v31  ;;  %7221 = vmatprep.mubr.msk.f32.mxu1 %vm419_vm0, %v4636_v42  ;;  %v7501_v42 = vpack.c.bf16 %v5393_v49, %v5392_v16  ;;  %v9386_v31 = vld [vmem:[%s9574_s6] ss:$0 sm:$0xff] }
 0x320   : > { %7222 = vmatmul.mubr.msk.f32.gmra.mrb[96].mxu1 %vm419_vm0, %v4637_v23  ;;  %v4639_v18 = vmax.f32 %v4557_v25, 0.0  ;;  %v5395_v23 = vld [vmem:[%s9577_s9 + $0x78] sm:$0xff] }
 0x321   : > { %v4638_v14 = vmax.f32 %v4552_v29, 0.0  ;;  %v7173_v46 = vpop.f32.mrb[68].mxu1  ;;  %v7505_v25 = vpack.c.bf16 %v5395_v23, %v5394_v27 }
 0x322   : > { %v4567_v60 = vadd.f32 %v7173_v46, %v9263_v45  ;;  %v4561_v17 = vpop.f32.mrb[69].mxu1 }
 0x323   : > { %v4562_v57 = vadd.f32 %v9263_v45, %v4561_v17  ;;  %7224 = vmatprep.mubr.msk.f32.mxu1 %vm419_vm0, %v4638_v14 }
 0x324   : > { %7225 = vmatmul.mubr.msk.f32.gmra.mrb[98].mxu1 %vm419_vm0, %v4639_v18  ;;  %v4641_v11 = vmax.f32 %v4567_v60, 0.0 }
 0x325   : > { %v4640_v63 = vmax.f32 %v4562_v57, 0.0  ;;  %v7176_v56 = vpop.f32.mrb[70].mxu1 }
 0x326   : > { %v4577_v32 = vadd.f32 %v7176_v56, %v9263_v45  ;;  %v4571_v52 = vpop.f32.mrb[71].mxu1 }
 0x327   : > { %v4572_v41 = vadd.f32 %v9263_v45, %v4571_v52  ;;  %7227 = vmatprep.mubr.msk.f32.mxu1 %vm419_vm0, %v4640_v63 }
 0x328   : > { %7228 = vmatmul.mubr.msk.f32.gmra.mrb[100].mxu1 %vm419_vm0, %v4641_v11  ;;  %v4643_v19 = vmax.f32 %v4577_v32, 0.0 }
 0x329   : > { %v4642_v51 = vmax.f32 %v4572_v41, 0.0  ;;  %v7179_v20 = vpop.f32.mrb[72].mxu1 }
 0x32a   : > { %v4587_v7 = vadd.f32 %v7179_v20, %v9263_v45  ;;  %v4581_v30 = vpop.f32.mrb[73].mxu1 }
 0x32b   : > { %v4582_v1 = vadd.f32 %v9263_v45, %v4581_v30  ;;  %7230 = vmatprep.mubr.msk.f32.mxu1 %vm419_vm0, %v4642_v51 }
 0x32c   : > { %7231 = vmatmul.mubr.msk.f32.gmra.mrb[102].mxu1 %vm419_vm0, %v4643_v19  ;;  %v4645_v22 = vmax.f32 %v4587_v7, 0.0 }
 0x32d   : > { %v4644_v3 = vmax.f32 %v4582_v1, 0.0  ;;  %v7182_v54 = vpop.f32.mrb[74].mxu1 }
 0x32e   : > { %v4597_v62 = vadd.f32 %v7182_v54, %v9263_v45  ;;  %v4591_v9 = vpop.f32.mrb[75].mxu1 }
 0x32f   : > { %v4592_v59 = vadd.f32 %v9263_v45, %v4591_v9  ;;  %7233 = vmatprep.mubr.msk.f32.mxu1 %vm419_vm0, %v4644_v3 }
 0x330   : > { %7234 = vmatmul.mubr.msk.f32.gmra.mrb[104].mxu1 %vm419_vm0, %v4645_v22  ;;  %v4647_v13 = vmax.f32 %v4597_v62, 0.0 }
 0x331   : > { %v4646_v61 = vmax.f32 %v4592_v59, 0.0  ;;  %v7185_v6 = vpop.f32.mrb[76].mxu1 }
 0x332   : > { %v4607_v21 = vadd.f32 %v7185_v6, %v9263_v45  ;;  %v4601_v5 = vpop.f32.mrb[77].mxu1 }
 0x333   : > { %v4602_v44 = vadd.f32 %v9263_v45, %v4601_v5  ;;  %7236 = vmatprep.mubr.msk.f32.mxu1 %vm419_vm0, %v4646_v61 }
 0x334   : > { %7237 = vmatmul.mubr.msk.f32.gmra.mrb[106].mxu1 %vm419_vm0, %v4647_v13  ;;  %v4649_v12 = vmax.f32 %v4607_v21, 0.0 }
 0x335   : > { %v4648_v50 = vmax.f32 %v4602_v44, 0.0  ;;  %v7188_v0 = vpop.f32.mrb[78].mxu1 }
 0x336   : > { %v4617_v26 = vadd.f32 %v7188_v0, %v9263_v45  ;;  %v4611_v33 = vpop.f32.mrb[79].mxu1 }
 0x337   : > { %v4612_v53 = vadd.f32 %v9263_v45, %v4611_v33  ;;  %7239 = vmatprep.mubr.msk.f32.mxu1 %vm419_vm0, %v4648_v50  ;;  %v5382_v45 = vld [vmem:[%s9577_s9 + $0x10] sm:$0xff] }
 0x338   : > { %7240 = vmatmul.mubr.msk.f32.gmra.mrb[108].mxu1 %vm419_vm0, %v4649_v12  ;;  %v4651_v37 = vmax.f32 %v4617_v26, 0.0  ;;  %v7481_v43 = vpack.c.bf16 %v5383_v24, %v5382_v45 }
 0x339   : > { %v4650_v4 = vmax.f32 %v4612_v53, 0.0 }
 0x33a   : > { %7482 = vmatprep.subr.bf16.mxu0 %v7481_v43 }
 0x33b   : > { %7242 = vmatprep.mubr.msk.f32.mxu1 %vm419_vm0, %v4650_v4  ;;  %7484 = vmatpush3.bf16.msra.mxu0 %v7481_v43 }
 0x33c   : > { %7243 = vmatmul.mubr.msk.f32.gmra.mrb[110].mxu1 %vm419_vm0, %v4651_v37  ;;  %7486 = vmatprep.subr.bf16.mxu0 %v7485_v2 }
 0x33f   : > { %7488 = vmatpush3.bf16.msra.mxu0 %v7485_v2 }
 0x340   : > { %7490 = vmatprep.subr.bf16.mxu0 %v7489_v55 }
 0x343   : > { %7492 = vmatpush3.bf16.msra.mxu0 %v7489_v55 }
 0x344   : > { %7494 = vmatprep.subr.bf16.mxu0 %v7493_v8 }
 0x347   : > { %7496 = vmatpush3.bf16.msra.mxu0 %v7493_v8 }
 0x348   : > { %7498 = vmatprep.subr.bf16.mxu0 %v7497_v47 }
 0x34b   : > { %7500 = vmatpush3.bf16.msra.mxu0 %v7497_v47 }
 0x34c   : > { %7502 = vmatprep.subr.bf16.mxu0 %v7501_v42 }
 0x34f   : > { %7504 = vmatpush3.bf16.msra.mxu0 %v7501_v42 }
 0x350   : > { %7506 = vmatprep.subr.bf16.mxu0 %v7505_v25 }
 0x353   : > { %7508 = vmatpush3.bf16.msra.mxu0 %v7505_v25 }
 0x3d3   : > { %v7199_v29 = vpop.f32.mrb[80].mxu1 }
 0x3d4   : > { %v4831_v14 = vadd.f32 %v7199_v29, %v9386_v31  ;;  %v4825_v46 = vpop.f32.mrb[81].mxu1 }
 0x3d5   : > { %v4826_v18 = vadd.f32 %v9386_v31, %v4825_v46 }
 0x3d6   : > { %v4985_v57 = vmax.f32 %v4831_v14, 0.0 }
 0x3d7   : > { %v4984_v60 = vmax.f32 %v4826_v18, 0.0  ;;  %v7202_v17 = vpop.f32.mrb[82].mxu1 }
 0x3d8   : > { %v4841_v63 = vadd.f32 %v7202_v17, %v9386_v31  ;;  %v4835_v56 = vpop.f32.mrb[83].mxu1 }
 0x3d9   : > { %v4836_v11 = vadd.f32 %v9386_v31, %v4835_v56  ;;  %7253 = vmatprep.mubr.msk.f32.mxu1 %vm419_vm0, %v4984_v60 }
 0x3da   : > { %7254 = vmatmul.mubr.msk.f32.vlgmr.msra.gmra.mrb[112].mxu1 %vm419_vm0, %v4985_v57  ;;  %v4987_v41 = vmax.f32 %v4841_v63, 0.0 }
 0x3db   : > { %v4986_v32 = vmax.f32 %v4836_v11, 0.0  ;;  %v7205_v52 = vpop.f32.mrb[84].mxu1 }
 0x3dc   : > { %v4851_v51 = vadd.f32 %v7205_v52, %v9386_v31  ;;  %v4845_v20 = vpop.f32.mrb[85].mxu1 }
 0x3dd   : > { %v4846_v19 = vadd.f32 %v9386_v31, %v4845_v20  ;;  %7256 = vmatprep.mubr.msk.f32.mxu1 %vm419_vm0, %v4986_v32 }
 0x3de   : > { %7257 = vmatmul.mubr.msk.f32.gmra.mrb[114].mxu1 %vm419_vm0, %v4987_v41  ;;  %v4989_v1 = vmax.f32 %v4851_v51, 0.0 }
 0x3df   : > { %v4988_v7 = vmax.f32 %v4846_v19, 0.0  ;;  %v7208_v30 = vpop.f32.mrb[86].mxu1 }
 0x3e0   : > { %v4861_v3 = vadd.f32 %v7208_v30, %v9386_v31  ;;  %v4855_v54 = vpop.f32.mrb[87].mxu1 }
 0x3e1   : > { %v4856_v22 = vadd.f32 %v9386_v31, %v4855_v54  ;;  %7259 = vmatprep.mubr.msk.f32.mxu1 %vm419_vm0, %v4988_v7 }
 0x3e2   : > { %7260 = vmatmul.mubr.msk.f32.gmra.mrb[116].mxu1 %vm419_vm0, %v4989_v1  ;;  %v4991_v59 = vmax.f32 %v4861_v3, 0.0 }
 0x3e3   : > { %v4990_v62 = vmax.f32 %v4856_v22, 0.0  ;;  %v7211_v9 = vpop.f32.mrb[88].mxu1 }
 0x3e4   : > { %v4871_v61 = vadd.f32 %v7211_v9, %v9386_v31  ;;  %v4865_v6 = vpop.f32.mrb[89].mxu1 }
 0x3e5   : > { %v4866_v13 = vadd.f32 %v9386_v31, %v4865_v6  ;;  %7262 = vmatprep.mubr.msk.f32.mxu1 %vm419_vm0, %v4990_v62 }
 0x3e6   : > { %7263 = vmatmul.mubr.msk.f32.gmra.mrb[118].mxu1 %vm419_vm0, %v4991_v59  ;;  %v4993_v44 = vmax.f32 %v4871_v61, 0.0 }
 0x3e7   : > { %v4992_v21 = vmax.f32 %v4866_v13, 0.0  ;;  %v7214_v5 = vpop.f32.mrb[90].mxu1 }
 0x3e8   : > { %v4881_v50 = vadd.f32 %v7214_v5, %v9386_v31  ;;  %v4875_v0 = vpop.f32.mrb[91].mxu1 }
 0x3e9   : > { %v4876_v12 = vadd.f32 %v9386_v31, %v4875_v0  ;;  %7265 = vmatprep.mubr.msk.f32.mxu1 %vm419_vm0, %v4992_v21 }
 0x3ea   : > { %7266 = vmatmul.mubr.msk.f32.gmra.mrb[120].mxu1 %vm419_vm0, %v4993_v44  ;;  %v4995_v53 = vmax.f32 %v4881_v50, 0.0 }
 0x3eb   : > { %v4994_v26 = vmax.f32 %v4876_v12, 0.0  ;;  %v7217_v33 = vpop.f32.mrb[92].mxu1  ;;  %v9455_v12 = vld [vmem:[%s9576_s8] ss:$0 sm:$0xff] }
 0x3ec   : > { %v4891_v4 = vadd.f32 %v7217_v33, %v9386_v31  ;;  %v4885_v37 = vpop.f32.mrb[93].mxu1 }
 0x3ed   : > { %v4886_v34 = vadd.f32 %v9386_v31, %v4885_v37  ;;  %7268 = vmatprep.mubr.msk.f32.mxu1 %vm419_vm0, %v4994_v26 }
 0x3ee   : > { %7269 = vmatmul.mubr.msk.f32.gmra.mrb[122].mxu1 %vm419_vm0, %v4995_v53  ;;  %v4997_v39 = vmax.f32 %v4891_v4, 0.0 }
 0x3ef   : > { %v4996_v28 = vmax.f32 %v4886_v34, 0.0  ;;  %v7220_v45 = vpop.f32.mrb[94].mxu1 }
 0x3f0   : > { %v4901_v24 = vadd.f32 %v7220_v45, %v9386_v31  ;;  %v4895_v43 = vpop.f32.mrb[95].mxu1 }
 0x3f1   : > { %v4896_v15 = vadd.f32 %v9386_v31, %v4895_v43  ;;  %7271 = vmatprep.mubr.msk.f32.mxu1 %vm419_vm0, %v4996_v28 }
 0x3f2   : > { %7272 = vmatmul.mubr.msk.f32.gmra.mrb[124].mxu1 %vm419_vm0, %v4997_v39  ;;  %v4999_v38 = vmax.f32 %v4901_v24, 0.0 }
 0x3f3   : > { %v4998_v58 = vmax.f32 %v4896_v15, 0.0  ;;  %v7223_v2 = vpop.f32.mrb[96].mxu1 }
 0x3f4   : > { %v4911_v10 = vadd.f32 %v7223_v2, %v9386_v31  ;;  %v4905_v55 = vpop.f32.mrb[97].mxu1 }
 0x3f5   : > { %v4906_v36 = vadd.f32 %v9386_v31, %v4905_v55  ;;  %7274 = vmatprep.mubr.msk.f32.mxu1 %vm419_vm0, %v4998_v58 }
 0x3f6   : > { %7275 = vmatmul.mubr.msk.f32.gmra.mrb[126].mxu1 %vm419_vm0, %v4999_v38  ;;  %v5001_v35 = vmax.f32 %v4911_v10, 0.0 }
 0x3f7   : > { %v5000_v40 = vmax.f32 %v4906_v36, 0.0  ;;  %v7226_v8 = vpop.f32.mrb[98].mxu1 }
 0x3f8   : > { %v4921_v48 = vadd.f32 %v7226_v8, %v9386_v31  ;;  %v4915_v47 = vpop.f32.mrb[99].mxu1 }
 0x3f9   : > { %v4916_v16 = vadd.f32 %v9386_v31, %v4915_v47  ;;  %7277 = vmatprep.mubr.msk.f32.mxu1 %vm419_vm0, %v5000_v40 }
 0x3fa   : > { %7278 = vmatmul.mubr.msk.f32.gmra.mrb[128].mxu1 %vm419_vm0, %v5001_v35  ;;  %v5003_v27 = vmax.f32 %v4921_v48, 0.0 }
 0x3fb   : > { %v5002_v49 = vmax.f32 %v4916_v16, 0.0  ;;  %v7229_v42 = vpop.f32.mrb[100].mxu1 }
 0x3fc   : > { %v4931_v23 = vadd.f32 %v7229_v42, %v9386_v31  ;;  %v4925_v25 = vpop.f32.mrb[101].mxu1 }
 0x3fd   : > { %v4926_v29 = vadd.f32 %v9386_v31, %v4925_v25  ;;  %7280 = vmatprep.mubr.msk.f32.mxu1 %vm419_vm0, %v5002_v49 }
 0x3fe   : > { %7281 = vmatmul.mubr.msk.f32.gmra.mrb[130].mxu1 %vm419_vm0, %v5003_v27  ;;  %v5005_v18 = vmax.f32 %v4931_v23, 0.0 }
 0x3ff   : > { %v5004_v14 = vmax.f32 %v4926_v29, 0.0  ;;  %v7232_v46 = vpop.f32.mrb[102].mxu1 }
 0x400   : > { %v4941_v60 = vadd.f32 %v7232_v46, %v9386_v31  ;;  %v4935_v17 = vpop.f32.mrb[103].mxu1 }
 0x401   : > { %v4936_v57 = vadd.f32 %v9386_v31, %v4935_v17  ;;  %7283 = vmatprep.mubr.msk.f32.mxu1 %vm419_vm0, %v5004_v14 }
 0x402   : > { %7284 = vmatmul.mubr.msk.f32.gmra.mrb[132].mxu1 %vm419_vm0, %v5005_v18  ;;  %v5007_v11 = vmax.f32 %v4941_v60, 0.0 }
 0x403   : > { %v5006_v63 = vmax.f32 %v4936_v57, 0.0  ;;  %v7235_v56 = vpop.f32.mrb[104].mxu1 }
 0x404   : > { %v4951_v32 = vadd.f32 %v7235_v56, %v9386_v31  ;;  %v4945_v52 = vpop.f32.mrb[105].mxu1 }
 0x405   : > { %v4946_v41 = vadd.f32 %v9386_v31, %v4945_v52  ;;  %7286 = vmatprep.mubr.msk.f32.mxu1 %vm419_vm0, %v5006_v63 }
 0x406   : > { %7287 = vmatmul.mubr.msk.f32.gmra.mrb[134].mxu1 %vm419_vm0, %v5007_v11  ;;  %v5009_v19 = vmax.f32 %v4951_v32, 0.0 }
 0x407   : > { %v5008_v51 = vmax.f32 %v4946_v41, 0.0  ;;  %v7238_v20 = vpop.f32.mrb[106].mxu1 }
 0x408   : > { %v4961_v7 = vadd.f32 %v7238_v20, %v9386_v31  ;;  %v4955_v30 = vpop.f32.mrb[107].mxu1 }
 0x409   : > { %v4956_v1 = vadd.f32 %v9386_v31, %v4955_v30  ;;  %7289 = vmatprep.mubr.msk.f32.mxu1 %vm419_vm0, %v5008_v51 }
 0x40a   : > { %7290 = vmatmul.mubr.msk.f32.gmra.mrb[136].mxu1 %vm419_vm0, %v5009_v19  ;;  %v5011_v22 = vmax.f32 %v4961_v7, 0.0 }
 0x40b   : > { %v5010_v3 = vmax.f32 %v4956_v1, 0.0  ;;  %v7241_v54 = vpop.f32.mrb[108].mxu1 }
 0x40c   : > { %v4971_v62 = vadd.f32 %v7241_v54, %v9386_v31  ;;  %v4965_v9 = vpop.f32.mrb[109].mxu1 }
 0x40d   : > { %v4966_v59 = vadd.f32 %v9386_v31, %v4965_v9  ;;  %7292 = vmatprep.mubr.msk.f32.mxu1 %vm419_vm0, %v5010_v3 }
 0x40e   : > { %7293 = vmatmul.mubr.msk.f32.gmra.mrb[138].mxu1 %vm419_vm0, %v5011_v22  ;;  %v5013_v13 = vmax.f32 %v4971_v62, 0.0 }
 0x40f   : > { %v5012_v61 = vmax.f32 %v4966_v59, 0.0  ;;  %v7244_v6 = vpop.f32.mrb[110].mxu1 }
 0x410   : > { %v4981_v21 = vadd.f32 %v7244_v6, %v9386_v31  ;;  %v4975_v5 = vpop.f32.mrb[111].mxu1 }
 0x411   : > { %v4976_v44 = vadd.f32 %v9386_v31, %v4975_v5  ;;  %7295 = vmatprep.mubr.msk.f32.mxu1 %vm419_vm0, %v5012_v61 }
 0x412   : > { %7296 = vmatmul.mubr.msk.f32.gmra.mrb[140].mxu1 %vm419_vm0, %v5013_v13  ;;  %v5015_v0 = vmax.f32 %v4981_v21, 0.0 }
 0x413   : > { %v5014_v50 = vmax.f32 %v4976_v44, 0.0 }
 0x415   : > { %7298 = vmatprep.mubr.msk.f32.mxu1 %vm419_vm0, %v5014_v50 }
 0x416   : > { %7299 = vmatmul.mubr.msk.f32.gmra.mrb[142].mxu1 %vm419_vm0, %v5015_v0 }
 0x4ad   : > { %v7255_v26 = vpop.f32.mrb[112].mxu1 }
 0x4ae   : > { %v5195_v33 = vadd.f32 %v7255_v26, %v9455_v12  ;;  %v5189_v53 = vpop.f32.mrb[113].mxu1 }
 0x4af   : > { %v5190_v31 = vadd.f32 %v9455_v12, %v5189_v53 }
 0x4b0   : > { %v5349_v34 = vmax.f32 %v5195_v33, 0.0 }
 0x4b1   : > { %v5348_v4 = vmax.f32 %v5190_v31, 0.0  ;;  %v7258_v37 = vpop.f32.mrb[114].mxu1 }
 0x4b2   : > { %v5205_v28 = vadd.f32 %v7258_v37, %v9455_v12  ;;  %v5199_v45 = vpop.f32.mrb[115].mxu1 }
 0x4b3   : > { %v5200_v39 = vadd.f32 %v9455_v12, %v5199_v45  ;;  %7333 = vmatprep.mubr.f32.mxu0 %v5348_v4 }
 0x4b4   : > { %7334 = vmatmul.mubr.f32.vlgmr.msra.gmra.mrb[64].mxu0 %v5349_v34  ;;  %v5351_v15 = vmax.f32 %v5205_v28, 0.0 }
 0x4b5   : > { %v5350_v24 = vmax.f32 %v5200_v39, 0.0  ;;  %v7261_v43 = vpop.f32.mrb[116].mxu1 }
 0x4b6   : > { %v5215_v58 = vadd.f32 %v7261_v43, %v9455_v12  ;;  %v5209_v2 = vpop.f32.mrb[117].mxu1 }
 0x4b7   : > { %v5210_v38 = vadd.f32 %v9455_v12, %v5209_v2  ;;  %7336 = vmatprep.mubr.f32.mxu0 %v5350_v24 }
 0x4b8   : > { %7337 = vmatmul.mubr.f32.gmra.mrb[66].mxu0 %v5351_v15  ;;  %v5353_v36 = vmax.f32 %v5215_v58, 0.0 }
 0x4b9   : > { %v5352_v10 = vmax.f32 %v5210_v38, 0.0  ;;  %v7264_v55 = vpop.f32.mrb[118].mxu1 }
 0x4ba   : > { %v5225_v40 = vadd.f32 %v7264_v55, %v9455_v12  ;;  %v5219_v8 = vpop.f32.mrb[119].mxu1 }
 0x4bb   : > { %v5220_v35 = vadd.f32 %v9455_v12, %v5219_v8  ;;  %7339 = vmatprep.mubr.f32.mxu0 %v5352_v10 }
 0x4bc   : > { %7340 = vmatmul.mubr.f32.gmra.mrb[68].mxu0 %v5353_v36  ;;  %v5355_v16 = vmax.f32 %v5225_v40, 0.0 }
 0x4bd   : > { %v5354_v48 = vmax.f32 %v5220_v35, 0.0  ;;  %v7267_v47 = vpop.f32.mrb[120].mxu1 }
 0x4be   : > { %v5235_v49 = vadd.f32 %v7267_v47, %v9455_v12  ;;  %v5229_v42 = vpop.f32.mrb[121].mxu1 }
 0x4bf   : > { %v5230_v27 = vadd.f32 %v9455_v12, %v5229_v42  ;;  %7342 = vmatprep.mubr.f32.mxu0 %v5354_v48 }
 0x4c0   : > { %7343 = vmatmul.mubr.f32.gmra.mrb[70].mxu0 %v5355_v16  ;;  %v5357_v29 = vmax.f32 %v5235_v49, 0.0 }
 0x4c1   : > { %v5356_v23 = vmax.f32 %v5230_v27, 0.0  ;;  %v7270_v25 = vpop.f32.mrb[122].mxu1 }
 0x4c2   : > { %v5245_v14 = vadd.f32 %v7270_v25, %v9455_v12  ;;  %v5239_v46 = vpop.f32.mrb[123].mxu1 }
 0x4c3   : > { %v5240_v18 = vadd.f32 %v9455_v12, %v5239_v46  ;;  %7345 = vmatprep.mubr.f32.mxu0 %v5356_v23 }
 0x4c4   : > { %7346 = vmatmul.mubr.f32.gmra.mrb[72].mxu0 %v5357_v29  ;;  %v5359_v57 = vmax.f32 %v5245_v14, 0.0 }
 0x4c5   : > { %v5358_v60 = vmax.f32 %v5240_v18, 0.0  ;;  %v7273_v17 = vpop.f32.mrb[124].mxu1  ;;  %v9492_v18 = vld [vmem:[%s9578_s10] ss:$0 sm:$0xff] }
 0x4c6   : > { %v5255_v63 = vadd.f32 %v7273_v17, %v9455_v12  ;;  %v5249_v56 = vpop.f32.mrb[125].mxu1 }
 0x4c7   : > { %v5250_v11 = vadd.f32 %v9455_v12, %v5249_v56  ;;  %7348 = vmatprep.mubr.f32.mxu0 %v5358_v60 }
 0x4c8   : > { %7349 = vmatmul.mubr.f32.gmra.mrb[74].mxu0 %v5359_v57  ;;  %v5361_v41 = vmax.f32 %v5255_v63, 0.0 }
 0x4c9   : > { %v5360_v32 = vmax.f32 %v5250_v11, 0.0  ;;  %v7276_v52 = vpop.f32.mrb[126].mxu1 }
 0x4ca   : > { %v5265_v51 = vadd.f32 %v7276_v52, %v9455_v12  ;;  %v5259_v20 = vpop.f32.mrb[127].mxu1 }
 0x4cb   : > { %v5260_v19 = vadd.f32 %v9455_v12, %v5259_v20  ;;  %7351 = vmatprep.mubr.f32.mxu0 %v5360_v32 }
 0x4cc   : > { %7352 = vmatmul.mubr.f32.gmra.mrb[76].mxu0 %v5361_v41  ;;  %v5363_v1 = vmax.f32 %v5265_v51, 0.0 }
 0x4cd   : > { %v5362_v7 = vmax.f32 %v5260_v19, 0.0  ;;  %v7279_v30 = vpop.f32.mrb[128].mxu1 }
 0x4ce   : > { %v5275_v3 = vadd.f32 %v7279_v30, %v9455_v12  ;;  %v5269_v54 = vpop.f32.mrb[129].mxu1 }
 0x4cf   : > { %v5270_v22 = vadd.f32 %v9455_v12, %v5269_v54  ;;  %7354 = vmatprep.mubr.f32.mxu0 %v5362_v7 }
 0x4d0   : > { %7355 = vmatmul.mubr.f32.gmra.mrb[78].mxu0 %v5363_v1  ;;  %v5365_v59 = vmax.f32 %v5275_v3, 0.0 }
 0x4d1   : > { %v5364_v62 = vmax.f32 %v5270_v22, 0.0  ;;  %v7282_v9 = vpop.f32.mrb[130].mxu1 }
 0x4d2   : > { %v5285_v61 = vadd.f32 %v7282_v9, %v9455_v12  ;;  %v5279_v6 = vpop.f32.mrb[131].mxu1 }
 0x4d3   : > { %v5280_v13 = vadd.f32 %v9455_v12, %v5279_v6  ;;  %7357 = vmatprep.mubr.f32.mxu0 %v5364_v62 }
 0x4d4   : > { %7358 = vmatmul.mubr.f32.gmra.mrb[80].mxu0 %v5365_v59  ;;  %v5367_v44 = vmax.f32 %v5285_v61, 0.0 }
 0x4d5   : > { %v5366_v21 = vmax.f32 %v5280_v13, 0.0  ;;  %v7285_v5 = vpop.f32.mrb[132].mxu1 }
 0x4d6   : > { %v5295_v50 = vadd.f32 %v7285_v5, %v9455_v12  ;;  %v5289_v0 = vpop.f32.mrb[133].mxu1 }
 0x4d7   : > { %v5290_v26 = vadd.f32 %v9455_v12, %v5289_v0  ;;  %7360 = vmatprep.mubr.f32.mxu0 %v5366_v21 }
 0x4d8   : > { %7361 = vmatmul.mubr.f32.gmra.mrb[82].mxu0 %v5367_v44  ;;  %v5369_v31 = vmax.f32 %v5295_v50, 0.0 }
 0x4d9   : > { %v5368_v33 = vmax.f32 %v5290_v26, 0.0  ;;  %v7288_v53 = vpop.f32.mrb[134].mxu1 }
 0x4da   : > { %v5305_v4 = vadd.f32 %v7288_v53, %v9455_v12  ;;  %v5299_v37 = vpop.f32.mrb[135].mxu1 }
 0x4db   : > { %v5300_v34 = vadd.f32 %v9455_v12, %v5299_v37  ;;  %7363 = vmatprep.mubr.f32.mxu0 %v5368_v33 }
 0x4dc   : > { %7364 = vmatmul.mubr.f32.gmra.mrb[84].mxu0 %v5369_v31  ;;  %v5371_v39 = vmax.f32 %v5305_v4, 0.0 }
 0x4dd   : > { %v5370_v28 = vmax.f32 %v5300_v34, 0.0  ;;  %v7291_v45 = vpop.f32.mrb[136].mxu1 }
 0x4de   : > { %v5315_v24 = vadd.f32 %v7291_v45, %v9455_v12  ;;  %v5309_v43 = vpop.f32.mrb[137].mxu1 }
 0x4df   : > { %v5310_v15 = vadd.f32 %v9455_v12, %v5309_v43  ;;  %7366 = vmatprep.mubr.f32.mxu0 %v5370_v28 }
 0x4e0   : > { %7367 = vmatmul.mubr.f32.gmra.mrb[86].mxu0 %v5371_v39  ;;  %v5373_v38 = vmax.f32 %v5315_v24, 0.0 }
 0x4e1   : > { %v5372_v58 = vmax.f32 %v5310_v15, 0.0  ;;  %v7294_v2 = vpop.f32.mrb[138].mxu1 }
 0x4e2   : > { %v5325_v10 = vadd.f32 %v7294_v2, %v9455_v12  ;;  %v5319_v55 = vpop.f32.mrb[139].mxu1 }
 0x4e3   : > { %v5320_v36 = vadd.f32 %v9455_v12, %v5319_v55  ;;  %7369 = vmatprep.mubr.f32.mxu0 %v5372_v58 }
 0x4e4   : > { %7370 = vmatmul.mubr.f32.gmra.mrb[88].mxu0 %v5373_v38  ;;  %v5375_v35 = vmax.f32 %v5325_v10, 0.0 }
 0x4e5   : > { %v5374_v40 = vmax.f32 %v5320_v36, 0.0  ;;  %v7297_v8 = vpop.f32.mrb[140].mxu1 }
 0x4e6   : > { %v5335_v48 = vadd.f32 %v7297_v8, %v9455_v12  ;;  %v5329_v47 = vpop.f32.mrb[141].mxu1 }
 0x4e7   : > { %v5330_v16 = vadd.f32 %v9455_v12, %v5329_v47  ;;  %7372 = vmatprep.mubr.f32.mxu0 %v5374_v40 }
 0x4e8   : > { %7373 = vmatmul.mubr.f32.gmra.mrb[90].mxu0 %v5375_v35  ;;  %v5377_v27 = vmax.f32 %v5335_v48, 0.0 }
 0x4e9   : > { %v5376_v49 = vmax.f32 %v5330_v16, 0.0  ;;  %v7300_v42 = vpop.f32.mrb[142].mxu1 }
 0x4ea   : > { %v5345_v23 = vadd.f32 %v7300_v42, %v9455_v12  ;;  %v5339_v25 = vpop.f32.mrb[143].mxu1 }
 0x4eb   : > { %v5340_v29 = vadd.f32 %v9455_v12, %v5339_v25  ;;  %7375 = vmatprep.mubr.f32.mxu0 %v5376_v49 }
 0x4ec   : > { %7376 = vmatmul.mubr.f32.gmra.mrb[92].mxu0 %v5377_v27  ;;  %v5379_v46 = vmax.f32 %v5345_v23, 0.0 }
 0x4ed   : > { %v5378_v14 = vmax.f32 %v5340_v29, 0.0 }
 0x4ef   : > { %7378 = vmatprep.mubr.f32.mxu0 %v5378_v14 }
 0x4f0   : > { %7379 = vmatmul.mubr.f32.gmra.mrb[94].mxu0 %v5379_v46 }
 0x587   : > { %v7335_v12 = vpop.f32.mrb[64].mxu0 }
 0x588   : > { %v5475_v60 = vadd.f32 %v7335_v12, %v9492_v18  ;;  %v5469_v17 = vpop.f32.mrb[65].mxu0 }
 0x589   : > { %v5470_v57 = vadd.f32 %v9492_v18, %v5469_v17 }
 0x58a   : > { %5629 = vst [vmem:[%s9499_s16 + $0x8] sm:$0xff] %v5475_v60 }
 0x58b   : > { %5628 = vst [vmem:[%s9499_s16] sm:$0xff] %v5470_v57  ;;  %v7338_v63 = vpop.f32.mrb[66].mxu0 }
 0x58c   : > { %v5485_v56 = vadd.f32 %v7338_v63, %v9492_v18  ;;  %v5479_v11 = vpop.f32.mrb[67].mxu0 }
 0x58d   : > { %v5480_v32 = vadd.f32 %v9492_v18, %v5479_v11 }
 0x58e   : > { %5631 = vst [vmem:[%s9499_s16 + $0x18] sm:$0xff] %v5485_v56 }
 0x58f   : > { %5630 = vst [vmem:[%s9499_s16 + $0x10] sm:$0xff] %v5480_v32  ;;  %v7341_v52 = vpop.f32.mrb[68].mxu0 }
 0x590   : > { %v5495_v41 = vadd.f32 %v7341_v52, %v9492_v18  ;;  %v5489_v51 = vpop.f32.mrb[69].mxu0 }
 0x591   : > { %v5490_v20 = vadd.f32 %v9492_v18, %v5489_v51 }
 0x592   : > { %5633 = vst [vmem:[%s9499_s16 + $0x28] sm:$0xff] %v5495_v41 }
 0x593   : > { %5632 = vst [vmem:[%s9499_s16 + $0x20] sm:$0xff] %v5490_v20  ;;  %v7344_v19 = vpop.f32.mrb[70].mxu0 }
 0x594   : > { %v5505_v7 = vadd.f32 %v7344_v19, %v9492_v18  ;;  %v5499_v30 = vpop.f32.mrb[71].mxu0 }
 0x595   : > { %v5500_v1 = vadd.f32 %v9492_v18, %v5499_v30 }
 0x596   : > { %5635 = vst [vmem:[%s9499_s16 + $0x38] sm:$0xff] %v5505_v7 }
 0x597   : > { %5634 = vst [vmem:[%s9499_s16 + $0x30] sm:$0xff] %v5500_v1  ;;  %v7347_v3 = vpop.f32.mrb[72].mxu0 }
 0x598   : > { %v5515_v54 = vadd.f32 %v7347_v3, %v9492_v18  ;;  %v5509_v22 = vpop.f32.mrb[73].mxu0 }
 0x599   : > { %v5510_v62 = vadd.f32 %v9492_v18, %v5509_v22 }
 0x59a   : > { %5637 = vst [vmem:[%s9499_s16 + $0x48] sm:$0xff] %v5515_v54 }
 0x59b   : > { %5636 = vst [vmem:[%s9499_s16 + $0x40] sm:$0xff] %v5510_v62  ;;  %v7350_v9 = vpop.f32.mrb[74].mxu0 }
 0x59c   : > { %v5525_v59 = vadd.f32 %v7350_v9, %v9492_v18  ;;  %v5519_v61 = vpop.f32.mrb[75].mxu0 }
 0x59d   : > { %v5520_v6 = vadd.f32 %v9492_v18, %v5519_v61 }
 0x59e   : > { %5639 = vst [vmem:[%s9499_s16 + $0x58] sm:$0xff] %v5525_v59 }
 0x59f   : > { %5638 = vst [vmem:[%s9499_s16 + $0x50] sm:$0xff] %v5520_v6  ;;  %v7353_v13 = vpop.f32.mrb[76].mxu0 }
 0x5a0   : > { %v5535_v21 = vadd.f32 %v7353_v13, %v9492_v18  ;;  %v5529_v5 = vpop.f32.mrb[77].mxu0 }
 0x5a1   : > { %v5530_v44 = vadd.f32 %v9492_v18, %v5529_v5 }
 0x5a2   : > { %5641 = vst [vmem:[%s9499_s16 + $0x68] sm:$0xff] %v5535_v21 }
 0x5a3   : > { %5640 = vst [vmem:[%s9499_s16 + $0x60] sm:$0xff] %v5530_v44  ;;  %v7356_v50 = vpop.f32.mrb[78].mxu0 }
 0x5a4   : > { %v5545_v0 = vadd.f32 %v7356_v50, %v9492_v18  ;;  %v5539_v26 = vpop.f32.mrb[79].mxu0 }
 0x5a5   : > { %v5540_v33 = vadd.f32 %v9492_v18, %v5539_v26 }
 0x5a6   : > { %5643 = vst [vmem:[%s9499_s16 + $0x78] sm:$0xff] %v5545_v0 }
 0x5a7   : > { %5642 = vst [vmem:[%s9499_s16 + $0x70] sm:$0xff] %v5540_v33  ;;  %v7359_v53 = vpop.f32.mrb[80].mxu0 }
 0x5a8   : > { %v5555_v31 = vadd.f32 %v7359_v53, %v9492_v18  ;;  %v5549_v4 = vpop.f32.mrb[81].mxu0 }
 0x5a9   : > { %v5550_v37 = vadd.f32 %v9492_v18, %v5549_v4 }
 0x5aa   : > { %5645 = vst [vmem:[%s9499_s16 + $0x88] sm:$0xff] %v5555_v31 }
 0x5ab   : > { %5644 = vst [vmem:[%s9499_s16 + $0x80] sm:$0xff] %v5550_v37  ;;  %v7362_v34 = vpop.f32.mrb[82].mxu0 }
 0x5ac   : > { %v5565_v28 = vadd.f32 %v7362_v34, %v9492_v18  ;;  %v5559_v45 = vpop.f32.mrb[83].mxu0 }
 0x5ad   : > { %v5560_v39 = vadd.f32 %v9492_v18, %v5559_v45 }
 0x5ae   : > { %5647 = vst [vmem:[%s9499_s16 + $0x98] sm:$0xff] %v5565_v28 }
 0x5af   : > { %5646 = vst [vmem:[%s9499_s16 + $0x90] sm:$0xff] %v5560_v39  ;;  %v7365_v24 = vpop.f32.mrb[84].mxu0 }
 0x5b0   : > { %v5575_v43 = vadd.f32 %v7365_v24, %v9492_v18  ;;  %v5569_v15 = vpop.f32.mrb[85].mxu0 }
 0x5b1   : > { %v5570_v58 = vadd.f32 %v9492_v18, %v5569_v15 }
 0x5b2   : > { %5649 = vst [vmem:[%s9499_s16 + $0xa8] sm:$0xff] %v5575_v43 }
 0x5b3   : > { %5648 = vst [vmem:[%s9499_s16 + $0xa0] sm:$0xff] %v5570_v58  ;;  %v7368_v2 = vpop.f32.mrb[86].mxu0 }
 0x5b4   : > { %v5585_v38 = vadd.f32 %v7368_v2, %v9492_v18  ;;  %v5579_v10 = vpop.f32.mrb[87].mxu0 }
 0x5b5   : > { %v5580_v55 = vadd.f32 %v9492_v18, %v5579_v10 }
 0x5b6   : > { %5651 = vst [vmem:[%s9499_s16 + $0xb8] sm:$0xff] %v5585_v38 }
 0x5b7   : > { %5650 = vst [vmem:[%s9499_s16 + $0xb0] sm:$0xff] %v5580_v55  ;;  %v7371_v36 = vpop.f32.mrb[88].mxu0 }
 0x5b8   : > { %v5595_v40 = vadd.f32 %v7371_v36, %v9492_v18  ;;  %v5589_v8 = vpop.f32.mrb[89].mxu0 }
 0x5b9   : > { %v5590_v35 = vadd.f32 %v9492_v18, %v5589_v8 }
 0x5ba   : > { %5653 = vst [vmem:[%s9499_s16 + $0xc8] sm:$0xff] %v5595_v40 }
 0x5bb   : > { %5652 = vst [vmem:[%s9499_s16 + $0xc0] sm:$0xff] %v5590_v35  ;;  %v7374_v48 = vpop.f32.mrb[90].mxu0 }
 0x5bc   : > { %v5605_v47 = vadd.f32 %v7374_v48, %v9492_v18  ;;  %v5599_v16 = vpop.f32.mrb[91].mxu0 }
 0x5bd   : > { %v5600_v49 = vadd.f32 %v9492_v18, %v5599_v16 }
 0x5be   : > { %5655 = vst [vmem:[%s9499_s16 + $0xd8] sm:$0xff] %v5605_v47 }
 0x5bf   : > { %5654 = vst [vmem:[%s9499_s16 + $0xd0] sm:$0xff] %v5600_v49  ;;  %v7377_v42 = vpop.f32.mrb[92].mxu0 }
 0x5c0   : > { %v5615_v27 = vadd.f32 %v7377_v42, %v9492_v18  ;;  %v5609_v23 = vpop.f32.mrb[93].mxu0 }
 0x5c1   : > { %v5610_v25 = vadd.f32 %v9492_v18, %v5609_v23 }
 0x5c2   : > { %5657 = vst [vmem:[%s9499_s16 + $0xe8] sm:$0xff] %v5615_v27 }
 0x5c3   : > { %5656 = vst [vmem:[%s9499_s16 + $0xe0] sm:$0xff] %v5610_v25  ;;  %v7380_v29 = vpop.f32.mrb[94].mxu0 }
 0x5c4   : > { %v5625_v14 = vadd.f32 %v7380_v29, %v9492_v18  ;;  %v5619_v46 = vpop.f32.mrb[95].mxu0 }
 0x5c5   : > { %v5620_v12 = vadd.f32 %v9492_v18, %v5619_v46 }
 0x5c6   : > { %5659 = vst [vmem:[%s9499_s16 + $0xf8] sm:$0xff] %v5625_v14 }
 0x5c7   : > { %5658 = vst [vmem:[%s9499_s16 + $0xf0] sm:$0xff] %v5620_v12 }
 0x5c8 PF: > { %s21_s17 = sadd.s32 1, %s7720_s17  }
 0x5c9   : > { %p18_p4 = scmp.ge.s32.totalorder %s21_s17, 8  }
 0x5cb   :  { %20 = sbr.rel (!%p18_p4) target bundleno = 1 (0x1), region = 102 }

</bundles_post_ra>
